<compile_context>
chip_gen: v7x
topology: tpu7x:2x2x1
jax: 0.10.0
libtpu: 0.0.40
codegen_flags: <defaults>
</compile_context>

<pallas_src>
import functools

import jax
import jax.numpy as jnp
from jax.experimental import pallas as pl
from jax.experimental.pallas import tpu as pltpu


# ----------------------------------------------------------------------------
# Pallas kernels
# ----------------------------------------------------------------------------
def _conv_pool_kernel(a_ref, w_ref, b_ref, o_ref, *, apply_relu):
    """Fused conv-as-matmul + bias + 2x2 maxpool (+ReLU) epilogue.

    a_ref: (4, tm, K) bf16   -- 4 pool-window positions of the im2col rows
    w_ref: (K, N)     bf16
    b_ref: (1, N)     f32
    o_ref: (tm, N)
    """
    w = w_ref[...]
    acc = jnp.dot(a_ref[0], w, preferred_element_type=jnp.float32)
    for p in range(1, 4):
        acc = jnp.maximum(
            acc, jnp.dot(a_ref[p], w, preferred_element_type=jnp.float32))
    acc = acc + b_ref[...]
    if apply_relu:
        acc = jnp.maximum(acc, 0.0)
    o_ref[...] = acc.astype(o_ref.dtype)


def _matmul_bias_kernel(a_ref, w_ref, b_ref, o_ref, *, apply_relu):
    # a: (tm, K) bf16, w: (K, N) bf16, b: (1, N) f32 -> o: (tm, N)
    acc = jnp.dot(a_ref[...], w_ref[...], preferred_element_type=jnp.float32)
    acc = acc + b_ref[...]
    if apply_relu:
        acc = jnp.maximum(acc, 0.0)
    o_ref[...] = acc.astype(o_ref.dtype)


# ----------------------------------------------------------------------------
# pallas_call wrappers
# ----------------------------------------------------------------------------
def conv_pool(a4, w, b, *, apply_relu, out_dtype, tm=256):
    """a4: (4, Mo, K) window-major im2col; returns pooled conv (Mo, N)."""
    _, Mo, K = a4.shape
    N = w.shape[1]
    tm_eff = Mo if Mo <= tm else tm          # full block for small Mo
    grid = (pl.cdiv(Mo, tm_eff),)            # partial last block auto-masked
    return pl.pallas_call(
        functools.partial(_conv_pool_kernel, apply_relu=apply_relu),
        out_shape=jax.ShapeDtypeStruct((Mo, N), out_dtype),
        grid=grid,
        in_specs=[
            pl.BlockSpec((4, tm_eff, K), lambda i: (0, i, 0)),
            pl.BlockSpec((K, N), lambda i: (0, 0)),
            pl.BlockSpec((1, N), lambda i: (0, 0)),
        ],
        out_specs=pl.BlockSpec((tm_eff, N), lambda i: (i, 0)),
        compiler_params=pltpu.CompilerParams(
            dimension_semantics=("parallel",)),
    )(a4, w, b)


def matmul_bias(a, w, b, *, apply_relu, out_dtype=jnp.float32, tm=512):
    """(M, K) @ (K, N) + bias, optional fused ReLU.  No pad/slice; cdiv grid."""
    M, K = a.shape
    N = w.shape[1]
    tm_eff = M if M <= tm else tm
    grid = (pl.cdiv(M, tm_eff),)
    return pl.pallas_call(
        functools.partial(_matmul_bias_kernel, apply_relu=apply_relu),
        out_shape=jax.ShapeDtypeStruct((M, N), out_dtype),
        grid=grid,
        in_specs=[
            pl.BlockSpec((tm_eff, K), lambda i: (i, 0)),
            pl.BlockSpec((K, N), lambda i: (0, 0)),
            pl.BlockSpec((1, N), lambda i: (0, 0)),
        ],
        out_specs=pl.BlockSpec((tm_eff, N), lambda i: (i, 0)),
        compiler_params=pltpu.CompilerParams(
            dimension_semantics=("parallel",)),
    )(a, w, b)


# ----------------------------------------------------------------------------
# Glue: im2col (pool-window-major), one-time parameter preparation
# ----------------------------------------------------------------------------
def im2col_pool_major(x_nhwc):
    """3x3/stride1/pad1 patches laid out as (4, B*Ho*Wo, 9*C).

    Leading axis = 2x2 pool-window position (ph, pw); row m = (b, ho, wo).
    Patch element order is (kh, kw, cin), cin fastest (matches weight prep).
    """
    B, H, W, C = x_nhwc.shape
    Ho, Wo = H // 2, W // 2
    xp = jnp.pad(x_nhwc, ((0, 0), (1, 1), (1, 1), (0, 0)))
    cols = [xp[:, dh:dh + H, dw:dw + W, :] for dh in range(3) for dw in range(3)]
    patches = jnp.stack(cols, axis=3)                       # (B, H, W, 9, C)
    patches = patches.reshape(B, Ho, 2, Wo, 2, 9 * C)
    patches = patches.transpose(2, 4, 0, 1, 3, 5)           # (ph, pw, B, Ho, Wo, 9C)
    return patches.reshape(4, B * Ho * Wo, 9 * C)


def init_params(key):
    k1, k2, k3, k4, k5, k6 = jax.random.split(key, 6)
    # PyTorch shapes: conv1 (32,1,3,3), conv2 (64,32,3,3), fc1 (10, 64*49)
    return {
        "conv1_w": jax.random.normal(k1, (32, 1, 3, 3), jnp.float32) * 0.1,
        "conv1_b": jax.random.normal(k2, (32,), jnp.float32) * 0.1,
        "conv2_w": jax.random.normal(k3, (64, 32, 3, 3), jnp.float32) * 0.05,
        "conv2_b": jax.random.normal(k4, (64,), jnp.float32) * 0.1,
        "fc1_w": jax.random.normal(k5, (10, 64 * 49), jnp.float32) * 0.02,
        "fc1_b": jax.random.normal(k6, (10,), jnp.float32) * 0.1,
    }


def prepare_params(params):
    """One-time weight reshapes / transposes / bf16 casts (outside the jit)."""
    def conv_w(w_oihw):
        cout, cin, kh, kw = w_oihw.shape
        return (jnp.transpose(w_oihw, (2, 3, 1, 0))
                .reshape(kh * kw * cin, cout).astype(jnp.bfloat16))

    # fc1 weight: reorder columns from NCHW flatten (c,h,w) to NHWC flatten
    # (h,w,c) and transpose, so the forward pass needs no per-call transpose.
    fc_w = (params["fc1_w"].reshape(10, 64, 7, 7)
            .transpose(2, 3, 1, 0).reshape(49 * 64, 10).astype(jnp.bfloat16))
    return {
        "conv1_w": conv_w(params["conv1_w"]),
        "conv1_b": params["conv1_b"].reshape(1, -1).astype(jnp.float32),
        "conv2_w": conv_w(params["conv2_w"]),
        "conv2_b": params["conv2_b"].reshape(1, -1).astype(jnp.float32),
        "fc1_w": fc_w,
        "fc1_b": params["fc1_b"].reshape(1, -1).astype(jnp.float32),
    }


# ----------------------------------------------------------------------------
# Forward pass (matches PyTorch: conv1 -> pool -> conv2 -> pool -> relu
#               -> flatten -> fc1 -> relu)
# ----------------------------------------------------------------------------
@jax.jit
def cnn_forward(x_nchw, params):
    B, C, H, W = x_nchw.shape                       # expects (B, 1, 28, 28)
    x = jnp.transpose(x_nchw, (0, 2, 3, 1)).astype(jnp.bfloat16)   # NHWC bf16

    # conv1 (1 -> 32) + bias + maxpool2x2, fused (no ReLU here, per spec)
    p1 = im2col_pool_major(x)                                       # (4, B*196, 9)
    h1 = conv_pool(p1, params["conv1_w"], params["conv1_b"],
                   apply_relu=False, out_dtype=jnp.bfloat16)        # (B*196, 32)
    h1 = h1.reshape(B, H // 2, W // 2, 32)

    # conv2 (32 -> 64) + bias + maxpool2x2 + ReLU, fused
    p2 = im2col_pool_major(h1)                                      # (4, B*49, 288)
    h2 = conv_pool(p2, params["conv2_w"], params["conv2_b"],
                   apply_relu=True, out_dtype=jnp.bfloat16)         # (B*49, 64)

    # Flatten: h2 rows are (b, h, w) with 64 channels -> NHWC flatten; fc1
    # weight was pre-reordered to this order, so this reshape is free.
    feat = h2.reshape(B, (H // 4) * (W // 4) * 64)                  # (B, 3136)

    # fc1 + ReLU (single full-array block at small B)
    y = matmul_bias(feat, params["fc1_w"], params["fc1_b"],
                    apply_relu=True, out_dtype=jnp.float32)         # (B, 10)
    return y


if __name__ == "__main__":
    key = jax.random.PRNGKey(0)
    k_in, k_par = jax.random.split(key)
    # MNIST-shaped input: fc1 (64*49) requires 28x28 spatial input.
    x = jax.random.normal(k_in, (2, 1, 28, 28), jnp.float32)
    params = prepare_params(init_params(k_par))

    y = cnn_forward(x, params)
    jax.block_until_ready(y)
    assert y.shape == (2, 10)
    assert bool(jnp.all(y >= 0.0))  # final ReLU
    print("KERNEL_OK")
</pallas_src>

<mosaic_0001>
module attributes {stable_mosaic.version = 11 : i64} {
  func.func @_conv_pool_kernel(%arg0: i32, %arg1: memref<4x256x9xbf16, #tpu.memory_space<vmem>>, %arg2: memref<9x32xbf16, #tpu.memory_space<vmem>>, %arg3: memref<1x32xf32, #tpu.memory_space<vmem>>, %arg4: memref<256x32xbf16, #tpu.memory_space<vmem>>) attributes {dimension_semantics = [#tpu.dimension_semantics<parallel>], iteration_bounds = array<i64: 2>, scalar_prefetch = 0 : i64, scratch_operands = 0 : i64, tpu.core_type = #tpu.core_type<tc>, window_params = [{transform_indices = @transform_0, window_bounds = array<i64: 4, 256, 9>}, {pipeline_mode = #tpu.pipeline_mode<synchronous>, transform_indices = @transform_1, window_bounds = array<i64: 9, 32>}, {pipeline_mode = #tpu.pipeline_mode<synchronous>, transform_indices = @transform_2, window_bounds = array<i64: 1, 32>}, {transform_indices = @transform_3, window_bounds = array<i64: 256, 32>}]} {
    %c0 = arith.constant 0 : index
    %c0_0 = arith.constant 0 : index
    %0 = vector.load %arg2[%c0, %c0_0] : memref<9x32xbf16, #tpu.memory_space<vmem>>, vector<9x32xbf16>
    %c0_1 = arith.constant 0 : index
    %c0_2 = arith.constant 0 : index
    %c0_3 = arith.constant 0 : index
    %1 = vector.load %arg1[%c0_1, %c0_2, %c0_3] : memref<4x256x9xbf16, #tpu.memory_space<vmem>>, vector<1x256x9xbf16>
    %2 = vector.shape_cast %1 : vector<1x256x9xbf16> to vector<256x9xbf16>
    %cst = arith.constant dense<0.000000e+00> : vector<256x32xf32>
    %3 = tpu.matmul %2, %0, %cst {dimension_numbers = #tpu.dot_dimension_numbers<[1], [0], [0], [1], [0, 0, 1, 1], [], []>} : vector<256x9xbf16>, vector<9x32xbf16>, vector<256x32xf32> -> vector<256x32xf32>
    %c1 = arith.constant 1 : index
    %c0_4 = arith.constant 0 : index
    %c0_5 = arith.constant 0 : index
    %4 = vector.load %arg1[%c1, %c0_4, %c0_5] : memref<4x256x9xbf16, #tpu.memory_space<vmem>>, vector<1x256x9xbf16>
    %5 = vector.shape_cast %4 : vector<1x256x9xbf16> to vector<256x9xbf16>
    %cst_6 = arith.constant dense<0.000000e+00> : vector<256x32xf32>
    %6 = tpu.matmul %5, %0, %cst_6 {dimension_numbers = #tpu.dot_dimension_numbers<[1], [0], [0], [1], [0, 0, 1, 1], [], []>} : vector<256x9xbf16>, vector<9x32xbf16>, vector<256x32xf32> -> vector<256x32xf32>
    %7 = arith.maximumf %3, %6 : vector<256x32xf32>
    %c2 = arith.constant 2 : index
    %c0_7 = arith.constant 0 : index
    %c0_8 = arith.constant 0 : index
    %8 = vector.load %arg1[%c2, %c0_7, %c0_8] : memref<4x256x9xbf16, #tpu.memory_space<vmem>>, vector<1x256x9xbf16>
    %9 = vector.shape_cast %8 : vector<1x256x9xbf16> to vector<256x9xbf16>
    %cst_9 = arith.constant dense<0.000000e+00> : vector<256x32xf32>
    %10 = tpu.matmul %9, %0, %cst_9 {dimension_numbers = #tpu.dot_dimension_numbers<[1], [0], [0], [1], [0, 0, 1, 1], [], []>} : vector<256x9xbf16>, vector<9x32xbf16>, vector<256x32xf32> -> vector<256x32xf32>
    %11 = arith.maximumf %7, %10 : vector<256x32xf32>
    %c3 = arith.constant 3 : index
    %c0_10 = arith.constant 0 : index
    %c0_11 = arith.constant 0 : index
    %12 = vector.load %arg1[%c3, %c0_10, %c0_11] : memref<4x256x9xbf16, #tpu.memory_space<vmem>>, vector<1x256x9xbf16>
    %13 = vector.shape_cast %12 : vector<1x256x9xbf16> to vector<256x9xbf16>
    %cst_12 = arith.constant dense<0.000000e+00> : vector<256x32xf32>
    %14 = tpu.matmul %13, %0, %cst_12 {dimension_numbers = #tpu.dot_dimension_numbers<[1], [0], [0], [1], [0, 0, 1, 1], [], []>} : vector<256x9xbf16>, vector<9x32xbf16>, vector<256x32xf32> -> vector<256x32xf32>
    %15 = arith.maximumf %11, %14 : vector<256x32xf32>
    %c0_13 = arith.constant 0 : index
    %c0_14 = arith.constant 0 : index
    %16 = vector.load %arg3[%c0_13, %c0_14] : memref<1x32xf32, #tpu.memory_space<vmem>>, vector<1x32xf32>
    %17 = vector.broadcast %16 : vector<1x32xf32> to vector<256x32xf32>
    %18 = arith.addf %15, %17 : vector<256x32xf32>
    %19 = arith.truncf %18 : vector<256x32xf32> to vector<256x32xbf16>
    %c0_15 = arith.constant 0 : index
    %c0_16 = arith.constant 0 : index
    %20 = vector.load %arg4[%c0_15, %c0_16] : memref<256x32xbf16, #tpu.memory_space<vmem>>, vector<256x32xbf16>
    tpu.vector_store %arg4[%c0_15, %c0_16], %19 {strides = array<i32>} : memref<256x32xbf16, #tpu.memory_space<vmem>>, vector<256x32xbf16>,
    return
  }
  func.func @transform_0(%arg0: i32) -> (i32, i32, i32) {
    %c0_i32 = arith.constant 0 : i32
    %c0_i32_0 = arith.constant 0 : i32
    %c0_i32_1 = arith.constant 0 : i32
    return %c0_i32, %arg0, %c0_i32_0 : i32, i32, i32
  }
  func.func @transform_1(%arg0: i32) -> (i32, i32) {
    %c0_i32 = arith.constant 0 : i32
    %c0_i32_0 = arith.constant 0 : i32
    %c0_i32_1 = arith.constant 0 : i32
    return %c0_i32, %c0_i32_0 : i32, i32
  }
  func.func @transform_2(%arg0: i32) -> (i32, i32) {
    %c0_i32 = arith.constant 0 : i32
    %c0_i32_0 = arith.constant 0 : i32
    %c0_i32_1 = arith.constant 0 : i32
    return %c0_i32, %c0_i32_0 : i32, i32
  }
  func.func @transform_3(%arg0: i32) -> (i32, i32) {
    %c0_i32 = arith.constant 0 : i32
    %c0_i32_0 = arith.constant 0 : i32
    return %arg0, %c0_i32 : i32, i32
  }
}

module attributes {stable_mosaic.version = 11 : i64} {
  func.func @_conv_pool_kernel(%arg0: i32, %arg1: memref<4x98x288xbf16, #tpu.memory_space<vmem>>, %arg2: memref<288x64xbf16, #tpu.memory_space<vmem>>, %arg3: memref<1x64xf32, #tpu.memory_space<vmem>>, %arg4: memref<98x64xbf16, #tpu.memory_space<vmem>>) attributes {dimension_semantics = [#tpu.dimension_semantics<parallel>], iteration_bounds = array<i64: 1>, scalar_prefetch = 0 : i64, scratch_operands = 0 : i64, tpu.core_type = #tpu.core_type<tc>, window_params = [{transform_indices = @transform_0, window_bounds = array<i64: 4, 98, 288>}, {pipeline_mode = #tpu.pipeline_mode<synchronous>, transform_indices = @transform_1, window_bounds = array<i64: 288, 64>}, {pipeline_mode = #tpu.pipeline_mode<synchronous>, transform_indices = @transform_2, window_bounds = array<i64: 1, 64>}, {transform_indices = @transform_3, window_bounds = array<i64: 98, 64>}]} {
    %c0 = arith.constant 0 : index
    %c0_0 = arith.constant 0 : index
    %0 = vector.load %arg2[%c0, %c0_0] : memref<288x64xbf16, #tpu.memory_space<vmem>>, vector<288x64xbf16>
    %c0_1 = arith.constant 0 : index
    %c0_2 = arith.constant 0 : index
    %c0_3 = arith.constant 0 : index
    %1 = vector.load %arg1[%c0_1, %c0_2, %c0_3] : memref<4x98x288xbf16, #tpu.memory_space<vmem>>, vector<1x98x288xbf16>
    %2 = vector.shape_cast %1 : vector<1x98x288xbf16> to vector<98x288xbf16>
    %cst = arith.constant dense<0.000000e+00> : vector<98x64xf32>
    %3 = tpu.matmul %2, %0, %cst {dimension_numbers = #tpu.dot_dimension_numbers<[1], [0], [0], [1], [0, 0, 1, 1], [], []>} : vector<98x288xbf16>, vector<288x64xbf16>, vector<98x64xf32> -> vector<98x64xf32>
    %c1 = arith.constant 1 : index
    %c0_4 = arith.constant 0 : index
    %c0_5 = arith.constant 0 : index
    %4 = vector.load %arg1[%c1, %c0_4, %c0_5] : memref<4x98x288xbf16, #tpu.memory_space<vmem>>, vector<1x98x288xbf16>
    %5 = vector.shape_cast %4 : vector<1x98x288xbf16> to vector<98x288xbf16>
    %cst_6 = arith.constant dense<0.000000e+00> : vector<98x64xf32>
    %6 = tpu.matmul %5, %0, %cst_6 {dimension_numbers = #tpu.dot_dimension_numbers<[1], [0], [0], [1], [0, 0, 1, 1], [], []>} : vector<98x288xbf16>, vector<288x64xbf16>, vector<98x64xf32> -> vector<98x64xf32>
    %7 = arith.maximumf %3, %6 : vector<98x64xf32>
    %c2 = arith.constant 2 : index
    %c0_7 = arith.constant 0 : index
    %c0_8 = arith.constant 0 : index
    %8 = vector.load %arg1[%c2, %c0_7, %c0_8] : memref<4x98x288xbf16, #tpu.memory_space<vmem>>, vector<1x98x288xbf16>
    %9 = vector.shape_cast %8 : vector<1x98x288xbf16> to vector<98x288xbf16>
    %cst_9 = arith.constant dense<0.000000e+00> : vector<98x64xf32>
    %10 = tpu.matmul %9, %0, %cst_9 {dimension_numbers = #tpu.dot_dimension_numbers<[1], [0], [0], [1], [0, 0, 1, 1], [], []>} : vector<98x288xbf16>, vector<288x64xbf16>, vector<98x64xf32> -> vector<98x64xf32>
    %11 = arith.maximumf %7, %10 : vector<98x64xf32>
    %c3 = arith.constant 3 : index
    %c0_10 = arith.constant 0 : index
    %c0_11 = arith.constant 0 : index
    %12 = vector.load %arg1[%c3, %c0_10, %c0_11] : memref<4x98x288xbf16, #tpu.memory_space<vmem>>, vector<1x98x288xbf16>
    %13 = vector.shape_cast %12 : vector<1x98x288xbf16> to vector<98x288xbf16>
    %cst_12 = arith.constant dense<0.000000e+00> : vector<98x64xf32>
    %14 = tpu.matmul %13, %0, %cst_12 {dimension_numbers = #tpu.dot_dimension_numbers<[1], [0], [0], [1], [0, 0, 1, 1], [], []>} : vector<98x288xbf16>, vector<288x64xbf16>, vector<98x64xf32> -> vector<98x64xf32>
    %15 = arith.maximumf %11, %14 : vector<98x64xf32>
    %c0_13 = arith.constant 0 : index
    %c0_14 = arith.constant 0 : index
    %16 = vector.load %arg3[%c0_13, %c0_14] : memref<1x64xf32, #tpu.memory_space<vmem>>, vector<1x64xf32>
    %17 = vector.broadcast %16 : vector<1x64xf32> to vector<98x64xf32>
    %18 = arith.addf %15, %17 : vector<98x64xf32>
    %cst_15 = arith.constant 0.000000e+00 : f32
    %19 = vector.broadcast %cst_15 : f32 to vector<98x64xf32>
    %20 = arith.maximumf %18, %19 : vector<98x64xf32>
    %21 = arith.truncf %20 : vector<98x64xf32> to vector<98x64xbf16>
    %c0_16 = arith.constant 0 : index
    %c0_17 = arith.constant 0 : index
    %22 = vector.load %arg4[%c0_16, %c0_17] : memref<98x64xbf16, #tpu.memory_space<vmem>>, vector<98x64xbf16>
    tpu.vector_store %arg4[%c0_16, %c0_17], %21 {strides = array<i32>} : memref<98x64xbf16, #tpu.memory_space<vmem>>, vector<98x64xbf16>,
    return
  }
  func.func @transform_0(%arg0: i32) -> (i32, i32, i32) {
    %c0_i32 = arith.constant 0 : i32
    %c0_i32_0 = arith.constant 0 : i32
    %c0_i32_1 = arith.constant 0 : i32
    return %c0_i32, %arg0, %c0_i32_0 : i32, i32, i32
  }
  func.func @transform_1(%arg0: i32) -> (i32, i32) {
    %c0_i32 = arith.constant 0 : i32
    %c0_i32_0 = arith.constant 0 : i32
    %c0_i32_1 = arith.constant 0 : i32
    return %c0_i32, %c0_i32_0 : i32, i32
  }
  func.func @transform_2(%arg0: i32) -> (i32, i32) {
    %c0_i32 = arith.constant 0 : i32
    %c0_i32_0 = arith.constant 0 : i32
    %c0_i32_1 = arith.constant 0 : i32
    return %c0_i32, %c0_i32_0 : i32, i32
  }
  func.func @transform_3(%arg0: i32) -> (i32, i32) {
    %c0_i32 = arith.constant 0 : i32
    %c0_i32_0 = arith.constant 0 : i32
    return %arg0, %c0_i32 : i32, i32
  }
}

module attributes {stable_mosaic.version = 11 : i64} {
  func.func @_matmul_bias_kernel(%arg0: i32, %arg1: memref<2x3136xbf16, #tpu.memory_space<vmem>>, %arg2: memref<3136x10xbf16, #tpu.memory_space<vmem>>, %arg3: memref<1x10xf32, #tpu.memory_space<vmem>>, %arg4: memref<2x10xf32, #tpu.memory_space<vmem>>) attributes {dimension_semantics = [#tpu.dimension_semantics<parallel>], iteration_bounds = array<i64: 1>, scalar_prefetch = 0 : i64, scratch_operands = 0 : i64, tpu.core_type = #tpu.core_type<tc>, window_params = [{transform_indices = @transform_0, window_bounds = array<i64: 2, 3136>}, {pipeline_mode = #tpu.pipeline_mode<synchronous>, transform_indices = @transform_1, window_bounds = array<i64: 3136, 10>}, {pipeline_mode = #tpu.pipeline_mode<synchronous>, transform_indices = @transform_2, window_bounds = array<i64: 1, 10>}, {transform_indices = @transform_3, window_bounds = array<i64: 2, 10>}]} {
    %c0 = arith.constant 0 : index
    %c0_0 = arith.constant 0 : index
    %0 = vector.load %arg1[%c0, %c0_0] : memref<2x3136xbf16, #tpu.memory_space<vmem>>, vector<2x3136xbf16>
    %c0_1 = arith.constant 0 : index
    %c0_2 = arith.constant 0 : index
    %1 = vector.load %arg2[%c0_1, %c0_2] : memref<3136x10xbf16, #tpu.memory_space<vmem>>, vector<3136x10xbf16>
    %cst = arith.constant dense<0.000000e+00> : vector<2x10xf32>
    %2 = tpu.matmul %0, %1, %cst {dimension_numbers = #tpu.dot_dimension_numbers<[1], [0], [0], [1], [0, 0, 1, 1], [], []>} : vector<2x3136xbf16>, vector<3136x10xbf16>, vector<2x10xf32> -> vector<2x10xf32>
    %c0_3 = arith.constant 0 : index
    %c0_4 = arith.constant 0 : index
    %3 = vector.load %arg3[%c0_3, %c0_4] : memref<1x10xf32, #tpu.memory_space<vmem>>, vector<1x10xf32>
    %4 = vector.broadcast %3 : vector<1x10xf32> to vector<2x10xf32>
    %5 = arith.addf %2, %4 : vector<2x10xf32>
    %cst_5 = arith.constant 0.000000e+00 : f32
    %6 = vector.broadcast %cst_5 : f32 to vector<2x10xf32>
    %7 = arith.maximumf %5, %6 : vector<2x10xf32>
    %c0_6 = arith.constant 0 : index
    %c0_7 = arith.constant 0 : index
    %8 = vector.load %arg4[%c0_6, %c0_7] : memref<2x10xf32, #tpu.memory_space<vmem>>, vector<2x10xf32>
    tpu.vector_store %arg4[%c0_6, %c0_7], %7 {strides = array<i32>} : memref<2x10xf32, #tpu.memory_space<vmem>>, vector<2x10xf32>,
    return
  }
  func.func @transform_0(%arg0: i32) -> (i32, i32) {
    %c0_i32 = arith.constant 0 : i32
    %c0_i32_0 = arith.constant 0 : i32
    return %arg0, %c0_i32 : i32, i32
  }
  func.func @transform_1(%arg0: i32) -> (i32, i32) {
    %c0_i32 = arith.constant 0 : i32
    %c0_i32_0 = arith.constant 0 : i32
    %c0_i32_1 = arith.constant 0 : i32
    return %c0_i32, %c0_i32_0 : i32, i32
  }
  func.func @transform_2(%arg0: i32) -> (i32, i32) {
    %c0_i32 = arith.constant 0 : i32
    %c0_i32_0 = arith.constant 0 : i32
    %c0_i32_1 = arith.constant 0 : i32
    return %c0_i32, %c0_i32_0 : i32, i32
  }
  func.func @transform_3(%arg0: i32) -> (i32, i32) {
    %c0_i32 = arith.constant 0 : i32
    %c0_i32_0 = arith.constant 0 : i32
    return %arg0, %c0_i32 : i32, i32
  }
}

</mosaic_0001>

<bundles_post_ra>
// kernel: cnn_forward.3
= control target key start
LH: loop header
LB: loop body
LE: loop exit
PB: predicated region body
PF: predicated region fallthrough
CT: control target
= control target key end

     0   :  { %s3519_s12 = smov 0   ;;  %s3521_s13 = smov 0   ;;  %s4429_s0 = inlined_call_operand.vmem [shape: bf16[4,392,9], index: 0, kind: input, shape index: {}]   ;;  %s4430_s1 = inlined_call_operand.vmem [shape: bf16[9,32], index: 1, kind: input, shape index: {}]   ;;  %s4431_s2 = inlined_call_operand.vmem [shape: f32[1,32], index: 2, kind: input, shape index: {}]   ;;  %s4432_s3 = inlined_call_operand.vmem [shape: bf16[392,32], index: 3, kind: output, shape index: {}]  }
   0x1   :  { %s3523_s14 = smov 0  }
   0x2 LB: > { %s3535_s15 = sadd.s32 4294967295, %s3432_s14   ;;  %s3538_s16 = sadd.s32 1, %s3432_s14   ;;  %s3432_s14 = sphi %s3523_s14, %s4524_s14   ;;  %s3428_s13 = sphi %s3521_s13, %s4523_s13   ;;  %s3424_s12 = sphi %s3519_s12, %s4522_s12  }
   0x3   : > { %s17_s17 = ssub.s32 %s3432_s14, %s3538_s16  ;;  %s20_s18 = sadd.s32 1, %s3428_s13 }
   0x4   : > { %p18_p0 = scmp.eq.s32.totalorder %s17_s17, 0  ;;  %p27_p1 = scmp.ne.s32.totalorder %s3428_s13, %s3424_s12 }
   0x5   : > { %p28_p2 = scmp.eq.s32.totalorder %s3432_s14, 0  ;;  %p99_p3 = scmp.eq.s32.totalorder %s3535_s15, 1 }
   0x6   : > { %s3548_s19 = scalar_select %p18_p0, %s3428_s13, %s20_s18  }
   0x7   : > { %p29_p4 = por %p28_p2, %p27_p1  ;;  %p3550_p5 = por %p99_p3, %p27_p1 }
   0x8   : > { %p2592_p6 = scmp.ge.s32.totalorder %s3432_s14, 2 }
   0xa   : > { %127 = sbr.rel (%p2592_p6) target bundleno = 119 (0x77), region = 24 }
  0x11   : > { %130 = sbr.rel (!%p29_p4) target bundleno = 119 (0x77), region = 28  ;;  %s132_s21 = sand.u32 (%p29_p4), 1, %s3428_s13  }
  0x12   : > { %s2594_s22 = sshll.u32 (%p29_p4), %s3432_s14, 5  ;;  %s2593_s23 = sshll.u32 (%p29_p4), %s132_s21, 9 }
  0x13   : > { %s136_s24 = ssub.s32 (%p29_p4), 49, %s2594_s22  ;;  %s2886_s25 = sshll.u32 (%p29_p4), %s3432_s14, 7 }
  0x14   : > { %p137_p7 = scmp.lt.s32.totalorder (%p29_p4), %s136_s24, 32  ;;  %s3563_s28 = scalar_lea.vmem (%p29_p4), %s4429_s0, %s2886_s25  }
  0x15   : > { %s3566_s30 = scalar_lea.vmem (%p29_p4), [#allocation2], %s2593_s23  }
  0x18   : > { %s4526_s24 = smov (!%p137_p7, %s136_s24), 32 }
  0x19   : > { %s2595_s29 = sshll.u32 %s4526_s24, 8 }
  0x1a   : > { %p2598_p8 = scmp.eq.s32.totalorder %s2595_s29, 0 }
  0x1b   : > { %s3569_s4 = sshrl.u32 (!%p2598_p8), %s4526_s24, 4 }
  0x1c   : > { %145 = sbr.rel (%p2598_p8) target bundleno = 119 (0x77), region = 32  ;;  %p2599_p9 = scmp.le.s32.totalorder (!%p2598_p8), %s3569_s4, 0 }
  0x23   : > { %2518 = sbr.rel (%p2599_p9) target bundleno = 94 (0x5e), region = 196  ;;  %s4450_s5 = smov (!%p2599_p9), %s3566_s30 }
  0x24   : > { %s4451_s6 = smov (!%p2599_p9), %s3563_s28  ;;  %s3578_s7 = smov (!%p2599_p9), 0  }
  0x25   : > { %s3580_s8 = smov (!%p2599_p9), 0  }
  0x2a LB: >> { %v161_v0 = vld [vmem:[%s3440_s6] sm:$0xf]  ;;  %v163_v1 = vld [vmem:[%s3440_s6 + $0x4] sm:$0xf]  ;;  %v165_v2 = vld [vmem:[%s3440_s6 + $0x8] sm:$0xf]  ;;  %s3448_s8 = sphi %s3580_s8, %s155_s8   ;;  %s3444_s7 = sphi %s3578_s7, %s4452_s7   ;;  %s3440_s6 = sphi %s4451_s6, %s294_s6   ;;  %s3436_s5 = sphi %s4450_s5, %s295_s5  }
  0x2b   : >> { %162 = vst [vmem:[%s3436_s5] sm:$0xf] %v161_v0  ;;  %164 = vst [vmem:[%s3436_s5 + $0x4] sm:$0xf] %v163_v1  ;;  %v167_v3 = vld [vmem:[%s3440_s6 + $0xc] sm:$0xf]  ;;  %s289_s9 = sadd.s32 1, %s3444_s7 }
  0x2c   : >> { %166 = vst [vmem:[%s3436_s5 + $0x8] sm:$0xf] %v165_v2  ;;  %v169_v4 = vld [vmem:[%s3440_s6 + $0x10] sm:$0xf]  ;;  %v171_v5 = vld [vmem:[%s3440_s6 + $0x14] sm:$0xf]  ;;  %p290_p10 = scmp.ge.s32.totalorder %s289_s9, %s3569_s4 }
  0x2d   : >> { %168 = vst [vmem:[%s3436_s5 + $0xc] sm:$0xf] %v167_v3  ;;  %170 = vst [vmem:[%s3436_s5 + $0x10] sm:$0xf] %v169_v4  ;;  %v173_v6 = vld [vmem:[%s3440_s6 + $0x18] sm:$0xf] }
  0x2e   : >> { %172 = vst [vmem:[%s3436_s5 + $0x14] sm:$0xf] %v171_v5  ;;  %v175_v7 = vld [vmem:[%s3440_s6 + $0x1c] sm:$0xf]  ;;  %v177_v8 = vld [vmem:[%s3440_s6 + $0x20] sm:$0xf] }
  0x2f   : >> { %174 = vst [vmem:[%s3436_s5 + $0x18] sm:$0xf] %v173_v6  ;;  %176 = vst [vmem:[%s3436_s5 + $0x1c] sm:$0xf] %v175_v7  ;;  %v179_v9 = vld [vmem:[%s3440_s6 + $0x24] sm:$0xf] }
  0x30   : >> { %178 = vst [vmem:[%s3436_s5 + $0x20] sm:$0xf] %v177_v8  ;;  %v181_v10 = vld [vmem:[%s3440_s6 + $0x28] sm:$0xf]  ;;  %v183_v11 = vld [vmem:[%s3440_s6 + $0x2c] sm:$0xf] }
  0x31   : >> { %180 = vst [vmem:[%s3436_s5 + $0x24] sm:$0xf] %v179_v9  ;;  %182 = vst [vmem:[%s3436_s5 + $0x28] sm:$0xf] %v181_v10  ;;  %v185_v12 = vld [vmem:[%s3440_s6 + $0x30] sm:$0xf] }
  0x32   : >> { %184 = vst [vmem:[%s3436_s5 + $0x2c] sm:$0xf] %v183_v11  ;;  %v187_v13 = vld [vmem:[%s3440_s6 + $0x34] sm:$0xf]  ;;  %v189_v14 = vld [vmem:[%s3440_s6 + $0x38] sm:$0xf] }
  0x33   : >> { %186 = vst [vmem:[%s3436_s5 + $0x30] sm:$0xf] %v185_v12  ;;  %188 = vst [vmem:[%s3436_s5 + $0x34] sm:$0xf] %v187_v13  ;;  %v191_v15 = vld [vmem:[%s3440_s6 + $0x3c] sm:$0xf] }
  0x34   : >> { %190 = vst [vmem:[%s3436_s5 + $0x38] sm:$0xf] %v189_v14  ;;  %v193_v16 = vld [vmem:[%s3440_s6 + $0xc4] sm:$0xf]  ;;  %v195_v17 = vld [vmem:[%s3440_s6 + $0xc8] sm:$0xf] }
  0x35   : >> { %192 = vst [vmem:[%s3436_s5 + $0x3c] sm:$0xf] %v191_v15  ;;  %194 = vst [vmem:[%s3436_s5 + $0x80] sm:$0xf] %v193_v16  ;;  %v197_v18 = vld [vmem:[%s3440_s6 + $0xcc] sm:$0xf] }
  0x36   : >> { %196 = vst [vmem:[%s3436_s5 + $0x84] sm:$0xf] %v195_v17  ;;  %v199_v19 = vld [vmem:[%s3440_s6 + $0xd0] sm:$0xf]  ;;  %v201_v20 = vld [vmem:[%s3440_s6 + $0xd4] sm:$0xf] }
  0x37   : >> { %198 = vst [vmem:[%s3436_s5 + $0x88] sm:$0xf] %v197_v18  ;;  %200 = vst [vmem:[%s3436_s5 + $0x8c] sm:$0xf] %v199_v19  ;;  %v203_v21 = vld [vmem:[%s3440_s6 + $0xd8] sm:$0xf] }
  0x38   : >> { %202 = vst [vmem:[%s3436_s5 + $0x90] sm:$0xf] %v201_v20  ;;  %v205_v22 = vld [vmem:[%s3440_s6 + $0xdc] sm:$0xf]  ;;  %v207_v23 = vld [vmem:[%s3440_s6 + $0xe0] sm:$0xf] }
  0x39   : >> { %204 = vst [vmem:[%s3436_s5 + $0x94] sm:$0xf] %v203_v21  ;;  %206 = vst [vmem:[%s3436_s5 + $0x98] sm:$0xf] %v205_v22  ;;  %v209_v24 = vld [vmem:[%s3440_s6 + $0xe4] sm:$0xf] }
  0x3a   : >> { %208 = vst [vmem:[%s3436_s5 + $0x9c] sm:$0xf] %v207_v23  ;;  %v211_v25 = vld [vmem:[%s3440_s6 + $0xe8] sm:$0xf]  ;;  %v213_v26 = vld [vmem:[%s3440_s6 + $0xec] sm:$0xf] }
  0x3b   : >> { %210 = vst [vmem:[%s3436_s5 + $0xa0] sm:$0xf] %v209_v24  ;;  %212 = vst [vmem:[%s3436_s5 + $0xa4] sm:$0xf] %v211_v25  ;;  %v215_v27 = vld [vmem:[%s3440_s6 + $0xf0] sm:$0xf] }
  0x3c   : >> { %214 = vst [vmem:[%s3436_s5 + $0xa8] sm:$0xf] %v213_v26  ;;  %v217_v28 = vld [vmem:[%s3440_s6 + $0xf4] sm:$0xf]  ;;  %v219_v29 = vld [vmem:[%s3440_s6 + $0xf8] sm:$0xf] }
  0x3d   : >> { %216 = vst [vmem:[%s3436_s5 + $0xac] sm:$0xf] %v215_v27  ;;  %218 = vst [vmem:[%s3436_s5 + $0xb0] sm:$0xf] %v217_v28  ;;  %v221_v30 = vld [vmem:[%s3440_s6 + $0xfc] sm:$0xf] }
  0x3e   : >> { %220 = vst [vmem:[%s3436_s5 + $0xb4] sm:$0xf] %v219_v29  ;;  %v223_v31 = vld [vmem:[%s3440_s6 + $0x100] sm:$0xf]  ;;  %v225_v32 = vld [vmem:[%s3440_s6 + $0x188] sm:$0xf] }
  0x3f   : >> { %222 = vst [vmem:[%s3436_s5 + $0xb8] sm:$0xf] %v221_v30  ;;  %224 = vst [vmem:[%s3436_s5 + $0xbc] sm:$0xf] %v223_v31  ;;  %v227_v33 = vld [vmem:[%s3440_s6 + $0x18c] sm:$0xf] }
  0x40   : >> { %226 = vst [vmem:[%s3436_s5 + $0x100] sm:$0xf] %v225_v32  ;;  %v229_v34 = vld [vmem:[%s3440_s6 + $0x190] sm:$0xf]  ;;  %v231_v35 = vld [vmem:[%s3440_s6 + $0x194] sm:$0xf] }
  0x41   : >> { %228 = vst [vmem:[%s3436_s5 + $0x104] sm:$0xf] %v227_v33  ;;  %230 = vst [vmem:[%s3436_s5 + $0x108] sm:$0xf] %v229_v34  ;;  %v233_v36 = vld [vmem:[%s3440_s6 + $0x198] sm:$0xf] }
  0x42   : >> { %232 = vst [vmem:[%s3436_s5 + $0x10c] sm:$0xf] %v231_v35  ;;  %v235_v37 = vld [vmem:[%s3440_s6 + $0x19c] sm:$0xf]  ;;  %v237_v38 = vld [vmem:[%s3440_s6 + $0x1a0] sm:$0xf] }
  0x43   : >> { %234 = vst [vmem:[%s3436_s5 + $0x110] sm:$0xf] %v233_v36  ;;  %236 = vst [vmem:[%s3436_s5 + $0x114] sm:$0xf] %v235_v37  ;;  %v239_v39 = vld [vmem:[%s3440_s6 + $0x1a4] sm:$0xf] }
  0x44   : >> { %238 = vst [vmem:[%s3436_s5 + $0x118] sm:$0xf] %v237_v38  ;;  %v241_v40 = vld [vmem:[%s3440_s6 + $0x1a8] sm:$0xf]  ;;  %v243_v41 = vld [vmem:[%s3440_s6 + $0x1ac] sm:$0xf] }
  0x45   : >> { %240 = vst [vmem:[%s3436_s5 + $0x11c] sm:$0xf] %v239_v39  ;;  %242 = vst [vmem:[%s3436_s5 + $0x120] sm:$0xf] %v241_v40  ;;  %v245_v42 = vld [vmem:[%s3440_s6 + $0x1b0] sm:$0xf] }
  0x46   : >> { %244 = vst [vmem:[%s3436_s5 + $0x124] sm:$0xf] %v243_v41  ;;  %v247_v43 = vld [vmem:[%s3440_s6 + $0x1b4] sm:$0xf]  ;;  %v249_v44 = vld [vmem:[%s3440_s6 + $0x1b8] sm:$0xf] }
  0x47   : >> { %246 = vst [vmem:[%s3436_s5 + $0x128] sm:$0xf] %v245_v42  ;;  %248 = vst [vmem:[%s3436_s5 + $0x12c] sm:$0xf] %v247_v43  ;;  %v251_v45 = vld [vmem:[%s3440_s6 + $0x1bc] sm:$0xf] }
  0x48   : >> { %250 = vst [vmem:[%s3436_s5 + $0x130] sm:$0xf] %v249_v44  ;;  %v253_v46 = vld [vmem:[%s3440_s6 + $0x1c0] sm:$0xf]  ;;  %v255_v47 = vld [vmem:[%s3440_s6 + $0x1c4] sm:$0xf] }
  0x49   : >> { %252 = vst [vmem:[%s3436_s5 + $0x134] sm:$0xf] %v251_v45  ;;  %254 = vst [vmem:[%s3436_s5 + $0x138] sm:$0xf] %v253_v46  ;;  %v257_v48 = vld [vmem:[%s3440_s6 + $0x24c] sm:$0xf] }
  0x4a   : >> { %256 = vst [vmem:[%s3436_s5 + $0x13c] sm:$0xf] %v255_v47  ;;  %v259_v49 = vld [vmem:[%s3440_s6 + $0x250] sm:$0xf]  ;;  %v261_v50 = vld [vmem:[%s3440_s6 + $0x254] sm:$0xf] }
  0x4b   : >> { %258 = vst [vmem:[%s3436_s5 + $0x180] sm:$0xf] %v257_v48  ;;  %260 = vst [vmem:[%s3436_s5 + $0x184] sm:$0xf] %v259_v49  ;;  %v263_v51 = vld [vmem:[%s3440_s6 + $0x258] sm:$0xf] }
  0x4c   : >> { %262 = vst [vmem:[%s3436_s5 + $0x188] sm:$0xf] %v261_v50  ;;  %v265_v52 = vld [vmem:[%s3440_s6 + $0x25c] sm:$0xf]  ;;  %v267_v53 = vld [vmem:[%s3440_s6 + $0x260] sm:$0xf] }
  0x4d   : >> { %264 = vst [vmem:[%s3436_s5 + $0x18c] sm:$0xf] %v263_v51  ;;  %266 = vst [vmem:[%s3436_s5 + $0x190] sm:$0xf] %v265_v52  ;;  %v269_v54 = vld [vmem:[%s3440_s6 + $0x264] sm:$0xf] }
  0x4e   : >> { %268 = vst [vmem:[%s3436_s5 + $0x194] sm:$0xf] %v267_v53  ;;  %v271_v55 = vld [vmem:[%s3440_s6 + $0x268] sm:$0xf]  ;;  %v273_v56 = vld [vmem:[%s3440_s6 + $0x26c] sm:$0xf] }
  0x4f   : >> { %270 = vst [vmem:[%s3436_s5 + $0x198] sm:$0xf] %v269_v54  ;;  %272 = vst [vmem:[%s3436_s5 + $0x19c] sm:$0xf] %v271_v55  ;;  %v275_v57 = vld [vmem:[%s3440_s6 + $0x270] sm:$0xf] }
  0x50   : >> { %274 = vst [vmem:[%s3436_s5 + $0x1a0] sm:$0xf] %v273_v56  ;;  %v277_v58 = vld [vmem:[%s3440_s6 + $0x274] sm:$0xf]  ;;  %v279_v59 = vld [vmem:[%s3440_s6 + $0x278] sm:$0xf] }
  0x51   : >> { %276 = vst [vmem:[%s3436_s5 + $0x1a4] sm:$0xf] %v275_v57  ;;  %278 = vst [vmem:[%s3436_s5 + $0x1a8] sm:$0xf] %v277_v58  ;;  %v281_v60 = vld [vmem:[%s3440_s6 + $0x27c] sm:$0xf] }
  0x52   : >> { %280 = vst [vmem:[%s3436_s5 + $0x1ac] sm:$0xf] %v279_v59  ;;  %v283_v61 = vld [vmem:[%s3440_s6 + $0x280] sm:$0xf]  ;;  %v285_v62 = vld [vmem:[%s3440_s6 + $0x284] sm:$0xf] }
  0x53   : >> { %282 = vst [vmem:[%s3436_s5 + $0x1b0] sm:$0xf] %v281_v60  ;;  %284 = vst [vmem:[%s3436_s5 + $0x1b4] sm:$0xf] %v283_v61  ;;  %v287_v63 = vld [vmem:[%s3440_s6 + $0x288] sm:$0xf] }
  0x54   : >> { %286 = vst [vmem:[%s3436_s5 + $0x1b8] sm:$0xf] %v285_v62  ;;  %288 = vst [vmem:[%s3436_s5 + $0x1bc] sm:$0xf] %v287_v63  ;;  %s4528_s9 = smov (%p290_p10, %s289_s9), 0  ;;  %s155_s8 = sadd.s32 1, %s3448_s8  }
  0x55   : >> { %s2600_s10 = sshll.u32 %s4528_s9, 6  ;;  %p154_p11 = scmp.ge.s32.totalorder %s155_s8, %s3569_s4 }
  0x56   : >> { %s294_s6 = scalar_lea.vmem %s3563_s28, %s2600_s10   ;;  %s295_s5 = scalar_lea.vmem %s3566_s30, %s2600_s10 [#allocation2]  }
  0x57   : >> { %s4452_s7 = smov %s4528_s9  ;;  %157 = sbr.rel (!%p154_p11) target bundleno = 42 (0x2a), region = 202 }
  0x5e PF: > { %s3737_s11 = sand.u32 15, %s4526_s24   ;;  %s2887_s17 = sshll.u32 %s3569_s4, 6 }
  0x5f   : > { %s3741_s18 = scalar_lea.vmem %s3563_s28, %s2887_s17   ;;  %s3744_s21 = scalar_lea.vmem %s3566_s30, %s2887_s17 [#allocation2]  }
  0x60   : > { %p2605_p12 = scmp.le.s32.totalorder %s3737_s11, 0 }
  0x61   : > { %s4453_s22 = smov (!%p2605_p12), %s3744_s21  ;;  %s4454_s23 = smov (!%p2605_p12), %s3741_s18 }
  0x62   : > { %2532 = sbr.rel (%p2605_p12) target bundleno = 119 (0x77), region = 207  ;;  %s3458_s25 = smov (!%p2605_p12), 0  }
  0x63   : > { %s3462_s26 = smov (!%p2605_p12), 0  }
  0x69 LB: >> { %v312_v0 = vld [vmem:[%s3456_s23] sm:$0xf]  ;;  %v314_v1 = vld [vmem:[%s3456_s23 + $0xc4] sm:$0xf]  ;;  %v316_v2 = vld [vmem:[%s3456_s23 + $0x188] sm:$0xf]  ;;  %s3464_s26 = sphi %s3462_s26, %s306_s26   ;;  %s3460_s25 = sphi %s3458_s25, %s3459_s25   ;;  %s3456_s23 = sphi %s4454_s23, %s325_s23   ;;  %s3452_s22 = sphi %s4453_s22, %s326_s22  }
  0x6a   : >> { %313 = vst [vmem:[%s3452_s22] sm:$0xf] %v312_v0  ;;  %315 = vst [vmem:[%s3452_s22 + $0x80] sm:$0xf] %v314_v1  ;;  %v318_v3 = vld [vmem:[%s3456_s23 + $0x24c] sm:$0xf]  ;;  %s320_s24 = sadd.s32 1, %s3460_s25 }
  0x6b   : >> { %317 = vst [vmem:[%s3452_s22 + $0x100] sm:$0xf] %v316_v2  ;;  %319 = vst [vmem:[%s3452_s22 + $0x180] sm:$0xf] %v318_v3  ;;  %p321_p13 = scmp.ge.s32.totalorder %s320_s24, %s3737_s11  ;;  %s306_s26 = sadd.s32 1, %s3464_s26  }
  0x6c   : >> { %p305_p0 = scmp.ge.s32.totalorder %s306_s26, %s3737_s11 }
  0x6d   : >> { %s4530_s24 = smov (%p321_p13, %s320_s24), 0 }
  0x6e   : >> { %s2606_s27 = sshll.u32 %s4530_s24, 2  ;;  %s3459_s25 = smov %s4530_s24  }
  0x6f   : >> { %s325_s23 = scalar_lea.vmem %s3741_s18, %s2606_s27   ;;  %s326_s22 = scalar_lea.vmem %s3744_s21, %s2606_s27 [#allocation2]  }
  0x70   : > { %308 = sbr.rel (!%p305_p0) target bundleno = 105 (0x69), region = 213 }
  0x77 PF: > { %p2608_p1 = scmp.ge.s32.totalorder %s3432_s14, 1  ;;  %p548_p2 = scmp.lt.s32.totalorder %s3432_s14, 3 }
  0x79   : > { %p549_p3 = pnand %p2608_p1, %p548_p2 }
  0x7b   : > { %552 = sbr.rel (%p549_p3) target bundleno = 553 (0x229), region = 90 }
  0x82   : > { %v3281_v4 = vld [vmem:[%s4430_s1] sm:$0x1f]   ;;  %vm756_vm0 = vcmask 1043456   ;;  %vm757_vm1 = vcmask 1044480   ;;  %s555_s30 = sand.u32 1, %s3424_s12   ;;  %v3498_v5 = vmov 65535  }
  0x83   : > { %v758_v6 = vsel %vm756_vm0, 4294967295, %v3498_v5  ;;  %s2609_s4 = sshll.u32 %s555_s30, 9  ;;  %vm707_vm2 = vcmask 72704   ;;  %s2610_s7 = sshll.u32 %s555_s30, 7  ;;  %vm2153_vm3 = vcmask 257024  }
  0x84   : > { %v759_v7 = vsel %vm757_vm1, %v758_v6, 0  ;;  %s3771_s5 = scalar_lea.vmem [#allocation2], %s2609_s4  ;;  %s4116_s12 = scalar_lea.vmem [#allocation3], %s2610_s7  }
  0x85   : > { %v761_v8 = vand.u32 %v3281_v4, %v759_v7  ;;  %v3282_v9 = vld [vmem:[%s3771_s5] sm:$0xff]   ;;  %v3284_v11 = vld [vmem:[%s3771_s5 + $0x8] sm:$0xff]   ;;  %v3286_v13 = vld [vmem:[%s3771_s5 + $0x10] sm:$0xff]   ;;  %s2870_s8 = sshll.u32 (%p3550_p5), %s3535_s15, 5  ;;  %s2921_s9 = sshll.u32 (%p3550_p5), %s3535_s15, 7 }
  0x86   : > { %v3283_v10 = vld [vmem:[%s3771_s5 + $0x80] sm:$0xff]   ;;  %v3285_v12 = vld [vmem:[%s3771_s5 + $0x88] sm:$0xff]   ;;  %2994 = vmatprep.mubr.msk.bf16.mxu0 %vm707_vm2, %v3282_v9  ;;  %v3287_v14 = vld [vmem:[%s3771_s5 + $0x90] sm:$0xff]   ;;  %s2194_s10 = ssub.s32 (%p3550_p5), 49, %s2870_s8  ;;  %s4301_s18 = scalar_lea.vmem (%p3550_p5), %s4432_s3, %s2921_s9  }
  0x87   : > { %2992 = vmatprep.subr.bf16.mxu0 %v761_v8  ;;  %3026 = vmatprep.subr.bf16.mxu1 %v761_v8  ;;  %v3288_v15 = vld [vmem:[%s3771_s5 + $0x18] sm:$0xff]   ;;  %v3290_v17 = vld [vmem:[%s3771_s5 + $0x20] sm:$0xff]   ;;  %v3292_v19 = vld [vmem:[%s3771_s5 + $0x28] sm:$0xff]   ;;  %p2195_p4 = scmp.lt.s32.totalorder (%p3550_p5), %s2194_s10, 32 }
  0x88   : > { %2993 = vmatpush3.bf16.msra.mxu0 %v761_v8  ;;  %3027 = vmatpush3.bf16.msra.mxu1 %v761_v8  ;;  %v3289_v16 = vld [vmem:[%s3771_s5 + $0x98] sm:$0xff]   ;;  %v3291_v18 = vld [vmem:[%s3771_s5 + $0xa0] sm:$0xff]   ;;  %v3293_v20 = vld [vmem:[%s3771_s5 + $0xa8] sm:$0xff]  }
  0x89   : > { %3028 = vmatprep.mubr.msk.bf16.mxu1 %vm707_vm2, %v3283_v10  ;;  %3060 = vmatprep.subr.bf16.mxu0 %v761_v8  ;;  %v3294_v21 = vld [vmem:[%s3771_s5 + $0x30] sm:$0xff]   ;;  %v3296_v23 = vld [vmem:[%s3771_s5 + $0x38] sm:$0xff]   ;;  %v3298_v25 = vld [vmem:[%s3771_s5 + $0x40] sm:$0xff]  }
  0x8a   : > { %3094 = vmatprep.subr.bf16.mxu1 %v761_v8  ;;  %v3295_v22 = vld [vmem:[%s3771_s5 + $0xb0] sm:$0xff]   ;;  %v3297_v24 = vld [vmem:[%s3771_s5 + $0xb8] sm:$0xff]   ;;  %v3299_v26 = vld [vmem:[%s3771_s5 + $0xc0] sm:$0xff]  }
  0x8b   : > { %2995 = vmatmul.mubr.msk.bf16.vlgmr.msra.gmra.mrb[0].mxu0 %vm707_vm2, %v3284_v11  ;;  %3029 = vmatmul.mubr.msk.bf16.vlgmr.msra.gmra.mrb[0].mxu1 %vm707_vm2, %v3285_v12  ;;  %v3300_v27 = vld [vmem:[%s3771_s5 + $0x48] sm:$0xff]   ;;  %v3302_v29 = vld [vmem:[%s3771_s5 + $0x50] sm:$0xff]   ;;  %v3304_v31 = vld [vmem:[%s3771_s5 + $0x58] sm:$0xff]  }
  0x8c   : > { %3061 = vmatpush3.bf16.msra.mxu0 %v761_v8  ;;  %3095 = vmatpush3.bf16.msra.mxu1 %v761_v8  ;;  %v3301_v28 = vld [vmem:[%s3771_s5 + $0xc8] sm:$0xff]   ;;  %v3303_v30 = vld [vmem:[%s3771_s5 + $0xd0] sm:$0xff]   ;;  %v3305_v32 = vld [vmem:[%s3771_s5 + $0xd8] sm:$0xff]  }
  0x8d   : > { %2998 = vmatprep.mubr.msk.bf16.mxu0 %vm707_vm2, %v3286_v13  ;;  %3032 = vmatprep.mubr.msk.bf16.mxu1 %vm707_vm2, %v3287_v14  ;;  %v3306_v33 = vld [vmem:[%s3771_s5 + $0x60] sm:$0xff]   ;;  %v3308_v35 = vld [vmem:[%s3771_s5 + $0x68] sm:$0xff]   ;;  %v3310_v37 = vld [vmem:[%s3771_s5 + $0x70] sm:$0xff]  }
  0x8e   : > { %v3307_v34 = vld [vmem:[%s3771_s5 + $0xe0] sm:$0xff]   ;;  %v3309_v36 = vld [vmem:[%s3771_s5 + $0xe8] sm:$0xff]   ;;  %v3311_v38 = vld [vmem:[%s3771_s5 + $0xf0] sm:$0xff]  }
  0x8f   : > { %v3312_v39 = vld [vmem:[%s3771_s5 + $0x78] sm:$0xff]   ;;  %v3314_v41 = vld [vmem:[%s3771_s5 + $0x100] sm:$0xff]   ;;  %v3316_v43 = vld [vmem:[%s3771_s5 + $0x108] sm:$0xff]  }
  0x90   : > { %v3313_v40 = vld [vmem:[%s3771_s5 + $0xf8] sm:$0xff]   ;;  %v3315_v42 = vld [vmem:[%s3771_s5 + $0x180] sm:$0xff]   ;;  %v3317_v44 = vld [vmem:[%s3771_s5 + $0x188] sm:$0xff]  }
  0x91   : > { %v3318_v45 = vld [vmem:[%s3771_s5 + $0x110] sm:$0xff]   ;;  %v3320_v47 = vld [vmem:[%s3771_s5 + $0x118] sm:$0xff]   ;;  %v3322_v49 = vld [vmem:[%s3771_s5 + $0x120] sm:$0xff]  }
  0x92   : > { %v3319_v46 = vld [vmem:[%s3771_s5 + $0x190] sm:$0xff]   ;;  %v3321_v48 = vld [vmem:[%s3771_s5 + $0x198] sm:$0xff]   ;;  %v3323_v50 = vld [vmem:[%s3771_s5 + $0x1a0] sm:$0xff]  }
  0x93   : > { %2999 = vmatmul.mubr.msk.bf16.gmra.mrb[4].mxu0 %vm707_vm2, %v3288_v15  ;;  %3033 = vmatmul.mubr.msk.bf16.gmra.mrb[4].mxu1 %vm707_vm2, %v3289_v16  ;;  %v3324_v51 = vld [vmem:[%s3771_s5 + $0x128] sm:$0xff]   ;;  %v3326_v53 = vld [vmem:[%s3771_s5 + $0x130] sm:$0xff]   ;;  %v3328_v55 = vld [vmem:[%s3771_s5 + $0x138] sm:$0xff]  }
  0x94   : > { %3002 = vmatprep.mubr.msk.bf16.mxu0 %vm707_vm2, %v3290_v17  ;;  %3036 = vmatprep.mubr.msk.bf16.mxu1 %vm707_vm2, %v3291_v18  ;;  %v3325_v52 = vld [vmem:[%s3771_s5 + $0x1a8] sm:$0xff]   ;;  %v3327_v54 = vld [vmem:[%s3771_s5 + $0x1b0] sm:$0xff]   ;;  %v3329_v56 = vld [vmem:[%s3771_s5 + $0x1b8] sm:$0xff]  }
  0x95   : > { %v3330_v57 = vld [vmem:[%s3771_s5 + $0x140] sm:$0xff]   ;;  %v3332_v59 = vld [vmem:[%s3771_s5 + $0x148] sm:$0xff]   ;;  %v3334_v61 = vld [vmem:[%s3771_s5 + $0x150] sm:$0xff]  }
  0x96   : > { %v3331_v58 = vld [vmem:[%s3771_s5 + $0x1c0] sm:$0xff]   ;;  %v3333_v60 = vld [vmem:[%s3771_s5 + $0x1c8] sm:$0xff]   ;;  %v3335_v62 = vld [vmem:[%s3771_s5 + $0x1d0] sm:$0xff]  }
  0x97   : > { %v3336_v63 = vld [vmem:[%s3771_s5 + $0x158] sm:$0xff]   ;;  %v3338_v1 = vld [vmem:[%s3771_s5 + $0x160] sm:$0xff]   ;;  %v3340_v3 = vld [vmem:[%s3771_s5 + $0x168] sm:$0xff]  }
  0x98   : > { %v3337_v0 = vld [vmem:[%s3771_s5 + $0x1d8] sm:$0xff]   ;;  %v3339_v2 = vld [vmem:[%s3771_s5 + $0x1e0] sm:$0xff]   ;;  %v3341_v4 = vld [vmem:[%s3771_s5 + $0x1e8] sm:$0xff]  }
  0x99   : > { %v3342_v5 = vld [vmem:[%s3771_s5 + $0x170] sm:$0xff]   ;;  %v3344_v7 = vld [vmem:[%s3771_s5 + $0x178] sm:$0xff]  }
  0x9a   : > { %v3343_v6 = vld [vmem:[%s3771_s5 + $0x1f0] sm:$0xff]   ;;  %v3345_v8 = vld [vmem:[%s3771_s5 + $0x1f8] sm:$0xff]  }
  0x9b   : > { %3003 = vmatmul.mubr.msk.bf16.gmra.mrb[8].mxu0 %vm707_vm2, %v3292_v19  ;;  %3037 = vmatmul.mubr.msk.bf16.gmra.mrb[8].mxu1 %vm707_vm2, %v3293_v20 }
  0x9c   : > { %3006 = vmatprep.mubr.msk.bf16.mxu0 %vm707_vm2, %v3294_v21  ;;  %3040 = vmatprep.mubr.msk.bf16.mxu1 %vm707_vm2, %v3295_v22 }
  0xa3   : > { %3007 = vmatmul.mubr.msk.bf16.gmra.mrb[12].mxu0 %vm707_vm2, %v3296_v23  ;;  %3041 = vmatmul.mubr.msk.bf16.gmra.mrb[12].mxu1 %vm707_vm2, %v3297_v24 }
  0xa4   : > { %3010 = vmatprep.mubr.msk.bf16.mxu0 %vm707_vm2, %v3298_v25  ;;  %3044 = vmatprep.mubr.msk.bf16.mxu1 %vm707_vm2, %v3299_v26 }
  0xab   : > { %3011 = vmatmul.mubr.msk.bf16.gmra.mrb[16].mxu0 %vm707_vm2, %v3300_v27  ;;  %3045 = vmatmul.mubr.msk.bf16.gmra.mrb[16].mxu1 %vm707_vm2, %v3301_v28 }
  0xac   : > { %3014 = vmatprep.mubr.msk.bf16.mxu0 %vm707_vm2, %v3302_v29  ;;  %3048 = vmatprep.mubr.msk.bf16.mxu1 %vm707_vm2, %v3303_v30 }
  0xb3   : > { %3015 = vmatmul.mubr.msk.bf16.gmra.mrb[20].mxu0 %vm707_vm2, %v3304_v31  ;;  %3049 = vmatmul.mubr.msk.bf16.gmra.mrb[20].mxu1 %vm707_vm2, %v3305_v32 }
  0xb4   : > { %3018 = vmatprep.mubr.msk.bf16.mxu0 %vm707_vm2, %v3306_v33  ;;  %3052 = vmatprep.mubr.msk.bf16.mxu1 %vm707_vm2, %v3307_v34 }
  0xbb   : > { %3019 = vmatmul.mubr.msk.bf16.gmra.mrb[24].mxu0 %vm707_vm2, %v3308_v35  ;;  %3053 = vmatmul.mubr.msk.bf16.gmra.mrb[24].mxu1 %vm707_vm2, %v3309_v36 }
  0xbc   : > { %3022 = vmatprep.mubr.msk.bf16.mxu0 %vm707_vm2, %v3310_v37  ;;  %3056 = vmatprep.mubr.msk.bf16.mxu1 %vm707_vm2, %v3311_v38 }
  0xc3   : > { %3023 = vmatmul.mubr.msk.bf16.gmra.mrb[28].mxu0 %vm707_vm2, %v3312_v39  ;;  %3057 = vmatmul.mubr.msk.bf16.gmra.mrb[28].mxu1 %vm707_vm2, %v3313_v40 }
  0xc4   : > { %3062 = vmatprep.mubr.msk.bf16.mxu0 %vm707_vm2, %v3314_v41  ;;  %3096 = vmatprep.mubr.msk.bf16.mxu1 %vm707_vm2, %v3315_v42 }
  0xcb   : > { %3063 = vmatmul.mubr.msk.bf16.vlgmr.msra.gmra.mrb[32].mxu0 %vm707_vm2, %v3316_v43  ;;  %3097 = vmatmul.mubr.msk.bf16.vlgmr.msra.gmra.mrb[32].mxu1 %vm707_vm2, %v3317_v44 }
  0xcc   : > { %3066 = vmatprep.mubr.msk.bf16.mxu0 %vm707_vm2, %v3318_v45  ;;  %3100 = vmatprep.mubr.msk.bf16.mxu1 %vm707_vm2, %v3319_v46 }
  0xd3   : > { %3067 = vmatmul.mubr.msk.bf16.gmra.mrb[36].mxu0 %vm707_vm2, %v3320_v47  ;;  %3101 = vmatmul.mubr.msk.bf16.gmra.mrb[36].mxu1 %vm707_vm2, %v3321_v48 }
  0xd4   : > { %3070 = vmatprep.mubr.msk.bf16.mxu0 %vm707_vm2, %v3322_v49  ;;  %3104 = vmatprep.mubr.msk.bf16.mxu1 %vm707_vm2, %v3323_v50 }
  0xdb   : > { %3071 = vmatmul.mubr.msk.bf16.gmra.mrb[40].mxu0 %vm707_vm2, %v3324_v51  ;;  %3105 = vmatmul.mubr.msk.bf16.gmra.mrb[40].mxu1 %vm707_vm2, %v3325_v52 }
  0xdc   : > { %3074 = vmatprep.mubr.msk.bf16.mxu0 %vm707_vm2, %v3326_v53  ;;  %3108 = vmatprep.mubr.msk.bf16.mxu1 %vm707_vm2, %v3327_v54 }
  0xe3   : > { %3075 = vmatmul.mubr.msk.bf16.gmra.mrb[44].mxu0 %vm707_vm2, %v3328_v55  ;;  %3109 = vmatmul.mubr.msk.bf16.gmra.mrb[44].mxu1 %vm707_vm2, %v3329_v56 }
  0xe4   : > { %3078 = vmatprep.mubr.msk.bf16.mxu0 %vm707_vm2, %v3330_v57  ;;  %3112 = vmatprep.mubr.msk.bf16.mxu1 %vm707_vm2, %v3331_v58 }
  0xeb   : > { %3079 = vmatmul.mubr.msk.bf16.gmra.mrb[48].mxu0 %vm707_vm2, %v3332_v59  ;;  %3113 = vmatmul.mubr.msk.bf16.gmra.mrb[48].mxu1 %vm707_vm2, %v3333_v60 }
  0xec   : > { %3082 = vmatprep.mubr.msk.bf16.mxu0 %vm707_vm2, %v3334_v61  ;;  %3116 = vmatprep.mubr.msk.bf16.mxu1 %vm707_vm2, %v3335_v62 }
  0xf3   : > { %3083 = vmatmul.mubr.msk.bf16.gmra.mrb[52].mxu0 %vm707_vm2, %v3336_v63  ;;  %3117 = vmatmul.mubr.msk.bf16.gmra.mrb[52].mxu1 %vm707_vm2, %v3337_v0 }
  0xf4   : > { %3086 = vmatprep.mubr.msk.bf16.mxu0 %vm707_vm2, %v3338_v1  ;;  %3120 = vmatprep.mubr.msk.bf16.mxu1 %vm707_vm2, %v3339_v2 }
  0xfb   : > { %3087 = vmatmul.mubr.msk.bf16.gmra.mrb[56].mxu0 %vm707_vm2, %v3340_v3  ;;  %3121 = vmatmul.mubr.msk.bf16.gmra.mrb[56].mxu1 %vm707_vm2, %v3341_v4 }
  0xfc   : > { %3090 = vmatprep.mubr.msk.bf16.mxu0 %vm707_vm2, %v3342_v5  ;;  %3124 = vmatprep.mubr.msk.bf16.mxu1 %vm707_vm2, %v3343_v6 }
 0x103   : > { %3091 = vmatmul.mubr.msk.bf16.gmra.mrb[60].mxu0 %vm707_vm2, %v3344_v7  ;;  %3125 = vmatmul.mubr.msk.bf16.gmra.mrb[60].mxu1 %vm707_vm2, %v3345_v8 }
 0x15e   : > { %v3901_v9 = vpop.f32.mrb[0].mxu0  ;;  %v3903_v10 = vpop.f32.mrb[0].mxu1 }
 0x15f   : > { %v3907_v12 = vpop.f32.mrb[1].mxu0  ;;  %v3909_v13 = vpop.f32.mrb[1].mxu1  ;;  %v4471_v7 = vmax.f32 %v3901_v9, %v3903_v10 }
 0x160   : > { %v3913_v15 = vpop.f32.mrb[2].mxu0  ;;  %v3915_v16 = vpop.f32.mrb[2].mxu1  ;;  %v4472_v1 = vmax.f32 %v3907_v12, %v3909_v13 }
 0x161   : > { %v3919_v18 = vpop.f32.mrb[3].mxu0  ;;  %v3921_v19 = vpop.f32.mrb[3].mxu1  ;;  %v4473_v9 = vmax.f32 %v3913_v15, %v3915_v16 }
 0x166   : > { %v3925_v21 = vpop.f32.mrb[4].mxu0  ;;  %v3927_v22 = vpop.f32.mrb[4].mxu1 }
 0x167   : > { %v3931_v24 = vpop.f32.mrb[5].mxu0  ;;  %v3933_v25 = vpop.f32.mrb[5].mxu1 }
 0x168   : > { %v3937_v27 = vpop.f32.mrb[6].mxu0  ;;  %v3939_v28 = vpop.f32.mrb[6].mxu1 }
 0x169   : > { %v3943_v30 = vpop.f32.mrb[7].mxu0  ;;  %v3945_v31 = vpop.f32.mrb[7].mxu1 }
 0x16e   : > { %v3949_v33 = vpop.f32.mrb[8].mxu0  ;;  %v3951_v34 = vpop.f32.mrb[8].mxu1 }
 0x16f   : > { %v3955_v36 = vpop.f32.mrb[9].mxu0  ;;  %v3957_v37 = vpop.f32.mrb[9].mxu1 }
 0x170   : > { %v3961_v39 = vpop.f32.mrb[10].mxu0  ;;  %v3963_v40 = vpop.f32.mrb[10].mxu1 }
 0x171   : > { %v3967_v42 = vpop.f32.mrb[11].mxu0  ;;  %v3969_v43 = vpop.f32.mrb[11].mxu1 }
 0x176   : > { %v3973_v45 = vpop.f32.mrb[12].mxu0  ;;  %v3975_v46 = vpop.f32.mrb[12].mxu1 }
 0x177   : > { %v3979_v48 = vpop.f32.mrb[13].mxu0  ;;  %v3981_v49 = vpop.f32.mrb[13].mxu1 }
 0x178   : > { %v3985_v51 = vpop.f32.mrb[14].mxu0  ;;  %v3987_v52 = vpop.f32.mrb[14].mxu1 }
 0x179   : > { %v3991_v54 = vpop.f32.mrb[15].mxu0  ;;  %v3993_v55 = vpop.f32.mrb[15].mxu1 }
 0x17e   : > { %v3997_v57 = vpop.f32.mrb[16].mxu0  ;;  %v3999_v58 = vpop.f32.mrb[16].mxu1 }
 0x17f   : > { %v4003_v60 = vpop.f32.mrb[17].mxu0  ;;  %v4005_v61 = vpop.f32.mrb[17].mxu1 }
 0x180   : > { %v4009_v63 = vpop.f32.mrb[18].mxu0  ;;  %v4011_v0 = vpop.f32.mrb[18].mxu1 }
 0x181   : > { %v4015_v2 = vpop.f32.mrb[19].mxu0  ;;  %v4017_v3 = vpop.f32.mrb[19].mxu1 }
 0x186   : > { %v4021_v5 = vpop.f32.mrb[20].mxu0  ;;  %v4023_v6 = vpop.f32.mrb[20].mxu1 }
 0x187   : > { %v4027_v8 = vpop.f32.mrb[21].mxu0  ;;  %v4029_v62 = vpop.f32.mrb[21].mxu1 }
 0x188   : > { %v4033_v59 = vpop.f32.mrb[22].mxu0  ;;  %v4035_v56 = vpop.f32.mrb[22].mxu1 }
 0x189   : > { %v4039_v53 = vpop.f32.mrb[23].mxu0  ;;  %v4041_v50 = vpop.f32.mrb[23].mxu1 }
 0x18e   : > { %v4045_v47 = vpop.f32.mrb[24].mxu0  ;;  %v4047_v44 = vpop.f32.mrb[24].mxu1 }
 0x18f   : > { %4455 = vst [vmem:[#allocation4_spill] sm:$0xff] %v4045_v47  ;;  %4456 = vst [vmem:[#allocation5_spill] sm:$0xff] %v4047_v44  ;;  %v4051_v41 = vpop.f32.mrb[25].mxu0  ;;  %v4053_v38 = vpop.f32.mrb[25].mxu1 }
 0x190   : > { %4457 = vst [vmem:[#allocation6_spill] sm:$0xff] %v4051_v41  ;;  %4458 = vst [vmem:[#allocation7_spill] sm:$0xff] %v4053_v38  ;;  %v4057_v35 = vpop.f32.mrb[26].mxu0  ;;  %v4059_v32 = vpop.f32.mrb[26].mxu1  ;;  %v4099_v38 = vld [vmem:[%s4431_s2] ss:$0 sm:$0xff] }
 0x191   : > { %4459 = vst [vmem:[#allocation8_spill] sm:$0xff] %v4057_v35  ;;  %4460 = vst [vmem:[#allocation9_spill] sm:$0xff] %v4059_v32  ;;  %v4063_v29 = vpop.f32.mrb[27].mxu0  ;;  %v4065_v26 = vpop.f32.mrb[27].mxu1 }
 0x192   : > { %4461 = vst [vmem:[#allocation10_spill] sm:$0xff] %v4063_v29  ;;  %4462 = vst [vmem:[#allocation11_spill] sm:$0xff] %v4065_v26 }
 0x196   : > { %v4069_v23 = vpop.f32.mrb[28].mxu0  ;;  %v4071_v20 = vpop.f32.mrb[28].mxu1 }
 0x197   : > { %4463 = vst [vmem:[#allocation12_spill] sm:$0xff] %v4069_v23  ;;  %4464 = vst [vmem:[#allocation13_spill] sm:$0xff] %v4071_v20  ;;  %v4075_v17 = vpop.f32.mrb[29].mxu0  ;;  %v4077_v14 = vpop.f32.mrb[29].mxu1 }
 0x198   : > { %4465 = vst [vmem:[#allocation14_spill] sm:$0xff] %v4075_v17  ;;  %4466 = vst [vmem:[#allocation15_spill] sm:$0xff] %v4077_v14  ;;  %v4081_v11 = vpop.f32.mrb[30].mxu0  ;;  %v4083_v32 = vpop.f32.mrb[30].mxu1 }
 0x199   : > { %4467 = vst [vmem:[#allocation16_spill] sm:$0xff] %v4081_v11  ;;  %4468 = vst [vmem:[#allocation17_spill] sm:$0xff] %v4083_v32  ;;  %v4087_v26 = vpop.f32.mrb[31].mxu0  ;;  %v4089_v29 = vpop.f32.mrb[31].mxu1 }
 0x19a   : > { %4469 = vst [vmem:[#allocation18_spill] sm:$0xff] %v4087_v26  ;;  %4470 = vst [vmem:[#allocation19_spill] sm:$0xff] %v4089_v29  ;;  %v4474_v26 = vmax.f32 %v3919_v18, %v3921_v19  ;;  %v4475_v19 = vmax.f32 %v3925_v21, %v3927_v22 }
 0x19e   : > { %v3064_v20 = vpop.f32.mrb[32].mxu0  ;;  %v3098_v23 = vpop.f32.mrb[32].mxu1 }
 0x19f   : > { %v1602_v14 = vmax.f32 %v4471_v7, %v3064_v20  ;;  %v1473_v17 = vpop.f32.mrb[33].mxu0  ;;  %v1827_v35 = vpop.f32.mrb[33].mxu1 }
 0x1a0   : > { %v1600_v32 = vmax.f32 %v4472_v1, %v1473_v17  ;;  %v3065_v11 = vpop.f32.mrb[34].mxu0  ;;  %v3099_v41 = vpop.f32.mrb[34].mxu1 }
 0x1a1   : > { %v1956_v4 = vmax.f32 %v1602_v14, %v3098_v23  ;;  %v1603_v10 = vmax.f32 %v4473_v9, %v3065_v11  ;;  %v1476_v20 = vpop.f32.mrb[35].mxu0  ;;  %v1830_v7 = vpop.f32.mrb[35].mxu1 }
 0x1a2   : > { %v1954_v29 = vmax.f32 %v1600_v32, %v1827_v35  ;;  %v1601_v44 = vmax.f32 %v4474_v26, %v1476_v20 }
 0x1a3   : > { %v1995_v47 = vadd.f32 %v4099_v38, %v1956_v4  ;;  %v1957_v12 = vmax.f32 %v1603_v10, %v3099_v41  ;;  %v4476_v41 = vmax.f32 %v3931_v24, %v3933_v25  ;;  %v4477_v10 = vmax.f32 %v3937_v27, %v3939_v28 }
 0x1a4   : > { %v1993_v13 = vadd.f32 %v4099_v38, %v1954_v29  ;;  %v1955_v17 = vmax.f32 %v1601_v44, %v1830_v7 }
 0x1a5   : > { %v2891_v1 = vpack.c.bf16 %v1995_v47, %v1995_v47  ;;  %v1996_v14 = vadd.f32 %v4099_v38, %v1957_v12  ;;  %v4478_v12 = vmax.f32 %v3943_v30, %v3945_v31  ;;  %v4479_v31 = vmax.f32 %v3949_v33, %v3951_v34 }
 0x1a6   : > { %v2889_v23 = vpack.c.bf16 %v1993_v13, %v1993_v13  ;;  %v1994_v11 = vadd.f32 %v4099_v38, %v1955_v17  ;;  %v3068_v15 = vpop.f32.mrb[36].mxu0  ;;  %v3102_v16 = vpop.f32.mrb[36].mxu1 }
 0x1a7   : > { %2156 = vst.msk [vmem:[%s4116_s12 + $0x8] sm:$0xf] %vm2153_vm3, %v2891_v1  ;;  %v2892_v18 = vpack.c.bf16 %v1996_v14, %v1996_v14  ;;  %v1606_v26 = vmax.f32 %v4475_v19, %v3068_v15  ;;  %v1489_v29 = vpop.f32.mrb[37].mxu0  ;;  %v1843_v32 = vpop.f32.mrb[37].mxu1 }
 0x1a8   : > { %2154 = vst.msk [vmem:[%s4116_s12] sm:$0xf] %vm2153_vm3, %v2889_v23  ;;  %v2890_v35 = vpack.c.bf16 %v1994_v11, %v1994_v11  ;;  %v1604_v44 = vmax.f32 %v4476_v41, %v1489_v29  ;;  %v3069_v47 = vpop.f32.mrb[38].mxu0  ;;  %v3103_v4 = vpop.f32.mrb[38].mxu1  ;;  %v4480_v29 = vmax.f32 %v3955_v36, %v3957_v37 }
 0x1a9   : > { %2157 = vst.msk [vmem:[%s4116_s12 + $0xc] sm:$0xf] %vm2153_vm3, %v2892_v18  ;;  %v1960_v9 = vmax.f32 %v1606_v26, %v3102_v16  ;;  %v1607_v20 = vmax.f32 %v4477_v10, %v3069_v47  ;;  %v1492_v21 = vpop.f32.mrb[39].mxu0  ;;  %v1846_v22 = vpop.f32.mrb[39].mxu1  ;;  %v4481_v47 = vmax.f32 %v3961_v39, %v3963_v40  ;;  %v4482_v10 = vmax.f32 %v3967_v42, %v3969_v43 }
 0x1aa   : > { %2155 = vst.msk [vmem:[%s4116_s12 + $0x4] sm:$0xf] %vm2153_vm3, %v2890_v35  ;;  %v1958_v7 = vmax.f32 %v1604_v44, %v1843_v32  ;;  %v1605_v24 = vmax.f32 %v4478_v12, %v1492_v21  ;;  %v4483_v43 = vmax.f32 %v3973_v45, %v3975_v46 }
 0x1ab   : > { %v1999_v25 = vadd.f32 %v4099_v38, %v1960_v9  ;;  %v1961_v13 = vmax.f32 %v1607_v20, %v3103_v4 }
 0x1ac   : > { %v1997_v17 = vadd.f32 %v4099_v38, %v1958_v7  ;;  %v1959_v1 = vmax.f32 %v1605_v24, %v1846_v22 }
 0x1ad   : > { %v2895_v14 = vpack.c.bf16 %v1999_v25, %v1999_v25  ;;  %v2000_v27 = vadd.f32 %v4099_v38, %v1961_v13 }
 0x1ae   : > { %v2893_v28 = vpack.c.bf16 %v1997_v17, %v1997_v17  ;;  %v1998_v23 = vadd.f32 %v4099_v38, %v1959_v1  ;;  %v3072_v11 = vpop.f32.mrb[40].mxu0  ;;  %v3106_v15 = vpop.f32.mrb[40].mxu1 }
 0x1af   : > { %2160 = vst.msk [vmem:[%s4116_s12 + $0x18] sm:$0xf] %vm2153_vm3, %v2895_v14  ;;  %v2896_v30 = vpack.c.bf16 %v2000_v27, %v2000_v27  ;;  %v1610_v16 = vmax.f32 %v4479_v31, %v3072_v11  ;;  %v1505_v18 = vpop.f32.mrb[41].mxu0  ;;  %v1859_v19 = vpop.f32.mrb[41].mxu1  ;;  %v4484_v27 = vmax.f32 %v3979_v48, %v3981_v49 }
 0x1b0   : > { %2158 = vst.msk [vmem:[%s4116_s12 + $0x10] sm:$0xf] %vm2153_vm3, %v2893_v28  ;;  %v2894_v26 = vpack.c.bf16 %v1998_v23, %v1998_v23  ;;  %v1608_v32 = vmax.f32 %v4480_v29, %v1505_v18  ;;  %v3073_v35 = vpop.f32.mrb[42].mxu0  ;;  %v3107_v41 = vpop.f32.mrb[42].mxu1  ;;  %v4486_v18 = vmax.f32 %v3991_v54, %v3993_v55  ;;  %v4487_v55 = vmax.f32 %v3997_v57, %v3999_v58 }
 0x1b1   : > { %2161 = vst.msk [vmem:[%s4116_s12 + $0x1c] sm:$0xf] %vm2153_vm3, %v2896_v30  ;;  %v1964_v44 = vmax.f32 %v1610_v16, %v3106_v15  ;;  %v1611_v4 = vmax.f32 %v4481_v47, %v3073_v35  ;;  %v1508_v33 = vpop.f32.mrb[43].mxu0  ;;  %v1862_v34 = vpop.f32.mrb[43].mxu1  ;;  %v4485_v30 = vmax.f32 %v3985_v51, %v3987_v52 }
 0x1b2   : > { %2159 = vst.msk [vmem:[%s4116_s12 + $0x14] sm:$0xf] %vm2153_vm3, %v2894_v26  ;;  %v1962_v9 = vmax.f32 %v1608_v32, %v1859_v19  ;;  %v1609_v36 = vmax.f32 %v4482_v10, %v1508_v33 }
 0x1b3   : > { %v2003_v37 = vadd.f32 %v4099_v38, %v1964_v44  ;;  %v1965_v20 = vmax.f32 %v1611_v4, %v3107_v41 }
 0x1b4   : > { %v2001_v21 = vadd.f32 %v4099_v38, %v1962_v9  ;;  %v1963_v22 = vmax.f32 %v1609_v36, %v1862_v34  ;;  %v4488_v9 = vmax.f32 %v4003_v60, %v4005_v61 }
 0x1b5   : > { %v2899_v7 = vpack.c.bf16 %v2003_v37, %v2003_v37  ;;  %v2004_v39 = vadd.f32 %v4099_v38, %v1965_v20 }
 0x1b6   : > { %v2897_v40 = vpack.c.bf16 %v2001_v21, %v2001_v21  ;;  %v2002_v12 = vadd.f32 %v4099_v38, %v1963_v22  ;;  %v3076_v24 = vpop.f32.mrb[44].mxu0  ;;  %v3110_v25 = vpop.f32.mrb[44].mxu1  ;;  %v4489_v21 = vmax.f32 %v4009_v63, %v4011_v0 }
 0x1b7   : > { %2164 = vst.msk [vmem:[%s4116_s12 + $0x28] sm:$0xf] %vm2153_vm3, %v2899_v7  ;;  %v2900_v42 = vpack.c.bf16 %v2004_v39, %v2004_v39  ;;  %v1614_v13 = vmax.f32 %v4483_v43, %v3076_v24  ;;  %v1521_v17 = vpop.f32.mrb[45].mxu0  ;;  %v1875_v1 = vpop.f32.mrb[45].mxu1  ;;  %v4490_v39 = vmax.f32 %v4015_v2, %v4017_v3  ;;  %v4491_v3 = vmax.f32 %v4021_v5, %v4023_v6 }
 0x1b8   : > { %2162 = vst.msk [vmem:[%s4116_s12 + $0x20] sm:$0xf] %vm2153_vm3, %v2897_v40  ;;  %v2898_v14 = vpack.c.bf16 %v2002_v12, %v2002_v12  ;;  %v1612_v28 = vmax.f32 %v4484_v27, %v1521_v17  ;;  %v3077_v23 = vpop.f32.mrb[46].mxu0  ;;  %v3111_v11 = vpop.f32.mrb[46].mxu1 }
 0x1b9   : > { %2165 = vst.msk [vmem:[%s4116_s12 + $0x2c] sm:$0xf] %vm2153_vm3, %v2900_v42  ;;  %v1968_v15 = vmax.f32 %v1614_v13, %v3110_v25  ;;  %v1615_v31 = vmax.f32 %v4485_v30, %v3077_v23  ;;  %v1524_v45 = vpop.f32.mrb[47].mxu0  ;;  %v1878_v46 = vpop.f32.mrb[47].mxu1 }
 0x1ba   : > { %2163 = vst.msk [vmem:[%s4116_s12 + $0x24] sm:$0xf] %vm2153_vm3, %v2898_v14  ;;  %v1966_v16 = vmax.f32 %v1612_v28, %v1875_v1  ;;  %v1613_v48 = vmax.f32 %v4486_v18, %v1524_v45  ;;  %v4492_v28 = vmax.f32 %v4027_v8, %v4029_v62 }
 0x1bb   : > { %v2007_v49 = vadd.f32 %v4099_v38, %v1968_v15  ;;  %v1969_v19 = vmax.f32 %v1615_v31, %v3111_v11  ;;  %v4493_v31 = vmax.f32 %v4033_v59, %v4035_v56 }
 0x1bc   : > { %v2005_v26 = vadd.f32 %v4099_v38, %v1966_v16  ;;  %v1967_v29 = vmax.f32 %v1613_v48, %v1878_v46  ;;  %v4494_v16 = vmax.f32 %v4039_v53, %v4041_v50  ;;  %v4495_v53 = vld [vmem:[#allocation4_spill] sm:$0xff] }
 0x1bd   : > { %v2903_v32 = vpack.c.bf16 %v2007_v49, %v2007_v49  ;;  %v2008_v51 = vadd.f32 %v4099_v38, %v1969_v19 }
 0x1be   : > { %v2901_v52 = vpack.c.bf16 %v2005_v26, %v2005_v26  ;;  %v2006_v35 = vadd.f32 %v4099_v38, %v1967_v29  ;;  %v3080_v41 = vpop.f32.mrb[48].mxu0  ;;  %v3114_v44 = vpop.f32.mrb[48].mxu1 }
 0x1bf   : > { %2168 = vst.msk [vmem:[%s4116_s12 + $0x38] sm:$0xf] %vm2153_vm3, %v2903_v32  ;;  %v2904_v54 = vpack.c.bf16 %v2008_v51, %v2008_v51  ;;  %v1618_v47 = vmax.f32 %v4487_v55, %v3080_v41  ;;  %v1537_v4 = vpop.f32.mrb[49].mxu0  ;;  %v1891_v33 = vpop.f32.mrb[49].mxu1  ;;  %v4496_v51 = vld [vmem:[#allocation5_spill] sm:$0xff]  ;;  %v4498_v55 = vld [vmem:[#allocation6_spill] sm:$0xff] }
 0x1c0   : > { %2166 = vst.msk [vmem:[%s4116_s12 + $0x30] sm:$0xf] %vm2153_vm3, %v2901_v52  ;;  %v2902_v34 = vpack.c.bf16 %v2006_v35, %v2006_v35  ;;  %v1616_v10 = vmax.f32 %v4488_v9, %v1537_v4  ;;  %v3081_v36 = vpop.f32.mrb[50].mxu0  ;;  %v3115_v37 = vpop.f32.mrb[50].mxu1  ;;  %v4497_v52 = vmax.f32 %v4495_v53, %v4496_v51 }
 0x1c1   : > { %2169 = vst.msk [vmem:[%s4116_s12 + $0x3c] sm:$0xf] %vm2153_vm3, %v2904_v54  ;;  %v1972_v20 = vmax.f32 %v1618_v47, %v3114_v44  ;;  %v1619_v22 = vmax.f32 %v4489_v21, %v3081_v36  ;;  %v1540_v57 = vpop.f32.mrb[51].mxu0  ;;  %v1894_v58 = vpop.f32.mrb[51].mxu1  ;;  %v4499_v47 = vld [vmem:[#allocation7_spill] sm:$0xff]  ;;  %v4501_v36 = vld [vmem:[#allocation8_spill] sm:$0xff] }
 0x1c2   : > { %2167 = vst.msk [vmem:[%s4116_s12 + $0x34] sm:$0xf] %vm2153_vm3, %v2902_v34  ;;  %v1970_v7 = vmax.f32 %v1616_v10, %v1891_v33  ;;  %v1617_v60 = vmax.f32 %v4490_v39, %v1540_v57  ;;  %v4500_v4 = vmax.f32 %v4498_v55, %v4499_v47  ;;  %v4505_v39 = vld [vmem:[#allocation11_spill] sm:$0xff] }
 0x1c3   : > { %v2011_v61 = vadd.f32 %v4099_v38, %v1972_v20  ;;  %v1973_v40 = vmax.f32 %v1619_v22, %v3115_v37  ;;  %v4502_v37 = vld [vmem:[#allocation9_spill] sm:$0xff] }
 0x1c4   : > { %v2009_v12 = vadd.f32 %v4099_v38, %v1970_v7  ;;  %v1971_v24 = vmax.f32 %v1617_v60, %v1894_v58  ;;  %v4503_v20 = vmax.f32 %v4501_v36, %v4502_v37  ;;  %v4504_v7 = vld [vmem:[#allocation10_spill] sm:$0xff] }
 0x1c5   : > { %v2907_v25 = vpack.c.bf16 %v2011_v61, %v2011_v61  ;;  %v2012_v63 = vadd.f32 %v4099_v38, %v1973_v40  ;;  %v4506_v60 = vmax.f32 %v4504_v7, %v4505_v39 }
 0x1c6   : > { %v2905_v0 = vpack.c.bf16 %v2009_v12, %v2009_v12  ;;  %v2010_v42 = vadd.f32 %v4099_v38, %v1971_v24  ;;  %v3084_v43 = vpop.f32.mrb[52].mxu0  ;;  %v3118_v13 = vpop.f32.mrb[52].mxu1 }
 0x1c7   : > { %2172 = vst.msk [vmem:[%s4116_s12 + $0x48] sm:$0xf] %vm2153_vm3, %v2907_v25  ;;  %v2908_v2 = vpack.c.bf16 %v2012_v63, %v2012_v63  ;;  %v1622_v17 = vmax.f32 %v4491_v3, %v3084_v43  ;;  %v1553_v1 = vpop.f32.mrb[53].mxu0  ;;  %v1907_v14 = vpop.f32.mrb[53].mxu1 }
 0x1c8   : > { %2170 = vst.msk [vmem:[%s4116_s12 + $0x40] sm:$0xf] %vm2153_vm3, %v2905_v0  ;;  %v2906_v27 = vpack.c.bf16 %v2010_v42, %v2010_v42  ;;  %v1620_v23 = vmax.f32 %v4492_v28, %v1553_v1  ;;  %v3085_v11 = vpop.f32.mrb[54].mxu0  ;;  %v3119_v15 = vpop.f32.mrb[54].mxu1  ;;  %v4508_v1 = vld [vmem:[#allocation13_spill] sm:$0xff] }
 0x1c9   : > { %2173 = vst.msk [vmem:[%s4116_s12 + $0x4c] sm:$0xf] %vm2153_vm3, %v2908_v2  ;;  %v1976_v30 = vmax.f32 %v1622_v17, %v3118_v13  ;;  %v1623_v45 = vmax.f32 %v4493_v31, %v3085_v11  ;;  %v1556_v5 = vpop.f32.mrb[55].mxu0  ;;  %v1910_v6 = vpop.f32.mrb[55].mxu1  ;;  %v4507_v17 = vld [vmem:[#allocation12_spill] sm:$0xff] }
 0x1ca   : > { %2171 = vst.msk [vmem:[%s4116_s12 + $0x44] sm:$0xf] %vm2153_vm3, %v2906_v27  ;;  %v1974_v46 = vmax.f32 %v1620_v23, %v1907_v14  ;;  %v1621_v62 = vmax.f32 %v4494_v16, %v1556_v5  ;;  %v4509_v14 = vmax.f32 %v4507_v17, %v4508_v1  ;;  %v4513_v16 = vld [vmem:[#allocation16_spill] sm:$0xff] }
 0x1cb   : > { %v2015_v8 = vadd.f32 %v4099_v38, %v1976_v30  ;;  %v1977_v18 = vmax.f32 %v1623_v45, %v3119_v15  ;;  %v4510_v15 = vld [vmem:[#allocation14_spill] sm:$0xff]  ;;  %v4511_v30 = vld [vmem:[#allocation15_spill] sm:$0xff] }
 0x1cc   : > { %v2013_v48 = vadd.f32 %v4099_v38, %v1974_v46  ;;  %v1975_v49 = vmax.f32 %v1621_v62, %v1910_v6  ;;  %v4512_v31 = vmax.f32 %v4510_v15, %v4511_v30  ;;  %v4514_v62 = vld [vmem:[#allocation17_spill] sm:$0xff] }
 0x1cd   : > { %v2911_v19 = vpack.c.bf16 %v2015_v8, %v2015_v8  ;;  %v2016_v56 = vadd.f32 %v4099_v38, %v1977_v18  ;;  %v4515_v8 = vmax.f32 %v4513_v16, %v4514_v62 }
 0x1ce   : > { %v2909_v59 = vpack.c.bf16 %v2013_v48, %v2013_v48  ;;  %v2014_v26 = vadd.f32 %v4099_v38, %v1975_v49  ;;  %v3088_v29 = vpop.f32.mrb[56].mxu0  ;;  %v3122_v32 = vpop.f32.mrb[56].mxu1 }
 0x1cf   : > { %2176 = vst.msk [vmem:[%s4116_s12 + $0x58] sm:$0xf] %vm2153_vm3, %v2911_v19  ;;  %v2912_v50 = vpack.c.bf16 %v2016_v56, %v2016_v56  ;;  %v1626_v35 = vmax.f32 %v4497_v52, %v3088_v29  ;;  %v1569_v41 = vpop.f32.mrb[57].mxu0  ;;  %v1923_v44 = vpop.f32.mrb[57].mxu1  ;;  %v4516_v56 = vld [vmem:[#allocation18_spill] sm:$0xff] }
 0x1d0   : > { %2174 = vst.msk [vmem:[%s4116_s12 + $0x50] sm:$0xf] %vm2153_vm3, %v2909_v59  ;;  %v2910_v54 = vpack.c.bf16 %v2014_v26, %v2014_v26  ;;  %v1624_v33 = vmax.f32 %v4500_v4, %v1569_v41  ;;  %v3089_v34 = vpop.f32.mrb[58].mxu0  ;;  %v3123_v9 = vpop.f32.mrb[58].mxu1  ;;  %v4517_v59 = vld [vmem:[#allocation19_spill] sm:$0xff] }
 0x1d1   : > { %2177 = vst.msk [vmem:[%s4116_s12 + $0x5c] sm:$0xf] %vm2153_vm3, %v2912_v50  ;;  %v1980_v10 = vmax.f32 %v1626_v35, %v3122_v32  ;;  %v1627_v21 = vmax.f32 %v4503_v20, %v3089_v34  ;;  %v1572_v22 = vpop.f32.mrb[59].mxu0  ;;  %v1926_v57 = vpop.f32.mrb[59].mxu1  ;;  %v4518_v26 = vmax.f32 %v4516_v56, %v4517_v59 }
 0x1d2   : > { %2175 = vst.msk [vmem:[%s4116_s12 + $0x54] sm:$0xf] %vm2153_vm3, %v2910_v54  ;;  %v1978_v58 = vmax.f32 %v1624_v33, %v1923_v44  ;;  %v1625_v61 = vmax.f32 %v4506_v60, %v1572_v22 }
 0x1d3   : > { %v2019_v40 = vadd.f32 %v4099_v38, %v1980_v10  ;;  %v1981_v12 = vmax.f32 %v1627_v21, %v3123_v9 }
 0x1d4   : > { %v2017_v24 = vadd.f32 %v4099_v38, %v1978_v58  ;;  %v1979_v25 = vmax.f32 %v1625_v61, %v1926_v57 }
 0x1d5   : > { %v2915_v63 = vpack.c.bf16 %v2019_v40, %v2019_v40  ;;  %v2020_v0 = vadd.f32 %v4099_v38, %v1981_v12 }
 0x1d6   : > { %v2913_v42 = vpack.c.bf16 %v2017_v24, %v2017_v24  ;;  %v2018_v43 = vadd.f32 %v4099_v38, %v1979_v25  ;;  %v3092_v13 = vpop.f32.mrb[60].mxu0  ;;  %v3126_v2 = vpop.f32.mrb[60].mxu1 }
 0x1d7   : > { %2180 = vst.msk [vmem:[%s4116_s12 + $0x68] sm:$0xf] %vm2153_vm3, %v2915_v63  ;;  %v2916_v3 = vpack.c.bf16 %v2020_v0, %v2020_v0  ;;  %v1630_v27 = vmax.f32 %v4509_v14, %v3092_v13  ;;  %v1585_v28 = vpop.f32.mrb[61].mxu0  ;;  %v1939_v23 = vpop.f32.mrb[61].mxu1 }
 0x1d8   : > { %2178 = vst.msk [vmem:[%s4116_s12 + $0x60] sm:$0xf] %vm2153_vm3, %v2913_v42  ;;  %v2914_v11 = vpack.c.bf16 %v2018_v43, %v2018_v43  ;;  %v1628_v45 = vmax.f32 %v4512_v31, %v1585_v28  ;;  %v3093_v5 = vpop.f32.mrb[62].mxu0  ;;  %v3127_v6 = vpop.f32.mrb[62].mxu1 }
 0x1d9   : > { %2181 = vst.msk [vmem:[%s4116_s12 + $0x6c] sm:$0xf] %vm2153_vm3, %v2916_v3  ;;  %v1984_v46 = vmax.f32 %v1630_v27, %v3126_v2  ;;  %v1631_v18 = vmax.f32 %v4515_v8, %v3093_v5  ;;  %v1588_v48 = vpop.f32.mrb[63].mxu0  ;;  %v1942_v49 = vpop.f32.mrb[63].mxu1 }
 0x1da   : > { %2179 = vst.msk [vmem:[%s4116_s12 + $0x64] sm:$0xf] %vm2153_vm3, %v2914_v11  ;;  %v1982_v19 = vmax.f32 %v1628_v45, %v1939_v23  ;;  %v1629_v29 = vmax.f32 %v4518_v26, %v1588_v48 }
 0x1db   : > { %v2023_v32 = vadd.f32 %v4099_v38, %v1984_v46  ;;  %v1985_v50 = vmax.f32 %v1631_v18, %v3127_v6 }
 0x1dc   : > { %v2021_v53 = vadd.f32 %v4099_v38, %v1982_v19  ;;  %v1983_v51 = vmax.f32 %v1629_v29, %v1942_v49  ;;  %2192 = sbr.rel (!%p3550_p5) target bundleno = 553 (0x229), region = 98 }
 0x1dd   : > { %v2919_v52 = vpack.c.bf16 %v2023_v32, %v2023_v32  ;;  %v2024_v35 = vadd.f32 %v4099_v38, %v1985_v50 }
 0x1de   : > { %v2917_v41 = vpack.c.bf16 %v2021_v53, %v2021_v53  ;;  %v2022_v44 = vadd.f32 %v4099_v38, %v1983_v51 }
 0x1df   : > { %2184 = vst.msk [vmem:[%s4116_s12 + $0x78] sm:$0xf] %vm2153_vm3, %v2919_v52  ;;  %v2920_v54 = vpack.c.bf16 %v2024_v35, %v2024_v35 }
 0x1e0   : > { %2182 = vst.msk [vmem:[%s4116_s12 + $0x70] sm:$0xf] %vm2153_vm3, %v2917_v41  ;;  %v2918_v55 = vpack.c.bf16 %v2022_v44, %v2022_v44 }
 0x1e1   : > { %2185 = vst.msk [vmem:[%s4116_s12 + $0x7c] sm:$0xf] %vm2153_vm3, %v2920_v54 }
 0x1e2   : > { %2183 = vst.msk [vmem:[%s4116_s12 + $0x74] sm:$0xf] %vm2153_vm3, %v2918_v55 }
 0x1e3   : > { %s4532_s10 = smov (!%p2195_p4, %s2194_s10), 32 }
 0x1e4   : > { %s2871_s21 = sshll.u32 %s4532_s10, 6 }
 0x1e5   : > { %p2874_p6 = scmp.eq.s32.totalorder %s2871_s21, 0 }
 0x1e6   : > { %s4307_s20 = sshrl.u32 (!%p2874_p6), %s4532_s10, 5 }
 0x1e7   : > { %2203 = sbr.rel (%p2874_p6) target bundleno = 553 (0x229), region = 102  ;;  %p2875_p5 = scmp.le.s32.totalorder (!%p2874_p6), %s4307_s20, 0 }
 0x1ee   : > { %2546 = sbr.rel (%p2875_p5) target bundleno = 532 (0x214), region = 218  ;;  %s4519_s15 = smov (!%p2875_p5), %s4301_s18 }
 0x1ef   : > { %s4520_s22 = smov (!%p2875_p5), %s4116_s12  ;;  %s4316_s23 = smov (!%p2875_p5), 0  }
 0x1f0   : > { %s4318_s25 = smov (!%p2875_p5), 0  }
 0x1f5 LB: >> { %v2219_v38 = vld [vmem:[%s3472_s22] sm:$0xf]  ;;  %v2221_v47 = vld [vmem:[%s3472_s22 + $0x4] sm:$0xf]  ;;  %v2223_v4 = vld [vmem:[%s3472_s22 + $0x8] sm:$0xf]  ;;  %s3480_s25 = sphi %s4318_s25, %s2213_s25   ;;  %s3476_s23 = sphi %s4316_s23, %s4521_s23   ;;  %s3472_s22 = sphi %s4520_s22, %s2288_s22   ;;  %s3468_s15 = sphi %s4519_s15, %s2289_s15  }
 0x1f6   : >> { %2220 = vst [vmem:[%s3468_s15] sm:$0xf] %v2219_v38  ;;  %2222 = vst [vmem:[%s3468_s15 + $0x4] sm:$0xf] %v2221_v47  ;;  %v2225_v33 = vld [vmem:[%s3472_s22 + $0xc] sm:$0xf]  ;;  %s2283_s26 = sadd.s32 1, %s3476_s23 }
 0x1f7   : >> { %2224 = vst [vmem:[%s3468_s15 + $0x8] sm:$0xf] %v2223_v4  ;;  %v2227_v34 = vld [vmem:[%s3472_s22 + $0x10] sm:$0xf]  ;;  %v2229_v9 = vld [vmem:[%s3472_s22 + $0x14] sm:$0xf]  ;;  %p2284_p7 = scmp.ge.s32.totalorder %s2283_s26, %s4307_s20 }
 0x1f8   : >> { %2226 = vst [vmem:[%s3468_s15 + $0xc] sm:$0xf] %v2225_v33  ;;  %2228 = vst [vmem:[%s3468_s15 + $0x10] sm:$0xf] %v2227_v34  ;;  %v2231_v10 = vld [vmem:[%s3472_s22 + $0x18] sm:$0xf] }
 0x1f9   : >> { %2230 = vst [vmem:[%s3468_s15 + $0x14] sm:$0xf] %v2229_v9  ;;  %v2233_v36 = vld [vmem:[%s3472_s22 + $0x1c] sm:$0xf]  ;;  %v2235_v37 = vld [vmem:[%s3472_s22 + $0x20] sm:$0xf] }
 0x1fa   : >> { %2232 = vst [vmem:[%s3468_s15 + $0x18] sm:$0xf] %v2231_v10  ;;  %2234 = vst [vmem:[%s3468_s15 + $0x1c] sm:$0xf] %v2233_v36  ;;  %v2237_v20 = vld [vmem:[%s3472_s22 + $0x24] sm:$0xf] }
 0x1fb   : >> { %2236 = vst [vmem:[%s3468_s15 + $0x20] sm:$0xf] %v2235_v37  ;;  %v2239_v21 = vld [vmem:[%s3472_s22 + $0x28] sm:$0xf]  ;;  %v2241_v22 = vld [vmem:[%s3472_s22 + $0x2c] sm:$0xf] }
 0x1fc   : >> { %2238 = vst [vmem:[%s3468_s15 + $0x24] sm:$0xf] %v2237_v20  ;;  %2240 = vst [vmem:[%s3468_s15 + $0x28] sm:$0xf] %v2239_v21  ;;  %v2243_v57 = vld [vmem:[%s3472_s22 + $0x30] sm:$0xf] }
 0x1fd   : >> { %2242 = vst [vmem:[%s3468_s15 + $0x2c] sm:$0xf] %v2241_v22  ;;  %v2245_v58 = vld [vmem:[%s3472_s22 + $0x34] sm:$0xf]  ;;  %v2247_v7 = vld [vmem:[%s3472_s22 + $0x38] sm:$0xf] }
 0x1fe   : >> { %2244 = vst [vmem:[%s3468_s15 + $0x30] sm:$0xf] %v2243_v57  ;;  %2246 = vst [vmem:[%s3468_s15 + $0x34] sm:$0xf] %v2245_v58  ;;  %v2249_v39 = vld [vmem:[%s3472_s22 + $0x3c] sm:$0xf] }
 0x1ff   : >> { %2248 = vst [vmem:[%s3468_s15 + $0x38] sm:$0xf] %v2247_v7  ;;  %v2251_v60 = vld [vmem:[%s3472_s22 + $0x40] sm:$0xf]  ;;  %v2253_v61 = vld [vmem:[%s3472_s22 + $0x44] sm:$0xf] }
 0x200   : >> { %2250 = vst [vmem:[%s3468_s15 + $0x3c] sm:$0xf] %v2249_v39  ;;  %2252 = vst [vmem:[%s3468_s15 + $0x40] sm:$0xf] %v2251_v60  ;;  %v2255_v40 = vld [vmem:[%s3472_s22 + $0x48] sm:$0xf] }
 0x201   : >> { %2254 = vst [vmem:[%s3468_s15 + $0x44] sm:$0xf] %v2253_v61  ;;  %v2257_v12 = vld [vmem:[%s3472_s22 + $0x4c] sm:$0xf]  ;;  %v2259_v24 = vld [vmem:[%s3472_s22 + $0x50] sm:$0xf] }
 0x202   : >> { %2256 = vst [vmem:[%s3468_s15 + $0x48] sm:$0xf] %v2255_v40  ;;  %2258 = vst [vmem:[%s3468_s15 + $0x4c] sm:$0xf] %v2257_v12  ;;  %v2261_v25 = vld [vmem:[%s3472_s22 + $0x54] sm:$0xf] }
 0x203   : >> { %2260 = vst [vmem:[%s3468_s15 + $0x50] sm:$0xf] %v2259_v24  ;;  %v2263_v63 = vld [vmem:[%s3472_s22 + $0x58] sm:$0xf]  ;;  %v2265_v0 = vld [vmem:[%s3472_s22 + $0x5c] sm:$0xf] }
 0x204   : >> { %2262 = vst [vmem:[%s3468_s15 + $0x54] sm:$0xf] %v2261_v25  ;;  %2264 = vst [vmem:[%s3468_s15 + $0x58] sm:$0xf] %v2263_v63  ;;  %v2267_v42 = vld [vmem:[%s3472_s22 + $0x60] sm:$0xf] }
 0x205   : >> { %2266 = vst [vmem:[%s3468_s15 + $0x5c] sm:$0xf] %v2265_v0  ;;  %v2269_v43 = vld [vmem:[%s3472_s22 + $0x64] sm:$0xf]  ;;  %v2271_v13 = vld [vmem:[%s3472_s22 + $0x68] sm:$0xf] }
 0x206   : >> { %2268 = vst [vmem:[%s3468_s15 + $0x60] sm:$0xf] %v2267_v42  ;;  %2270 = vst [vmem:[%s3468_s15 + $0x64] sm:$0xf] %v2269_v43  ;;  %v2273_v2 = vld [vmem:[%s3472_s22 + $0x6c] sm:$0xf] }
 0x207   : >> { %2272 = vst [vmem:[%s3468_s15 + $0x68] sm:$0xf] %v2271_v13  ;;  %v2275_v3 = vld [vmem:[%s3472_s22 + $0x70] sm:$0xf]  ;;  %v2277_v17 = vld [vmem:[%s3472_s22 + $0x74] sm:$0xf] }
 0x208   : >> { %2274 = vst [vmem:[%s3468_s15 + $0x6c] sm:$0xf] %v2273_v2  ;;  %2276 = vst [vmem:[%s3468_s15 + $0x70] sm:$0xf] %v2275_v3  ;;  %v2279_v1 = vld [vmem:[%s3472_s22 + $0x78] sm:$0xf] }
 0x209   : >> { %2278 = vst [vmem:[%s3468_s15 + $0x74] sm:$0xf] %v2277_v17  ;;  %v2281_v14 = vld [vmem:[%s3472_s22 + $0x7c] sm:$0xf]  ;;  %2280 = vst [vmem:[%s3468_s15 + $0x78] sm:$0xf] %v2279_v1 }
 0x20a   : >> { %2282 = vst [vmem:[%s3468_s15 + $0x7c] sm:$0xf] %v2281_v14  ;;  %s4534_s26 = smov (%p2284_p7, %s2283_s26), 0  ;;  %s2213_s25 = sadd.s32 1, %s3480_s25  }
 0x20b   : >> { %s2876_s24 = sshll.u32 %s4534_s26, 7  ;;  %p2212_p8 = scmp.ge.s32.totalorder %s2213_s25, %s4307_s20 }
 0x20c   : >> { %s2288_s22 = scalar_lea.vmem %s4116_s12, %s2876_s24 [#allocation3]   ;;  %s2289_s15 = scalar_lea.vmem %s4301_s18, %s2876_s24  }
 0x20d   : >> { %s4521_s23 = smov %s4534_s26  ;;  %2215 = sbr.rel (!%p2212_p8) target bundleno = 501 (0x1f5), region = 224 }
 0x214 PF: > { %s4411_s27 = sand.u32 31, %s4532_s10   ;;  %s2922_s28 = sshll.u32 %s4307_s20, 7 }
 0x215   : > { %s2294_s29 = scalar_lea.vmem %s4116_s12, %s2922_s28 [#allocation3]   ;;  %s2296_s30 = scalar_lea.vmem %s4301_s18, %s2922_s28  }
 0x216   : > { %p2881_p9 = scmp.le.s32.totalorder %s4411_s27, 0 }
 0x217   : > { %s3482_s4 = smov (!%p2881_p9), %s2296_s30   ;;  %s3486_s5 = smov (!%p2881_p9), %s2294_s29  }
 0x218   : > { %2560 = sbr.rel (%p2881_p9) target bundleno = 553 (0x229), region = 229  ;;  %s3490_s14 = smov (!%p2881_p9), 0  }
 0x219   : > { %s3494_s6 = smov (!%p2881_p9), 0  }
 0x21f LB: >> { %v2306_v27 = vld [vmem:[%s3488_s5] sm:$0xf]  ;;  %s2308_s7 = sadd.s32 1, %s3492_s14  ;;  %s2300_s6 = sadd.s32 1, %s3496_s6   ;;  %s3496_s6 = sphi %s3494_s6, %s2300_s6   ;;  %s3492_s14 = sphi %s3490_s14, %s3491_s14   ;;  %s3488_s5 = sphi %s3486_s5, %s2313_s5   ;;  %s3484_s4 = sphi %s3482_s4, %s2314_s4  }
 0x220   : >> { %2307 = vst [vmem:[%s3484_s4] sm:$0xf] %v2306_v27  ;;  %p2309_p10 = scmp.ge.s32.totalorder %s2308_s7, %s4411_s27  ;;  %p2299_p11 = scmp.ge.s32.totalorder %s2300_s6, %s4411_s27 }
 0x222   : >> { %s4536_s7 = smov (%p2309_p10, %s2308_s7), 0  ;;  %2302 = sbr.rel (!%p2299_p11) target bundleno = 543 (0x21f), region = 235 }
 0x223   : >> { %s2882_s12 = sshll.u32 %s4536_s7, 2  ;;  %s3491_s14 = smov %s4536_s7  }
 0x224   : >> { %s2313_s5 = scalar_lea.vmem %s2294_s29, %s2882_s12 [#allocation3]   ;;  %s2314_s4 = scalar_lea.vmem %s2296_s30, %s2882_s12  }
 0x229 PF: > { %p10_p12 = scmp.ge.s32.totalorder %s3538_s16, 4   ;;  %s4522_s12 = smov %s3428_s13 }
 0x22a   : > { %s4523_s13 = smov %s3548_s19  ;;  %s4524_s14 = smov %s3538_s16 }
 0x22b   :  { %12 = sbr.rel (!%p10_p12) target bundleno = 2 (0x2), region = 246 }

// kernel: cnn_forward.4
= control target key start
LH: loop header
LB: loop body
LE: loop exit
PB: predicated region body
PF: predicated region fallthrough
CT: control target
= control target key end

     0   :  { %v2362_v0 = vmov 0.0   ;;  %vm2363_vm0 = vmmov 0   ;;  %vm285_vm1 = vcmask 261120   ;;  %vm1580_vm2 = vcmask 519168   ;;  %s3125_s1 = inlined_call_operand.vmem [shape: bf16[288,64], index: 1, kind: input, shape index: {}]   ;;  %s3126_s0 = inlined_call_operand.vmem [shape: bf16[4,98,288], index: 0, kind: input, shape index: {}]   ;;  %s3127_s2 = inlined_call_operand.vmem [shape: f32[1,64], index: 2, kind: input, shape index: {}]   ;;  %s3128_s3 = inlined_call_operand.vmem [shape: bf16[98,64], index: 3, kind: output, shape index: {}]  }
   0x1   :  { %2102 = vmatprep.subr.bf16.mxu1 %v2362_v0  ;;  %v2388_v1 = vld [vmem:[%s3125_s1 + $0x40] sm:$0xff]   ;;  %2106 = vmatprep.mubr.msk.bf16.mxu1 %vm2363_vm0, %v2362_v0  ;;  %v2407_v4 = vld [vmem:[%s3125_s1 + $0x48] sm:$0xff]   ;;  %v2429_v8 = vld [vmem:[%s3125_s1 + $0x50] sm:$0xff]   ;;  %vm1593_vm3 = vcmask 516096  }
   0x2   :  { %v2395_v2 = vld [vmem:[%s3125_s1 + $0x80] sm:$0xff]   ;;  %1834 = vmatprep.subr.bf16.mxu0 %v2388_v1  ;;  %v2414_v5 = vld [vmem:[%s3125_s1 + $0x88] sm:$0xff]   ;;  %v2435_v9 = vld [vmem:[%s3125_s1 + $0x10] sm:$0xff]  }
   0x3   :  { %v2401_v3 = vld [vmem:[%s3125_s1] sm:$0xff]   ;;  %2103 = vmatpush3.bf16.msra.mxu1 %v2395_v2  ;;  %v2420_v6 = vld [vmem:[%s3125_s1 + $0x8] sm:$0xff]   ;;  %v2442_v10 = vld [vmem:[%s3125_s1 + $0x58] sm:$0xff]  }
   0x4   :  { %1835 = vmatpush3.bf16.msra.mxu0 %v2401_v3  ;;  %2104 = vmatprep.subr.bf16.mxu1 %v2362_v0  ;;  %v2242_v7 = vld [vmem:[%s3126_s0 + $0x8] ss:$12 sps:$4 sm:$0xff]   ;;  %v2452_v11 = vld [vmem:[%s3125_s1 + $0x18] sm:$0xff]   ;;  %v2459_v12 = vld [vmem:[%s3125_s1 + $0x60] sm:$0xff]  }
   0x5   :  { %1836 = vmatprep.subr.bf16.mxu0 %v2407_v4  ;;  %v2247_v13 = vld [vmem:[%s3126_s0 + $0x20] ss:$12 sps:$4 sm:$0xff]   ;;  %v2252_v17 = vld [vmem:[%s3126_s0 + $0x38] ss:$12 sps:$4 sm:$0xff]   ;;  %v2496_v18 = vld [vmem:[%s3125_s1 + $0x70] sm:$0xff]  }
   0x6   :  { %v2469_v14 = vld [vmem:[%s3125_s1 + $0x20] sm:$0xff]   ;;  %v2476_v15 = vld [vmem:[%s3125_s1 + $0x68] sm:$0xff]   ;;  %v2506_v20 = vld [vmem:[%s3125_s1 + $0x30] sm:$0xff]  }
   0x7   :  { %2105 = vmatpush3.bf16.msra.mxu1 %v2414_v5  ;;  %v2482_v16 = vld [vmem:[%s3125_s1 + $0x28] sm:$0xff]   ;;  %v2259_v19 = vld [vmem:[%s3126_s0 + $0x4] ss:$12 sps:$4 sm:$0xff]   ;;  %v2512_v21 = vld [vmem:[%s3125_s1 + $0x78] sm:$0xff]  }
   0x8   :  { %1837 = vmatpush3.bf16.msra.mxu0 %v2420_v6  ;;  %1901 = vmatprep.subr.bf16.mxu1 %v2388_v1  ;;  %v2523_v22 = vld [vmem:[%s3125_s1 + $0x38] sm:$0xff]   ;;  %v2257_v24 = vld [vmem:[%s3126_s0] ss:$12 sps:$4 sm:$0xff]   ;;  %v2263_v26 = vld [vmem:[%s3126_s0 + $0x68] ss:$12 sps:$4 sm:$0xff]  }
   0x9   :  { %1838 = vmatprep.subr.bf16.mxu0 %v2429_v8  ;;  %339 = vmatprep.mubr.bf16.mxu0 %v2259_v19  ;;  %v2260_v23 = vld [vmem:[%s3126_s0 + $0x50] ss:$12 sps:$4 sm:$0xff]   ;;  %v2264_v27 = vld [vmem:[%s3126_s0 + $0x18] ss:$12 sps:$4 sm:$0xff]   ;;  %v2265_v28 = vld [vmem:[%s3126_s0 + $0x34] ss:$12 sps:$4 sm:$0xff]  }
   0xa   :  { %2107 = vmatmul.mubr.msk.bf16.vlgmr.msra.gmra.mrb[0].mxu1 %vm285_vm1, %v2242_v7  ;;  %v2261_v25 = vld [vmem:[%s3126_s0 + $0x1c] ss:$12 sps:$4 sm:$0xff]   ;;  %v2267_v29 = vld [vmem:[%s3126_s0 + $0x80] ss:$12 sps:$4 sm:$0xff]   ;;  %v2276_v35 = vld [vmem:[%s3126_s0 + $0x64] ss:$12 sps:$4 sm:$0xff]  }
   0xb   :  { %2110 = vmatprep.mubr.msk.bf16.mxu1 %vm2363_vm0, %v2362_v0  ;;  %1902 = vmatpush3.bf16.msra.mxu1 %v2401_v3  ;;  %v2268_v30 = vld [vmem:[%s3126_s0 + $0x30] ss:$12 sps:$4 sm:$0xff]   ;;  %v2269_v31 = vld [vmem:[%s3126_s0 + $0x4c] ss:$12 sps:$4 sm:$0xff]   ;;  %v2272_v33 = vld [vmem:[%s3126_s0 + $0x48] ss:$12 sps:$4 sm:$0xff]  }
   0xc   :  { %1839 = vmatpush3.bf16.msra.mxu0 %v2435_v9  ;;  %1903 = vmatprep.subr.bf16.mxu1 %v2407_v4  ;;  %v2271_v32 = vld [vmem:[%s3126_s0 + $0x98] ss:$0 sps:$4 sm:$0x11]   ;;  %v2275_v34 = vld [vmem:[%s3126_s0 + $0xa0] ss:$12 sps:$4 sm:$0xff]  }
   0xd   :  { %1840 = vmatprep.subr.bf16.mxu0 %v2442_v10  ;;  %v2273_v36 = vld [vmem:[%s3126_s0 + $0x9c] ss:$12 sps:$4 sm:$0xff]   ;;  %v2278_v37 = vld [vmem:[%s3126_s0 + $0x60] ss:$12 sps:$4 sm:$0xff]   ;;  %v2279_v38 = vld [vmem:[%s3126_s0 + $0xb8] ss:$12 sps:$4 sm:$0xff]  }
   0xe   :  { %v2281_v39 = vld [vmem:[%s3126_s0 + $0x7c] ss:$12 sps:$4 sm:$0xff]   ;;  %v2283_v40 = vld [vmem:[%s3126_s0 + $0xb4] ss:$12 sps:$4 sm:$0xff]   ;;  %v2284_v42 = vld [vmem:[%s3126_s0 + $0x78] ss:$12 sps:$4 sm:$0xff]  }
   0xf   :  { %1904 = vmatpush3.bf16.msra.mxu1 %v2420_v6  ;;  %v75_v41 = vld [vmem:[%s3126_s0 + $0x90] sm:$0x11]  ;;  %v2288_v45 = vld [vmem:[%s3126_s0 + $0xcc] ss:$12 sps:$4 sm:$0xff]   ;;  %v2296_v51 = vld [vmem:[%s3126_s0 + $0xfc] ss:$12 sps:$4 sm:$0xff]  }
  0x10   :  { %1841 = vmatpush3.bf16.msra.mxu0 %v2452_v11  ;;  %1905 = vmatprep.subr.bf16.mxu1 %v2429_v8  ;;  %v2285_v43 = vld [vmem:[%s3126_s0 + $0xd0] ss:$12 sps:$4 sm:$0xff]   ;;  %v1618_v44 = vcombine.high %v75_v41, %v75_v41  ;;  %v1617_v46 = vcombine.low %v75_v41, %v75_v41  ;;  %v2290_v47 = vld [vmem:[%s3126_s0 + $0xe8] ss:$12 sps:$4 sm:$0xff]   ;;  %v2294_v50 = vld [vmem:[%s3126_s0 + $0x100] ss:$12 sps:$4 sm:$0xff]  }
  0x11   :  { %1842 = vmatprep.subr.bf16.mxu0 %v2459_v12  ;;  %v2292_v48 = vld [vmem:[%s3126_s0 + $0xe4] ss:$12 sps:$4 sm:$0xff]   ;;  %v2297_v52 = vld [vmem:[%s3126_s0 + $0xbc] ss:$12 sps:$4 sm:$0xff]   ;;  %v2300_v55 = vld [vmem:[%s3126_s0 + $0x114] ss:$12 sps:$4 sm:$0xff]  }
  0x12   :  { %2111 = vmatmul.mubr.msk.bf16.gmra.mrb[4].mxu1 %vm285_vm1, %v2247_v13  ;;  %v2293_v49 = vld [vmem:[%s3126_s0 + $0xa4] ss:$12 sps:$4 sm:$0xff]   ;;  %v2301_v56 = vld [vmem:[%s3126_s0 + $0xd4] ss:$12 sps:$4 sm:$0xff]   ;;  %v2304_v59 = vld [vmem:[%s3126_s0 + $0xec] ss:$12 sps:$4 sm:$0xff]  }
  0x13   :  { %2114 = vmatprep.mubr.msk.bf16.mxu1 %vm2363_vm0, %v2362_v0  ;;  %1906 = vmatpush3.bf16.msra.mxu1 %v2435_v9  ;;  %v2298_v53 = vld [vmem:[%s3126_s0 + $0x118] ss:$12 sps:$4 sm:$0xff]   ;;  %v1669_v54 = vld [vmem:[%s3126_s0 + $0x12c] sm:$0x11]  ;;  %v2307_v60 = vld [vmem:[%s3126_s0 + $0x13c] ss:$12 sps:$4 sm:$0xff]  }
  0x14   :  { %1843 = vmatpush3.bf16.msra.mxu0 %v2469_v14  ;;  %1907 = vmatprep.subr.bf16.mxu1 %v2442_v10  ;;  %v1690_v57 = vcombine.high %v1669_v54, %v1669_v54  ;;  %v1689_v58 = vcombine.low %v1669_v54, %v1669_v54  ;;  %v2305_v61 = vld [vmem:[%s3126_s0 + $0x138] ss:$12 sps:$4 sm:$0xff]   ;;  %v2309_v63 = vld [vmem:[%s3126_s0 + $0x154] ss:$12 sps:$4 sm:$0xff]   ;;  %v2312_v7 = vld [vmem:[%s3126_s0 + $0x11c] ss:$12 sps:$4 sm:$0xff]  }
  0x15   :  { %1844 = vmatprep.subr.bf16.mxu0 %v2476_v15  ;;  %v2308_v62 = vld [vmem:[%s3126_s0 + $0x104] ss:$12 sps:$4 sm:$0xff]   ;;  %v2313_v13 = vld [vmem:[%s3126_s0 + $0x16c] ss:$12 sps:$4 sm:$0xff]  }
  0x17   :  { %1908 = vmatpush3.bf16.msra.mxu1 %v2452_v11 }
  0x18   :  { %1845 = vmatpush3.bf16.msra.mxu0 %v2482_v16  ;;  %1909 = vmatprep.subr.bf16.mxu1 %v2459_v12 }
  0x19   :  { %1846 = vmatprep.subr.bf16.mxu0 %v2496_v18 }
  0x1a   :  { %2115 = vmatmul.mubr.msk.bf16.gmra.mrb[8].mxu1 %vm285_vm1, %v2252_v17  ;;  %v2328_v17 = vld [vmem:[%s3126_s0 + $0x170] ss:$12 sps:$4 sm:$0xff]  }
  0x1b   :  { %2118 = vmatprep.mubr.msk.bf16.mxu1 %vm2363_vm0, %v2362_v0  ;;  %1910 = vmatpush3.bf16.msra.mxu1 %v2469_v14 }
  0x1c   :  { %1847 = vmatpush3.bf16.msra.mxu0 %v2506_v20  ;;  %1911 = vmatprep.subr.bf16.mxu1 %v2476_v15 }
  0x1d   :  { %1848 = vmatprep.subr.bf16.mxu0 %v2512_v21 }
  0x1f   :  { %1912 = vmatpush3.bf16.msra.mxu1 %v2482_v16 }
  0x20   :  { %1849 = vmatpush3.bf16.msra.mxu0 %v2523_v22  ;;  %1913 = vmatprep.subr.bf16.mxu1 %v2496_v18 }
  0x21   :  { %2134 = vmatprep.subr.bf16.mxu0 %v2362_v0 }
  0x22   :  { %2119 = vmatmul.mubr.msk.bf16.gmra.mrb[12].mxu1 %vm285_vm1, %v2260_v23  ;;  %v2335_v23 = vld [vmem:[%s3126_s0 + $0x1a0] ss:$12 sps:$4 sm:$0xff]  }
  0x23   :  { %340 = vmatmul.mubr.bf16.vlgmr.msra.gmra.mrb[0].mxu0 %v2257_v24  ;;  %2122 = vmatprep.mubr.msk.bf16.mxu1 %vm2363_vm0, %v2362_v0  ;;  %v2336_v24 = vld [vmem:[%s3126_s0 + $0x1f0] ss:$12 sps:$4 sm:$0xff]  }
  0x24   :  { %2135 = vmatpush3.bf16.msra.mxu0 %v2395_v2  ;;  %347 = vmatprep.mubr.bf16.mxu0 %v2261_v25  ;;  %v2338_v25 = vld [vmem:[%s3126_s0 + $0x1ec] ss:$12 sps:$4 sm:$0xff]  }
  0x25   :  { %1914 = vmatpush3.bf16.msra.mxu1 %v2506_v20  ;;  %2136 = vmatprep.subr.bf16.mxu0 %v2362_v0 }
  0x26   :  { %1915 = vmatprep.subr.bf16.mxu1 %v2512_v21 }
  0x28   :  { %2137 = vmatpush3.bf16.msra.mxu0 %v2414_v5 }
  0x29   :  { %1916 = vmatpush3.bf16.msra.mxu1 %v2523_v22  ;;  %2166 = vmatprep.subr.bf16.mxu0 %v2362_v0 }
  0x2a   :  { %2123 = vmatmul.mubr.msk.bf16.gmra.mrb[16].mxu1 %vm285_vm1, %v2263_v26  ;;  %1968 = vmatprep.subr.bf16.mxu1 %v2388_v1  ;;  %v2339_v26 = vld [vmem:[%s3126_s0 + $0x1b8] ss:$12 sps:$4 sm:$0xff]  }
  0x2b   :  { %348 = vmatmul.mubr.bf16.gmra.mrb[4].mxu0 %v2264_v27  ;;  %2126 = vmatprep.mubr.msk.bf16.mxu1 %vm2363_vm0, %v2362_v0  ;;  %v2340_v27 = vld [vmem:[%s3126_s0 + $0x208] ss:$12 sps:$4 sm:$0xff]  }
  0x2c   :  { %355 = vmatprep.mubr.bf16.mxu0 %v2265_v28  ;;  %v2343_v28 = vld [vmem:[%s3126_s0 + $0x1d0] ss:$0 sps:$4 sm:$0x11]  }
  0x32   :  { %2127 = vmatmul.mubr.msk.bf16.gmra.mrb[20].mxu1 %vm285_vm1, %v2267_v29  ;;  %v2344_v29 = vld [vmem:[%s3126_s0 + $0x220] ss:$12 sps:$4 sm:$0xff]  }
  0x33   :  { %356 = vmatmul.mubr.bf16.gmra.mrb[8].mxu0 %v2268_v30  ;;  %2130 = vmatprep.mubr.msk.bf16.mxu1 %vm2363_vm0, %v2362_v0  ;;  %v2347_v30 = vld [vmem:[%s3126_s0 + $0x1dc] ss:$12 sps:$4 sm:$0xff]  }
  0x34   :  { %363 = vmatprep.mubr.bf16.mxu0 %v2269_v31  ;;  %v2348_v31 = vld [vmem:[%s3126_s0 + $0x238] ss:$12 sps:$4 sm:$0xff]  }
  0x3a   :  { %2131 = vmatmul.mubr.msk.bf16.gmra.mrb[24].mxu1 %vm285_vm1, %v2271_v32  ;;  %v2350_v32 = vld [vmem:[%s3126_s0 + $0x234] ss:$12 sps:$4 sm:$0xff]  }
  0x3b   :  { %364 = vmatmul.mubr.bf16.gmra.mrb[12].mxu0 %v2272_v33  ;;  %663 = vmatprep.mubr.bf16.mxu1 %v2275_v34  ;;  %v2351_v33 = vld [vmem:[%s3126_s0 + $0x1f4] ss:$12 sps:$4 sm:$0xff]   ;;  %v2352_v34 = vld [vmem:[%s3126_s0 + $0x250] ss:$12 sps:$4 sm:$0xff]  }
  0x3c   :  { %371 = vmatprep.mubr.bf16.mxu0 %v2276_v35  ;;  %v1777_v35 = vld [vmem:[%s3126_s0 + $0x264] sm:$0x11] }
  0x42   :  { %664 = vmatmul.mubr.bf16.vlgmr.msra.gmra.mrb[28].mxu1 %v2273_v36  ;;  %v2354_v36 = vld [vmem:[%s3126_s0 + $0x24c] ss:$12 sps:$4 sm:$0xff]  }
  0x43   :  { %372 = vmatmul.mubr.bf16.gmra.mrb[16].mxu0 %v2278_v37  ;;  %671 = vmatprep.mubr.bf16.mxu1 %v2279_v38  ;;  %v2355_v37 = vld [vmem:[%s3126_s0 + $0x20c] ss:$12 sps:$4 sm:$0xff]   ;;  %v1798_v38 = vcombine.high %v1777_v35, %v1777_v35 }
  0x44   :  { %379 = vmatprep.mubr.bf16.mxu0 %v2281_v39  ;;  %1969 = vmatpush3.bf16.msra.mxu1 %v2401_v3 }
  0x45   :  { %1970 = vmatprep.subr.bf16.mxu1 %v2407_v4 }
  0x48   :  { %1971 = vmatpush3.bf16.msra.mxu1 %v2420_v6 }
  0x49   :  { %1972 = vmatprep.subr.bf16.mxu1 %v2429_v8 }
  0x4a   :  { %672 = vmatmul.mubr.bf16.gmra.mrb[32].mxu1 %v2283_v40  ;;  %v1797_v40 = vcombine.low %v1777_v35, %v1777_v35 }
  0x4b   :  { %380 = vmatmul.mubr.bf16.gmra.mrb[20].mxu0 %v2284_v42  ;;  %679 = vmatprep.mubr.bf16.mxu1 %v2285_v43  ;;  %v2358_v42 = vld [vmem:[%s3126_s0 + $0x224] ss:$12 sps:$4 sm:$0xff]  }
  0x4c   :  { %387 = vmatprep.mubr.bf16.mxu0 %v1618_v44  ;;  %1973 = vmatpush3.bf16.msra.mxu1 %v2435_v9 }
  0x4d   :  { %1974 = vmatprep.subr.bf16.mxu1 %v2442_v10 }
  0x50   :  { %1975 = vmatpush3.bf16.msra.mxu1 %v2452_v11 }
  0x51   :  { %1976 = vmatprep.subr.bf16.mxu1 %v2459_v12 }
  0x52   :  { %680 = vmatmul.mubr.bf16.gmra.mrb[36].mxu1 %v2288_v45 }
  0x53   :  { %388 = vmatmul.mubr.bf16.gmra.mrb[24].mxu0 %v1617_v46  ;;  %687 = vmatprep.mubr.bf16.mxu1 %v2290_v47  ;;  %v2359_v46 = vld [vmem:[%s3126_s0 + $0x26c] ss:$0 sps:$4 sm:$0x11]  }
  0x54   :  { %2138 = vmatprep.mubr.msk.bf16.mxu0 %vm2363_vm0, %v2362_v0  ;;  %1977 = vmatpush3.bf16.msra.mxu1 %v2469_v14 }
  0x55   :  { %1978 = vmatprep.subr.bf16.mxu1 %v2476_v15 }
  0x58   :  { %1979 = vmatpush3.bf16.msra.mxu1 %v2482_v16 }
  0x59   :  { %1980 = vmatprep.subr.bf16.mxu1 %v2496_v18 }
  0x5a   :  { %688 = vmatmul.mubr.bf16.gmra.mrb[40].mxu1 %v2292_v48  ;;  %v2360_v48 = vld [vmem:[%s3126_s0 + $0x23c] ss:$12 sps:$4 sm:$0xff]  }
  0x5b   :  { %2139 = vmatmul.mubr.msk.bf16.vlgmr.msra.gmra.mrb[28].mxu0 %vm285_vm1, %v2293_v49  ;;  %695 = vmatprep.mubr.bf16.mxu1 %v2294_v50 }
  0x5c   :  { %2167 = vmatpush3.bf16.msra.mxu0 %v2395_v2  ;;  %2142 = vmatprep.mubr.msk.bf16.mxu0 %vm2363_vm0, %v2362_v0 }
  0x5d   :  { %1981 = vmatpush3.bf16.msra.mxu1 %v2506_v20  ;;  %2168 = vmatprep.subr.bf16.mxu0 %v2362_v0 }
  0x5e   :  { %1982 = vmatprep.subr.bf16.mxu1 %v2512_v21 }
  0x60   :  { %2169 = vmatpush3.bf16.msra.mxu0 %v2414_v5 }
  0x61   :  { %1983 = vmatpush3.bf16.msra.mxu1 %v2523_v22  ;;  %2198 = vmatprep.subr.bf16.mxu0 %v2362_v0 }
  0x62   :  { %696 = vmatmul.mubr.bf16.gmra.mrb[44].mxu1 %v2296_v51  ;;  %2035 = vmatprep.subr.bf16.mxu1 %v2388_v1  ;;  %v2311_v1 = vld [vmem:[%s3126_s0 + $0x150] ss:$12 sps:$4 sm:$0xff]  }
  0x63   :  { %2143 = vmatmul.mubr.msk.bf16.gmra.mrb[32].mxu0 %vm285_vm1, %v2297_v52  ;;  %703 = vmatprep.mubr.bf16.mxu1 %v2298_v53  ;;  %v2361_v53 = vld [vmem:[%s3126_s0 + $0x254] ss:$12 sps:$4 sm:$0xff]  }
  0x64   :  { %2146 = vmatprep.mubr.msk.bf16.mxu0 %vm2363_vm0, %v2362_v0 }
  0x6a   :  { %704 = vmatmul.mubr.bf16.gmra.mrb[48].mxu1 %v2300_v55 }
  0x6b   :  { %2147 = vmatmul.mubr.msk.bf16.gmra.mrb[36].mxu0 %vm285_vm1, %v2301_v56  ;;  %711 = vmatprep.mubr.bf16.mxu1 %v1690_v57 }
  0x6c   :  { %2150 = vmatprep.mubr.msk.bf16.mxu0 %vm2363_vm0, %v2362_v0 }
  0x72   :  { %712 = vmatmul.mubr.bf16.gmra.mrb[52].mxu1 %v1689_v58 }
  0x73   :  { %2151 = vmatmul.mubr.msk.bf16.gmra.mrb[40].mxu0 %vm285_vm1, %v2304_v59  ;;  %1000 = vmatprep.mubr.bf16.mxu1 %v2307_v60 }
  0x74   :  { %2154 = vmatprep.mubr.msk.bf16.mxu0 %vm2363_vm0, %v2362_v0 }
  0x7a   :  { %1001 = vmatmul.mubr.bf16.vlgmr.msra.gmra.mrb[56].mxu1 %v2305_v61 }
  0x7b   :  { %2155 = vmatmul.mubr.msk.bf16.gmra.mrb[44].mxu0 %vm285_vm1, %v2308_v62  ;;  %1008 = vmatprep.mubr.bf16.mxu1 %v2309_v63 }
  0x7c   :  { %2158 = vmatprep.mubr.msk.bf16.mxu0 %vm2363_vm0, %v2362_v0  ;;  %2036 = vmatpush3.bf16.msra.mxu1 %v2401_v3  ;;  %v2315_v3 = vld [vmem:[%s3126_s0 + $0x168] ss:$12 sps:$4 sm:$0xff]  }
  0x7d   :  { %2037 = vmatprep.subr.bf16.mxu1 %v2407_v4  ;;  %v2316_v4 = vld [vmem:[%s3126_s0 + $0x134] ss:$0 sps:$4 sm:$0x11]  }
  0x80   :  { %2038 = vmatpush3.bf16.msra.mxu1 %v2420_v6  ;;  %v2317_v6 = vld [vmem:[%s3126_s0 + $0x184] ss:$12 sps:$4 sm:$0xff]  }
  0x81   :  { %2039 = vmatprep.subr.bf16.mxu1 %v2429_v8  ;;  %v2319_v8 = vld [vmem:[%s3126_s0 + $0x180] ss:$12 sps:$4 sm:$0xff]  }
  0x82   :  { %1009 = vmatmul.mubr.bf16.gmra.mrb[60].mxu1 %v2311_v1 }
  0x83   :  { %2159 = vmatmul.mubr.msk.bf16.gmra.mrb[48].mxu0 %vm285_vm1, %v2312_v7  ;;  %1016 = vmatprep.mubr.bf16.mxu1 %v2313_v13 }
  0x84   :  { %2162 = vmatprep.mubr.msk.bf16.mxu0 %vm2363_vm0, %v2362_v0  ;;  %2040 = vmatpush3.bf16.msra.mxu1 %v2435_v9  ;;  %v2320_v9 = vld [vmem:[%s3126_s0 + $0x140] ss:$12 sps:$4 sm:$0xff]  }
  0x85   :  { %2041 = vmatprep.subr.bf16.mxu1 %v2442_v10  ;;  %v2321_v10 = vld [vmem:[%s3126_s0 + $0x19c] ss:$12 sps:$4 sm:$0xff]  }
  0x88   :  { %2042 = vmatpush3.bf16.msra.mxu1 %v2452_v11  ;;  %v2323_v11 = vld [vmem:[%s3126_s0 + $0x198] ss:$12 sps:$4 sm:$0xff]  }
  0x89   :  { %2043 = vmatprep.subr.bf16.mxu1 %v2459_v12  ;;  %v2324_v12 = vld [vmem:[%s3126_s0 + $0x158] ss:$12 sps:$4 sm:$0xff]  }
  0x8a   :  { %1017 = vmatmul.mubr.bf16.gmra.mrb[64].mxu1 %v2315_v3 }
  0x8b   :  { %2163 = vmatmul.mubr.msk.bf16.gmra.mrb[52].mxu0 %vm285_vm1, %v2316_v4  ;;  %1024 = vmatprep.mubr.bf16.mxu1 %v2317_v6 }
  0x8c   :  { %2170 = vmatprep.mubr.msk.bf16.mxu0 %vm2363_vm0, %v2362_v0  ;;  %2044 = vmatpush3.bf16.msra.mxu1 %v2469_v14  ;;  %v2325_v14 = vld [vmem:[%s3126_s0 + $0x1b4] ss:$12 sps:$4 sm:$0xff]  }
  0x8d   :  { %2045 = vmatprep.subr.bf16.mxu1 %v2476_v15  ;;  %v1723_v15 = vld [vmem:[%s3126_s0 + $0x1c8] sm:$0x11] }
  0x8e   :  { %v1743_v19 = vcombine.low %v1723_v15, %v1723_v15 }
  0x90   :  { %2046 = vmatpush3.bf16.msra.mxu1 %v2482_v16  ;;  %v2327_v16 = vld [vmem:[%s3126_s0 + $0x1b0] ss:$12 sps:$4 sm:$0xff]  }
  0x91   :  { %2047 = vmatprep.subr.bf16.mxu1 %v2496_v18  ;;  %v1744_v18 = vcombine.high %v1723_v15, %v1723_v15 }
  0x92   :  { %1025 = vmatmul.mubr.bf16.gmra.mrb[68].mxu1 %v2319_v8 }
  0x93   :  { %2171 = vmatmul.mubr.msk.bf16.vlgmr.msra.gmra.mrb[56].mxu0 %vm285_vm1, %v2320_v9  ;;  %1032 = vmatprep.mubr.bf16.mxu1 %v2321_v10 }
  0x94   :  { %2199 = vmatpush3.bf16.msra.mxu0 %v2395_v2  ;;  %2174 = vmatprep.mubr.msk.bf16.mxu0 %vm2363_vm0, %v2362_v0 }
  0x95   :  { %2048 = vmatpush3.bf16.msra.mxu1 %v2506_v20  ;;  %2200 = vmatprep.subr.bf16.mxu0 %v2362_v0  ;;  %v2331_v20 = vld [vmem:[%s3126_s0 + $0x188] ss:$12 sps:$4 sm:$0xff]  }
  0x96   :  { %2049 = vmatprep.subr.bf16.mxu1 %v2512_v21  ;;  %v2334_v21 = vld [vmem:[%s3126_s0 + $0x1d8] ss:$12 sps:$4 sm:$0xff]  }
  0x98   :  { %2201 = vmatpush3.bf16.msra.mxu0 %v2414_v5 }
  0x99   :  { %2050 = vmatpush3.bf16.msra.mxu1 %v2523_v22  ;;  %v2332_v22 = vld [vmem:[%s3126_s0 + $0x1d4] ss:$12 sps:$4 sm:$0xff]  }
  0x9a   :  { %1033 = vmatmul.mubr.bf16.gmra.mrb[72].mxu1 %v2323_v11  ;;  %2230 = vmatprep.subr.bf16.mxu1 %v2362_v0 }
  0x9b   :  { %2175 = vmatmul.mubr.msk.bf16.gmra.mrb[60].mxu0 %vm285_vm1, %v2324_v12  ;;  %1040 = vmatprep.mubr.bf16.mxu1 %v2325_v14 }
  0x9c   :  { %2178 = vmatprep.mubr.msk.bf16.mxu0 %vm2363_vm0, %v2362_v0 }
  0xa2   :  { %1041 = vmatmul.mubr.bf16.gmra.mrb[76].mxu1 %v2327_v16 }
  0xa3   :  { %2179 = vmatmul.mubr.msk.bf16.gmra.mrb[64].mxu0 %vm285_vm1, %v2328_v17  ;;  %1048 = vmatprep.mubr.bf16.mxu1 %v1744_v18 }
  0xa4   :  { %2182 = vmatprep.mubr.msk.bf16.mxu0 %vm2363_vm0, %v2362_v0 }
  0xaa   :  { %1049 = vmatmul.mubr.bf16.gmra.mrb[80].mxu1 %v1743_v19 }
  0xab   :  { %2183 = vmatmul.mubr.msk.bf16.gmra.mrb[68].mxu0 %vm285_vm1, %v2331_v20  ;;  %1337 = vmatprep.mubr.bf16.mxu1 %v2334_v21 }
  0xac   :  { %2186 = vmatprep.mubr.msk.bf16.mxu0 %vm2363_vm0, %v2362_v0 }
  0xb2   :  { %1338 = vmatmul.mubr.bf16.vlgmr.msra.gmra.mrb[84].mxu1 %v2332_v22 }
  0xb3   :  { %2187 = vmatmul.mubr.msk.bf16.gmra.mrb[72].mxu0 %vm285_vm1, %v2335_v23  ;;  %1345 = vmatprep.mubr.bf16.mxu1 %v2336_v24 }
  0xb4   :  { %2190 = vmatprep.mubr.msk.bf16.mxu0 %vm2363_vm0, %v2362_v0  ;;  %2232 = vmatpush3.bf16.msra.mxu1 %v2395_v2  ;;  %v2342_v2 = vld [vmem:[%s3126_s0 + $0x204] ss:$12 sps:$4 sm:$0xff]  }
  0xb5   :  { %2231 = vmatprep.subr.bf16.mxu1 %v2362_v0 }
  0xb8   :  { %2233 = vmatpush3.bf16.msra.mxu1 %v2414_v5  ;;  %v2346_v5 = vld [vmem:[%s3126_s0 + $0x21c] ss:$12 sps:$4 sm:$0xff]  }
  0xba   :  { %1346 = vmatmul.mubr.bf16.gmra.mrb[88].mxu1 %v2338_v25 }
  0xbb   :  { %2191 = vmatmul.mubr.msk.bf16.gmra.mrb[76].mxu0 %vm285_vm1, %v2339_v26  ;;  %1353 = vmatprep.mubr.bf16.mxu1 %v2340_v27 }
  0xbc   :  { %2194 = vmatprep.mubr.msk.bf16.mxu0 %vm2363_vm0, %v2362_v0 }
  0xc2   :  { %1354 = vmatmul.mubr.bf16.gmra.mrb[92].mxu1 %v2342_v2 }
  0xc3   :  { %2195 = vmatmul.mubr.msk.bf16.gmra.mrb[80].mxu0 %vm285_vm1, %v2343_v28  ;;  %1361 = vmatprep.mubr.bf16.mxu1 %v2344_v29 }
  0xc4   :  { %2202 = vmatprep.mubr.msk.bf16.mxu0 %vm2363_vm0, %v2362_v0 }
  0xca   :  { %1362 = vmatmul.mubr.bf16.gmra.mrb[96].mxu1 %v2346_v5 }
  0xcb   :  { %2203 = vmatmul.mubr.msk.bf16.vlgmr.msra.gmra.mrb[84].mxu0 %vm285_vm1, %v2347_v30  ;;  %1369 = vmatprep.mubr.bf16.mxu1 %v2348_v31 }
  0xcc   :  { %2206 = vmatprep.mubr.msk.bf16.mxu0 %vm2363_vm0, %v2362_v0 }
  0xd2   :  { %1370 = vmatmul.mubr.bf16.gmra.mrb[100].mxu1 %v2350_v32 }
  0xd3   :  { %2207 = vmatmul.mubr.msk.bf16.gmra.mrb[88].mxu0 %vm285_vm1, %v2351_v33  ;;  %1377 = vmatprep.mubr.bf16.mxu1 %v2352_v34 }
  0xd4   :  { %2210 = vmatprep.mubr.msk.bf16.mxu0 %vm2363_vm0, %v2362_v0 }
  0xda   :  { %1378 = vmatmul.mubr.bf16.gmra.mrb[104].mxu1 %v2354_v36 }
  0xdb   :  { %2211 = vmatmul.mubr.msk.bf16.gmra.mrb[92].mxu0 %vm285_vm1, %v2355_v37  ;;  %1385 = vmatprep.mubr.bf16.mxu1 %v1798_v38 }
  0xdc   :  { %2214 = vmatprep.mubr.msk.bf16.mxu0 %vm2363_vm0, %v2362_v0 }
  0xdd   :  { %v429_v39 = vpop.f32.mrb[0].mxu1 }
  0xde   :  { %v2108_v41 = vpop.f32.mrb[1].mxu1 }
  0xdf   :  { %v432_v43 = vpop.f32.mrb[2].mxu1 }
  0xe0   :  { %v2109_v44 = vpop.f32.mrb[3].mxu1 }
  0xe2   :  { %1386 = vmatmul.mubr.bf16.gmra.mrb[108].mxu1 %v1797_v40 }
  0xe3   :  { %2215 = vmatmul.mubr.msk.bf16.gmra.mrb[96].mxu0 %vm285_vm1, %v2358_v42  ;;  %2226 = vmatprep.mubr.msk.bf16.mxu1 %vm2363_vm0, %v2362_v0 }
  0xe4   :  { %2218 = vmatprep.mubr.msk.bf16.mxu0 %vm2363_vm0, %v2362_v0 }
  0xe5   :  { %v437_v45 = vpop.f32.mrb[4].mxu1 }
  0xe6   :  { %v2112_v47 = vpop.f32.mrb[5].mxu1 }
  0xe7   :  { %v440_v49 = vpop.f32.mrb[6].mxu1 }
  0xe8   :  { %v2113_v50 = vpop.f32.mrb[7].mxu1 }
  0xea   :  { %2227 = vmatmul.mubr.msk.bf16.vlgmr.msra.gmra.mrb[112].mxu1 %vm285_vm1, %v2359_v46 }
  0xeb   :  { %2219 = vmatmul.mubr.msk.bf16.gmra.mrb[100].mxu0 %vm285_vm1, %v2360_v48 }
  0xec   :  { %2222 = vmatprep.mubr.msk.bf16.mxu0 %vm2363_vm0, %v2362_v0 }
  0xed   :  { %v445_v51 = vpop.f32.mrb[8].mxu1 }
  0xee   :  { %v2116_v52 = vpop.f32.mrb[9].mxu1 }
  0xef   :  { %v448_v54 = vpop.f32.mrb[10].mxu1 }
  0xf0   :  { %v2117_v55 = vpop.f32.mrb[11].mxu1 }
  0xf3   :  { %2223 = vmatmul.mubr.msk.bf16.gmra.mrb[104].mxu0 %vm285_vm1, %v2361_v53 }
  0xf5   :  { %v453_v56 = vpop.f32.mrb[12].mxu1 }
  0xf6   :  { %v1850_v57 = vpop.f32.mrb[0].mxu0  ;;  %v2120_v58 = vpop.f32.mrb[13].mxu1 }
  0xf7   :  { %v1851_v59 = vpop.f32.mrb[1].mxu0  ;;  %v456_v60 = vpop.f32.mrb[14].mxu1 }
  0xf8   :  { %v1852_v61 = vadd.f32 %v1851_v59, %v1850_v57  ;;  %v1853_v62 = vpop.f32.mrb[2].mxu0  ;;  %v2121_v63 = vpop.f32.mrb[15].mxu1 }
  0xf9   :  { %v1854_v1 = vpop.f32.mrb[3].mxu0 }
  0xfa   :  { %v2882_v0 = vadd.f32 %v1852_v61, %v429_v39  ;;  %v1855_v7 = vadd.f32 %v1854_v1, %v1853_v62 }
  0xfc   :  { %v2884_v13 = vadd.f32 %v1855_v7, %v432_v43 }
  0xfd   :  { %v461_v3 = vpop.f32.mrb[16].mxu1 }
  0xfe   :  { %v1856_v4 = vpop.f32.mrb[4].mxu0  ;;  %v2124_v6 = vpop.f32.mrb[17].mxu1 }
  0xff   :  { %v1857_v8 = vpop.f32.mrb[5].mxu0  ;;  %v464_v9 = vpop.f32.mrb[18].mxu1 }
 0x100   :  { %v1858_v10 = vadd.f32 %v1857_v8, %v1856_v4  ;;  %v1859_v11 = vpop.f32.mrb[6].mxu0  ;;  %v2125_v12 = vpop.f32.mrb[19].mxu1 }
 0x101   :  { %v1860_v14 = vpop.f32.mrb[7].mxu0 }
 0x102   :  { %v2886_v15 = vadd.f32 %v1858_v10, %v437_v45  ;;  %v1861_v16 = vadd.f32 %v1860_v14, %v1859_v11 }
 0x104   :  { %v2888_v17 = vadd.f32 %v1861_v16, %v440_v49 }
 0x105   :  { %v469_v18 = vpop.f32.mrb[20].mxu1 }
 0x106   :  { %v1862_v19 = vpop.f32.mrb[8].mxu0  ;;  %v2128_v20 = vpop.f32.mrb[21].mxu1 }
 0x107   :  { %v1863_v21 = vpop.f32.mrb[9].mxu0  ;;  %v472_v22 = vpop.f32.mrb[22].mxu1 }
 0x108   :  { %v1864_v23 = vadd.f32 %v1863_v21, %v1862_v19  ;;  %v1865_v24 = vpop.f32.mrb[10].mxu0  ;;  %v2129_v25 = vpop.f32.mrb[23].mxu1 }
 0x109   :  { %v1866_v26 = vpop.f32.mrb[11].mxu0 }
 0x10a   :  { %v2890_v27 = vadd.f32 %v1864_v23, %v445_v51  ;;  %v1867_v2 = vadd.f32 %v1866_v26, %v1865_v24 }
 0x10c   :  { %v2892_v28 = vadd.f32 %v1867_v2, %v448_v54 }
 0x10d   :  { %v477_v29 = vpop.f32.mrb[24].mxu1 }
 0x10e   :  { %v1868_v5 = vpop.f32.mrb[12].mxu0  ;;  %v2132_v30 = vpop.f32.mrb[25].mxu1 }
 0x10f   :  { %v1869_v31 = vpop.f32.mrb[13].mxu0  ;;  %v480_v32 = vpop.f32.mrb[26].mxu1 }
 0x110   :  { %v1870_v33 = vadd.f32 %v1869_v31, %v1868_v5  ;;  %v1871_v34 = vpop.f32.mrb[14].mxu0  ;;  %v2133_v35 = vpop.f32.mrb[27].mxu1 }
 0x111   :  { %v1872_v36 = vpop.f32.mrb[15].mxu0 }
 0x112   :  { %v2894_v37 = vadd.f32 %v1870_v33, %v453_v56  ;;  %v1873_v38 = vadd.f32 %v1872_v36, %v1871_v34 }
 0x114   :  { %v2896_v39 = vadd.f32 %v1873_v38, %v456_v60 }
 0x115   :  { %v1917_v40 = vpop.f32.mrb[28].mxu1 }
 0x116   :  { %v1874_v41 = vpop.f32.mrb[16].mxu0  ;;  %v1918_v42 = vpop.f32.mrb[29].mxu1 }
 0x117   :  { %v1875_v43 = vpop.f32.mrb[17].mxu0  ;;  %v1919_v44 = vadd.f32 %v1918_v42, %v1917_v40  ;;  %v1920_v45 = vpop.f32.mrb[30].mxu1 }
 0x118   :  { %v1876_v46 = vadd.f32 %v1875_v43, %v1874_v41  ;;  %v1877_v47 = vpop.f32.mrb[18].mxu0  ;;  %v1921_v48 = vpop.f32.mrb[31].mxu1 }
 0x119   :  { %v1878_v49 = vpop.f32.mrb[19].mxu0  ;;  %v1922_v50 = vadd.f32 %v1921_v48, %v1920_v45 }
 0x11a   :  { %v2898_v51 = vadd.f32 %v1876_v46, %v461_v3  ;;  %v1879_v52 = vadd.f32 %v1878_v49, %v1877_v47 }
 0x11c   :  { %v2900_v53 = vadd.f32 %v1879_v52, %v464_v9 }
 0x11d   :  { %v1923_v54 = vpop.f32.mrb[32].mxu1 }
 0x11e   :  { %v1880_v55 = vpop.f32.mrb[20].mxu0  ;;  %v1924_v56 = vpop.f32.mrb[33].mxu1 }
 0x11f   :  { %v1881_v57 = vpop.f32.mrb[21].mxu0  ;;  %v1925_v58 = vadd.f32 %v1924_v56, %v1923_v54  ;;  %v1926_v59 = vpop.f32.mrb[34].mxu1 }
 0x120   :  { %v1882_v60 = vadd.f32 %v1881_v57, %v1880_v55  ;;  %v1883_v61 = vpop.f32.mrb[22].mxu0  ;;  %v1927_v62 = vpop.f32.mrb[35].mxu1 }
 0x121   :  { %v1884_v63 = vpop.f32.mrb[23].mxu0  ;;  %v1928_v1 = vadd.f32 %v1927_v62, %v1926_v59 }
 0x122   :  { %v2902_v7 = vadd.f32 %v1882_v60, %v469_v18  ;;  %v1885_v4 = vadd.f32 %v1884_v63, %v1883_v61 }
 0x124   :  { %v2904_v6 = vadd.f32 %v1885_v4, %v472_v22 }
 0x125   :  { %v1929_v3 = vpop.f32.mrb[36].mxu1 }
 0x126   :  { %v1886_v8 = vpop.f32.mrb[24].mxu0  ;;  %v1930_v9 = vpop.f32.mrb[37].mxu1 }
 0x127   :  { %v1887_v10 = vpop.f32.mrb[25].mxu0  ;;  %v1931_v11 = vadd.f32 %v1930_v9, %v1929_v3  ;;  %v1932_v12 = vpop.f32.mrb[38].mxu1 }
 0x128   :  { %v1888_v14 = vadd.f32 %v1887_v10, %v1886_v8  ;;  %v1889_v16 = vpop.f32.mrb[26].mxu0  ;;  %v1933_v19 = vpop.f32.mrb[39].mxu1 }
 0x129   :  { %v1890_v20 = vpop.f32.mrb[27].mxu0  ;;  %v1934_v21 = vadd.f32 %v1933_v19, %v1932_v12 }
 0x12a   :  { %v2906_v23 = vadd.f32 %v1888_v14, %v477_v29 }
 0x12d   :  { %v1935_v24 = vpop.f32.mrb[40].mxu1 }
 0x12e   :  { %v753_v25 = vpop.f32.mrb[28].mxu0  ;;  %v1936_v18 = vpop.f32.mrb[41].mxu1 }
 0x12f   :  { %v2908_v26 = vadd.f32 %v1919_v44, %v753_v25  ;;  %v2140_v22 = vpop.f32.mrb[29].mxu0  ;;  %v1937_v2 = vadd.f32 %v1936_v18, %v1935_v24  ;;  %v1938_v5 = vpop.f32.mrb[42].mxu1 }
 0x130   :  { %v756_v30 = vpop.f32.mrb[30].mxu0  ;;  %v1939_v31 = vpop.f32.mrb[43].mxu1 }
 0x131   :  { %v807_v32 = vmax.f32 %v2882_v0, %v2908_v26  ;;  %v2912_v33 = vadd.f32 %v1922_v50, %v756_v30  ;;  %v2141_v34 = vpop.f32.mrb[31].mxu0  ;;  %v1940_v35 = vadd.f32 %v1939_v31, %v1938_v5 }
 0x133   :  { %v808_v29 = vmax.f32 %v2884_v13, %v2912_v33 }
 0x135   :  { %v1941_v36 = vpop.f32.mrb[44].mxu1 }
 0x136   :  { %v761_v38 = vpop.f32.mrb[32].mxu0  ;;  %v1942_v40 = vpop.f32.mrb[45].mxu1 }
 0x137   :  { %v2916_v41 = vadd.f32 %v1925_v58, %v761_v38  ;;  %v2144_v42 = vpop.f32.mrb[33].mxu0  ;;  %v1943_v43 = vadd.f32 %v1942_v40, %v1941_v36  ;;  %v1944_v44 = vpop.f32.mrb[46].mxu1 }
 0x138   :  { %v764_v45 = vpop.f32.mrb[34].mxu0  ;;  %v1945_v46 = vpop.f32.mrb[47].mxu1 }
 0x139   :  { %v809_v47 = vmax.f32 %v2886_v15, %v2916_v41  ;;  %v2920_v48 = vadd.f32 %v1928_v1, %v764_v45  ;;  %v2145_v49 = vpop.f32.mrb[35].mxu0  ;;  %v1946_v50 = vadd.f32 %v1945_v46, %v1944_v44 }
 0x13b   :  { %v810_v52 = vmax.f32 %v2888_v17, %v2920_v48 }
 0x13d   :  { %v1947_v54 = vpop.f32.mrb[48].mxu1 }
 0x13e   :  { %v769_v55 = vpop.f32.mrb[36].mxu0  ;;  %v1948_v56 = vpop.f32.mrb[49].mxu1 }
 0x13f   :  { %v2924_v57 = vadd.f32 %v1931_v11, %v769_v55  ;;  %v2148_v58 = vpop.f32.mrb[37].mxu0  ;;  %v1949_v59 = vadd.f32 %v1948_v56, %v1947_v54  ;;  %v1950_v60 = vpop.f32.mrb[50].mxu1 }
 0x140   :  { %v772_v61 = vpop.f32.mrb[38].mxu0  ;;  %v1951_v62 = vpop.f32.mrb[51].mxu1 }
 0x141   :  { %v811_v63 = vmax.f32 %v2890_v27, %v2924_v57  ;;  %v2928_v1 = vadd.f32 %v1934_v21, %v772_v61  ;;  %v2149_v4 = vpop.f32.mrb[39].mxu0  ;;  %v1952_v3 = vadd.f32 %v1951_v62, %v1950_v60 }
 0x143   :  { %v812_v8 = vmax.f32 %v2892_v28, %v2928_v1 }
 0x145   :  { %v1953_v9 = vpop.f32.mrb[52].mxu1 }
 0x146   :  { %v777_v10 = vpop.f32.mrb[40].mxu0  ;;  %v1954_v12 = vpop.f32.mrb[53].mxu1 }
 0x147   :  { %v2932_v11 = vadd.f32 %v1937_v2, %v777_v10  ;;  %v2152_v14 = vpop.f32.mrb[41].mxu0  ;;  %v1955_v16 = vadd.f32 %v1954_v12, %v1953_v9  ;;  %v1956_v19 = vpop.f32.mrb[54].mxu1 }
 0x148   :  { %v780_v20 = vpop.f32.mrb[42].mxu0  ;;  %v1957_v24 = vpop.f32.mrb[55].mxu1 }
 0x149   :  { %v813_v25 = vmax.f32 %v2894_v37, %v2932_v11  ;;  %v2936_v21 = vadd.f32 %v1940_v35, %v780_v20  ;;  %v2153_v18 = vpop.f32.mrb[43].mxu0 }
 0x14b   :  { %v814_v22 = vmax.f32 %v2896_v39, %v2936_v21 }
 0x14d   :  { %v1984_v5 = vpop.f32.mrb[56].mxu1 }
 0x14e   :  { %v785_v30 = vpop.f32.mrb[44].mxu0  ;;  %v1985_v31 = vpop.f32.mrb[57].mxu1 }
 0x14f   :  { %v2940_v34 = vadd.f32 %v1943_v43, %v785_v30  ;;  %v2156_v2 = vpop.f32.mrb[45].mxu0  ;;  %v1986_v36 = vadd.f32 %v1985_v31, %v1984_v5  ;;  %v1987_v38 = vpop.f32.mrb[58].mxu1 }
 0x150   :  { %v788_v40 = vpop.f32.mrb[46].mxu0  ;;  %v1988_v42 = vpop.f32.mrb[59].mxu1 }
 0x151   :  { %v815_v44 = vmax.f32 %v2898_v51, %v2940_v34  ;;  %v2944_v45 = vadd.f32 %v1946_v50, %v788_v40  ;;  %v2157_v35 = vpop.f32.mrb[47].mxu0  ;;  %v1989_v46 = vadd.f32 %v1988_v42, %v1987_v38 }
 0x153   :  { %v816_v49 = vmax.f32 %v2900_v53, %v2944_v45 }
 0x155   :  { %v1990_v54 = vpop.f32.mrb[60].mxu1 }
 0x156   :  { %v793_v55 = vpop.f32.mrb[48].mxu0  ;;  %v1991_v56 = vpop.f32.mrb[61].mxu1 }
 0x157   :  { %v2948_v43 = vadd.f32 %v1949_v59, %v793_v55  ;;  %v2160_v58 = vpop.f32.mrb[49].mxu0  ;;  %v1992_v60 = vadd.f32 %v1991_v56, %v1990_v54  ;;  %v1993_v61 = vpop.f32.mrb[62].mxu1 }
 0x158   :  { %v796_v62 = vpop.f32.mrb[50].mxu0  ;;  %v1994_v4 = vpop.f32.mrb[63].mxu1 }
 0x159   :  { %v817_v9 = vmax.f32 %v2902_v7, %v2948_v43  ;;  %v2952_v50 = vadd.f32 %v1952_v3, %v796_v62  ;;  %v2161_v10 = vpop.f32.mrb[51].mxu0  ;;  %v1995_v12 = vadd.f32 %v1994_v4, %v1993_v61 }
 0x15b   :  { %v818_v14 = vmax.f32 %v2904_v6, %v2952_v50 }
 0x15d   :  { %v1996_v19 = vpop.f32.mrb[64].mxu1 }
 0x15e   :  { %v801_v20 = vpop.f32.mrb[52].mxu0  ;;  %v1997_v24 = vpop.f32.mrb[65].mxu1 }
 0x15f   :  { %v2956_v59 = vadd.f32 %v1955_v16, %v801_v20  ;;  %v2164_v18 = vpop.f32.mrb[53].mxu0  ;;  %v1998_v5 = vadd.f32 %v1997_v24, %v1996_v19  ;;  %v1999_v30 = vpop.f32.mrb[66].mxu1 }
 0x160   :  { %v804_v31 = vpop.f32.mrb[54].mxu0  ;;  %v2000_v2 = vpop.f32.mrb[67].mxu1 }
 0x161   :  { %v819_v38 = vmax.f32 %v2906_v23, %v2956_v59  ;;  %v2165_v3 = vpop.f32.mrb[55].mxu0  ;;  %v2001_v40 = vadd.f32 %v2000_v2, %v1999_v30 }
 0x165   :  { %v2002_v42 = vpop.f32.mrb[68].mxu1 }
 0x166   :  { %v1090_v35 = vpop.f32.mrb[56].mxu0  ;;  %v2003_v54 = vpop.f32.mrb[69].mxu1 }
 0x167   :  { %v1091_v55 = vadd.f32 %v1986_v36, %v1090_v35  ;;  %v2172_v56 = vpop.f32.mrb[57].mxu0  ;;  %v2004_v58 = vadd.f32 %v2003_v54, %v2002_v42  ;;  %v2005_v61 = vpop.f32.mrb[70].mxu1 }
 0x168   :  { %v1093_v62 = vpop.f32.mrb[58].mxu0  ;;  %v2006_v16 = vpop.f32.mrb[71].mxu1 }
 0x169   :  { %v2963_v4 = vmax.f32 %v807_v32, %v1091_v55  ;;  %v1094_v10 = vadd.f32 %v1989_v46, %v1093_v62  ;;  %v2173_v19 = vpop.f32.mrb[59].mxu0  ;;  %v2007_v20 = vadd.f32 %v2006_v16, %v2005_v61 }
 0x16b   :  { %v2968_v24 = vmax.f32 %v808_v29, %v1094_v10 }
 0x16d   :  { %v2008_v18 = vpop.f32.mrb[72].mxu1 }
 0x16e   :  { %v1098_v36 = vpop.f32.mrb[60].mxu0  ;;  %v2009_v30 = vpop.f32.mrb[73].mxu1 }
 0x16f   :  { %v1099_v31 = vadd.f32 %v1992_v60, %v1098_v36  ;;  %v2176_v2 = vpop.f32.mrb[61].mxu0  ;;  %v2010_v3 = vadd.f32 %v2009_v30, %v2008_v18  ;;  %v2011_v42 = vpop.f32.mrb[74].mxu1 }
 0x170   :  { %v1101_v35 = vpop.f32.mrb[62].mxu0  ;;  %v2012_v54 = vpop.f32.mrb[75].mxu1 }
 0x171   :  { %v2973_v0 = vmax.f32 %v809_v47, %v1099_v31  ;;  %v1102_v26 = vadd.f32 %v1995_v12, %v1101_v35  ;;  %v2177_v32 = vpop.f32.mrb[63].mxu0  ;;  %v2013_v46 = vadd.f32 %v2012_v54, %v2011_v42 }
 0x173   :  { %v2978_v13 = vmax.f32 %v810_v52, %v1102_v26 }
 0x175   :  { %v2014_v33 = vpop.f32.mrb[76].mxu1 }
 0x176   :  { %v1106_v29 = vpop.f32.mrb[64].mxu0  ;;  %v2015_v60 = vpop.f32.mrb[77].mxu1 }
 0x177   :  { %v1107_v55 = vadd.f32 %v1998_v5, %v1106_v29  ;;  %v2180_v56 = vpop.f32.mrb[65].mxu0  ;;  %v2016_v61 = vadd.f32 %v2015_v60, %v2014_v33  ;;  %v2017_v62 = vpop.f32.mrb[78].mxu1 }
 0x178   :  { %v1109_v16 = vpop.f32.mrb[66].mxu0  ;;  %v2018_v10 = vpop.f32.mrb[79].mxu1 }
 0x179   :  { %v2983_v15 = vmax.f32 %v811_v63, %v1107_v55  ;;  %v1110_v41 = vadd.f32 %v2001_v40, %v1109_v16  ;;  %v2181_v47 = vpop.f32.mrb[67].mxu0  ;;  %v2019_v12 = vadd.f32 %v2018_v10, %v2017_v62 }
 0x17b   :  { %v2988_v17 = vmax.f32 %v812_v8, %v1110_v41 }
 0x17d   :  { %v2020_v48 = vpop.f32.mrb[80].mxu1 }
 0x17e   :  { %v1114_v52 = vpop.f32.mrb[68].mxu0  ;;  %v2021_v5 = vpop.f32.mrb[81].mxu1 }
 0x17f   :  { %v1115_v19 = vadd.f32 %v2004_v58, %v1114_v52  ;;  %v2184_v18 = vpop.f32.mrb[69].mxu0  ;;  %v2022_v36 = vadd.f32 %v2021_v5, %v2020_v48  ;;  %v2023_v30 = vpop.f32.mrb[82].mxu1 }
 0x180   :  { %v1117_v31 = vpop.f32.mrb[70].mxu0  ;;  %v2024_v2 = vpop.f32.mrb[83].mxu1 }
 0x181   :  { %v2993_v27 = vmax.f32 %v813_v25, %v1115_v19  ;;  %v1118_v57 = vadd.f32 %v2007_v20, %v1117_v31  ;;  %v2185_v63 = vpop.f32.mrb[71].mxu0 }
 0x183   :  { %v2998_v28 = vmax.f32 %v814_v22, %v1118_v57 }
 0x185   :  { %v2051_v1 = vpop.f32.mrb[84].mxu1 }
 0x186   :  { %v1122_v8 = vpop.f32.mrb[72].mxu0  ;;  %v2052_v40 = vpop.f32.mrb[85].mxu1 }
 0x187   :  { %v1123_v58 = vadd.f32 %v2010_v3, %v1122_v8  ;;  %v2188_v42 = vpop.f32.mrb[73].mxu0  ;;  %v2053_v35 = vadd.f32 %v2052_v40, %v2051_v1  ;;  %v2054_v54 = vpop.f32.mrb[86].mxu1 }
 0x188   :  { %v1125_v26 = vpop.f32.mrb[74].mxu0  ;;  %v2055_v32 = vpop.f32.mrb[87].mxu1 }
 0x189   :  { %v3003_v37 = vmax.f32 %v815_v44, %v1123_v58  ;;  %v1126_v11 = vadd.f32 %v2013_v46, %v1125_v26  ;;  %v2189_v25 = vpop.f32.mrb[75].mxu0  ;;  %v2056_v20 = vadd.f32 %v2055_v32, %v2054_v54 }
 0x18b   :  { %v3008_v39 = vmax.f32 %v816_v49, %v1126_v11 }
 0x18d   :  { %v2057_v21 = vpop.f32.mrb[88].mxu1 }
 0x18e   :  { %v1130_v22 = vpop.f32.mrb[76].mxu0  ;;  %v2058_v3 = vpop.f32.mrb[89].mxu1 }
 0x18f   :  { %v1131_v33 = vadd.f32 %v2016_v61, %v1130_v22  ;;  %v2192_v29 = vpop.f32.mrb[77].mxu0  ;;  %v2059_v60 = vadd.f32 %v2058_v3, %v2057_v21  ;;  %v2060_v55 = vpop.f32.mrb[90].mxu1 }
 0x190   :  { %v1133_v56 = vpop.f32.mrb[78].mxu0  ;;  %v2061_v62 = vpop.f32.mrb[91].mxu1 }
 0x191   :  { %v3013_v51 = vmax.f32 %v817_v9, %v1131_v33  ;;  %v1134_v34 = vadd.f32 %v2019_v12, %v1133_v56  ;;  %v2193_v44 = vpop.f32.mrb[79].mxu0  ;;  %v2062_v46 = vadd.f32 %v2061_v62, %v2060_v55 }
 0x193   :  { %v3018_v53 = vmax.f32 %v818_v14, %v1134_v34 }
 0x195   :  { %v2063_v45 = vpop.f32.mrb[92].mxu1 }
 0x196   :  { %v1138_v49 = vpop.f32.mrb[80].mxu0  ;;  %v2064_v61 = vpop.f32.mrb[93].mxu1 }
 0x197   :  { %v1139_v16 = vadd.f32 %v2022_v36, %v1138_v49  ;;  %v2196_v10 = vpop.f32.mrb[81].mxu0  ;;  %v2065_v41 = vadd.f32 %v2064_v61, %v2063_v45  ;;  %v2066_v47 = vpop.f32.mrb[94].mxu1  ;;  %v3030_v36 = vld [vmem:[%s3127_s2] ss:$0 sm:$0xff] }
 0x198   :  { %v1141_v48 = vpop.f32.mrb[82].mxu0  ;;  %v2067_v52 = vpop.f32.mrb[95].mxu1 }
 0x199   :  { %v3023_v7 = vmax.f32 %v819_v38, %v1139_v16  ;;  %v2197_v43 = vpop.f32.mrb[83].mxu0  ;;  %v2068_v9 = vadd.f32 %v2067_v52, %v2066_v47 }
 0x19d   :  { %v2069_v12 = vpop.f32.mrb[96].mxu1 }
 0x19e   :  { %v1427_v6 = vpop.f32.mrb[84].mxu0  ;;  %v2070_v50 = vpop.f32.mrb[97].mxu1 }
 0x19f   :  { %v1428_v14 = vadd.f32 %v2053_v35, %v1427_v6  ;;  %v2204_v5 = vpop.f32.mrb[85].mxu0  ;;  %v3025_v19 = vadd.f32 %v2070_v50, %v2069_v12  ;;  %v2072_v18 = vpop.f32.mrb[98].mxu1 }
 0x1a0   :  { %v1430_v30 = vpop.f32.mrb[86].mxu0  ;;  %v2073_v31 = vpop.f32.mrb[99].mxu1 }
 0x1a1   :  { %v1481_v23 = vmax.f32 %v2963_v4, %v1428_v14  ;;  %v1431_v59 = vadd.f32 %v2056_v20, %v1430_v30  ;;  %v2205_v38 = vpop.f32.mrb[87].mxu0  ;;  %v3033_v2 = vadd.f32 %v2073_v31, %v2072_v18 }
 0x1a3   :  { %v1501_v57 = vadd.f32 %v3030_v36, %v1481_v23  ;;  %v1482_v63 = vmax.f32 %v2968_v24, %v1431_v59 }
 0x1a5   :  { %v1514_v1 = vmax.f32 %v1501_v57, 0.0  ;;  %v1502_v8 = vadd.f32 %v3030_v36, %v1482_v63  ;;  %v2075_v40 = vpop.f32.mrb[100].mxu1 }
 0x1a6   :  { %v1435_v58 = vpop.f32.mrb[88].mxu0  ;;  %v2076_v42 = vpop.f32.mrb[101].mxu1 }
 0x1a7   :  { %v1821_v35 = vpack.c.bf16 %v1514_v1, %v1514_v1  ;;  %v1515_v54 = vmax.f32 %v1502_v8, 0.0  ;;  %v1436_v26 = vadd.f32 %v2059_v60, %v1435_v58  ;;  %v2208_v32 = vpop.f32.mrb[89].mxu0  ;;  %v3038_v4 = vadd.f32 %v2076_v42, %v2075_v40  ;;  %v2078_v11 = vpop.f32.mrb[102].mxu1 }
 0x1a8   :  { %v1438_v25 = vpop.f32.mrb[90].mxu0  ;;  %v2079_v20 = vpop.f32.mrb[103].mxu1 }
 0x1a9   :  { %1581 = vst.msk [vmem:[%s3128_s3] sm:$0xf] %vm1580_vm2, %v1821_v35  ;;  %v1822_v24 = vpack.c.bf16 %v1515_v54, %v1515_v54  ;;  %v1483_v21 = vmax.f32 %v2973_v0, %v1436_v26  ;;  %v1439_v22 = vadd.f32 %v2062_v46, %v1438_v25  ;;  %v2209_v3 = vpop.f32.mrb[91].mxu0  ;;  %v3045_v33 = vadd.f32 %v2079_v20, %v2078_v11 }
 0x1ab   :  { %1582 = vst.msk [vmem:[%s3128_s3 + $0x4] sm:$0xf] %vm1580_vm2, %v1822_v24  ;;  %v1503_v29 = vadd.f32 %v3030_v36, %v1483_v21  ;;  %v1484_v60 = vmax.f32 %v2978_v13, %v1439_v22 }
 0x1ad   :  { %v1516_v55 = vmax.f32 %v1503_v29, 0.0  ;;  %v1504_v56 = vadd.f32 %v3030_v36, %v1484_v60  ;;  %v2081_v62 = vpop.f32.mrb[104].mxu1 }
 0x1ae   :  { %v1443_v34 = vpop.f32.mrb[92].mxu0  ;;  %v2082_v44 = vpop.f32.mrb[105].mxu1 }
 0x1af   :  { %v1823_v0 = vpack.c.bf16 %v1516_v55, %v1516_v55  ;;  %v1517_v46 = vmax.f32 %v1504_v56, 0.0  ;;  %v1444_v45 = vadd.f32 %v2065_v41, %v1443_v34  ;;  %v2212_v49 = vpop.f32.mrb[93].mxu0  ;;  %v3054_v61 = vadd.f32 %v2082_v44, %v2081_v62  ;;  %v2084_v16 = vpop.f32.mrb[106].mxu1 }
 0x1b0   :  { %v1446_v10 = vpop.f32.mrb[94].mxu0  ;;  %v2085_v47 = vpop.f32.mrb[107].mxu1 }
 0x1b1   :  { %1583 = vst.msk [vmem:[%s3128_s3 + $0x8] sm:$0xf] %vm1580_vm2, %v1823_v0  ;;  %v1824_v13 = vpack.c.bf16 %v1517_v46, %v1517_v46  ;;  %v1485_v48 = vmax.f32 %v2983_v15, %v1444_v45  ;;  %v1447_v52 = vadd.f32 %v2068_v9, %v1446_v10  ;;  %v2213_v43 = vpop.f32.mrb[95].mxu0  ;;  %v3061_v12 = vadd.f32 %v2085_v47, %v2084_v16 }
 0x1b3   :  { %1584 = vst.msk [vmem:[%s3128_s3 + $0xc] sm:$0xf] %vm1580_vm2, %v1824_v13  ;;  %v1505_v41 = vadd.f32 %v3030_v36, %v1485_v48  ;;  %v1486_v6 = vmax.f32 %v2988_v17, %v1447_v52 }
 0x1b5   :  { %v1518_v50 = vmax.f32 %v1505_v41, 0.0  ;;  %v1506_v14 = vadd.f32 %v3030_v36, %v1486_v6  ;;  %v2087_v5 = vpop.f32.mrb[108].mxu1 }
 0x1b6   :  { %v1451_v18 = vpop.f32.mrb[96].mxu0  ;;  %v2088_v30 = vpop.f32.mrb[109].mxu1 }
 0x1b7   :  { %v1825_v15 = vpack.c.bf16 %v1518_v50, %v1518_v50  ;;  %v1519_v9 = vmax.f32 %v1506_v14, 0.0  ;;  %v1452_v31 = vadd.f32 %v3025_v19, %v1451_v18  ;;  %v2216_v23 = vpop.f32.mrb[97].mxu0  ;;  %v2089_v59 = vadd.f32 %v2088_v30, %v2087_v5  ;;  %v2090_v38 = vpop.f32.mrb[110].mxu1 }
 0x1b8   :  { %v1454_v57 = vpop.f32.mrb[98].mxu0  ;;  %v2091_v63 = vpop.f32.mrb[111].mxu1 }
 0x1b9   :  { %1585 = vst.msk [vmem:[%s3128_s3 + $0x10] sm:$0xf] %vm1580_vm2, %v1825_v15  ;;  %v1826_v17 = vpack.c.bf16 %v1519_v9, %v1519_v9  ;;  %v1487_v1 = vmax.f32 %v2993_v27, %v1452_v31  ;;  %v1455_v8 = vadd.f32 %v3033_v2, %v1454_v57  ;;  %v2217_v40 = vpop.f32.mrb[99].mxu0 }
 0x1bb   :  { %1586 = vst.msk [vmem:[%s3128_s3 + $0x14] sm:$0xf] %vm1580_vm2, %v1826_v17  ;;  %v1507_v19 = vadd.f32 %v3030_v36, %v1487_v1  ;;  %v1488_v58 = vmax.f32 %v2998_v28, %v1455_v8 }
 0x1bd   :  { %v1520_v42 = vmax.f32 %v1507_v19, 0.0  ;;  %v1508_v35 = vadd.f32 %v3030_v36, %v1488_v58  ;;  %v1475_v54 = vpop.f32.mrb[112].mxu1 }
 0x1be   :  { %v1476_v26 = vadd.f32 %v2089_v59, %v1475_v54  ;;  %v1459_v32 = vpop.f32.mrb[100].mxu0  ;;  %v2228_v11 = vpop.f32.mrb[113].mxu1 }
 0x1bf   :  { %v1827_v27 = vpack.c.bf16 %v1520_v42, %v1520_v42  ;;  %v1521_v25 = vmax.f32 %v1508_v35, 0.0  ;;  %v1460_v2 = vadd.f32 %v3038_v4, %v1459_v32  ;;  %v2220_v20 = vpop.f32.mrb[101].mxu0  ;;  %v1478_v24 = vpop.f32.mrb[114].mxu1 }
 0x1c0   :  { %v1493_v21 = vmax.f32 %v3023_v7, %v1476_v26  ;;  %v1462_v22 = vpop.f32.mrb[102].mxu0  ;;  %v2229_v3 = vpop.f32.mrb[115].mxu1 }
 0x1c1   :  { %1587 = vst.msk [vmem:[%s3128_s3 + $0x18] sm:$0xf] %vm1580_vm2, %v1827_v27  ;;  %v1828_v28 = vpack.c.bf16 %v1521_v25, %v1521_v25  ;;  %v1489_v29 = vmax.f32 %v3003_v37, %v1460_v2  ;;  %v1463_v60 = vadd.f32 %v3045_v33, %v1462_v22  ;;  %v2221_v55 = vpop.f32.mrb[103].mxu0 }
 0x1c2   :  { %v1513_v56 = vadd.f32 %v3030_v36, %v1493_v21 }
 0x1c3   :  { %1588 = vst.msk [vmem:[%s3128_s3 + $0x1c] sm:$0xf] %vm1580_vm2, %v1828_v28  ;;  %v1509_v7 = vadd.f32 %v3030_v36, %v1489_v29  ;;  %v1490_v4 = vmax.f32 %v3008_v39, %v1463_v60 }
 0x1c4   :  { %v1526_v62 = vmax.f32 %v1513_v56, 0.0 }
 0x1c5   :  { %v1522_v34 = vmax.f32 %v1509_v7, 0.0  ;;  %v1510_v44 = vadd.f32 %v3030_v36, %v1490_v4 }
 0x1c6   :  { %v1833_v37 = vpack.c.bf16 %v1526_v62, %v1526_v62  ;;  %v1467_v0 = vpop.f32.mrb[104].mxu0 }
 0x1c7   :  { %v1829_v33 = vpack.c.bf16 %v1522_v34, %v1522_v34  ;;  %v1523_v46 = vmax.f32 %v1510_v44, 0.0  ;;  %v1468_v45 = vadd.f32 %v3054_v61, %v1467_v0  ;;  %v2224_v49 = vpop.f32.mrb[105].mxu0 }
 0x1c8   :  { %1594 = vst.msk [vmem:[%s3128_s3 + $0x30] sm:$0x1] %vm1593_vm3, %v1833_v37  ;;  %v1470_v16 = vpop.f32.mrb[106].mxu0 }
 0x1c9   :  { %1589 = vst.msk [vmem:[%s3128_s3 + $0x20] sm:$0xf] %vm1580_vm2, %v1829_v33  ;;  %v1830_v39 = vpack.c.bf16 %v1523_v46, %v1523_v46  ;;  %v1491_v10 = vmax.f32 %v3013_v51, %v1468_v45  ;;  %v1471_v47 = vadd.f32 %v3061_v12, %v1470_v16  ;;  %v2225_v13 = vpop.f32.mrb[107].mxu0 }
 0x1cb   :  { %1590 = vst.msk [vmem:[%s3128_s3 + $0x24] sm:$0xf] %vm1580_vm2, %v1830_v39  ;;  %v1511_v61 = vadd.f32 %v3030_v36, %v1491_v10  ;;  %v1492_v48 = vmax.f32 %v3018_v53, %v1471_v47 }
 0x1cd   :  { %v1524_v52 = vmax.f32 %v1511_v61, 0.0  ;;  %v1512_v43 = vadd.f32 %v3030_v36, %v1492_v48 }
 0x1cf   :  { %v1831_v41 = vpack.c.bf16 %v1524_v52, %v1524_v52  ;;  %v1525_v6 = vmax.f32 %v1512_v43, 0.0 }
 0x1d1   :  { %1591 = vst.msk [vmem:[%s3128_s3 + $0x28] sm:$0xf] %vm1580_vm2, %v1831_v41  ;;  %v1832_v51 = vpack.c.bf16 %v1525_v6, %v1525_v6 }
 0x1d3   :  { %1592 = vst.msk [vmem:[%s3128_s3 + $0x2c] sm:$0xf] %vm1580_vm2, %v1832_v51 }

// kernel: cnn_forward.5
= control target key start
LH: loop header
LB: loop body
LE: loop exit
PB: predicated region body
PF: predicated region fallthrough
CT: control target
= control target key end

     0   :  { %v427_v27 = vlaneseq  ;;  %v3032_v35 = vmov 1966171168   ;;  %s3707_s0 = inlined_call_operand.vmem [shape: bf16[2,3136], index: 0, kind: input, shape index: {}]   ;;  %s3708_s1 = inlined_call_operand.vmem [shape: bf16[3136,10], index: 1, kind: input, shape index: {}]   ;;  %s3709_s2 = inlined_call_operand.vmem [shape: f32[1,10], index: 2, kind: input, shape index: {}]   ;;  %s3710_s3 = inlined_call_operand.hbm [shape: f32[2,10], index: 3, kind: output, shape index: {}]  }
   0x1   :  { %v2809_v0 = vld [vmem:[%s3708_s1 + $0x40] sm:$0xff]   ;;  %v2813_v4 = vld [vmem:[%s3708_s1 + $0x48] sm:$0xff]   ;;  %v2817_v8 = vld [vmem:[%s3708_s1 + $0x50] sm:$0xff]   ;;  %v425_v36 = vunpack.c.l.s4 %v3032_v35 }
   0x2   :  { %v2810_v1 = vld [vmem:[%s3708_s1] sm:$0xff]   ;;  %2524 = vmatprep.subr.bf16.mxu0 %v2809_v0  ;;  %v2814_v5 = vld [vmem:[%s3708_s1 + $0x8] sm:$0xff]   ;;  %v2818_v9 = vld [vmem:[%s3708_s1 + $0x10] sm:$0xff]   ;;  %v428_v32 = vshrl.u32 %v427_v27, 7 }
   0x3   :  { %v2811_v2 = vld [vmem:[%s3708_s1 + $0xc0] sm:$0xff]   ;;  %2525 = vmatpush3.bf16.msra.mxu0 %v2810_v1  ;;  %v2815_v6 = vld [vmem:[%s3708_s1 + $0xc8] sm:$0xff]   ;;  %v2819_v10 = vld [vmem:[%s3708_s1 + $0xd0] sm:$0xff]   ;;  %v426_v39 = vunpack.c.0.s8 %v425_v36 }
   0x4   :  { %v2812_v3 = vld [vmem:[%s3708_s1 + $0x80] sm:$0xff]   ;;  %2546 = vmatprep.subr.bf16.mxu1 %v2811_v2  ;;  %2526 = vmatprep.subr.bf16.mxu0 %v2813_v4  ;;  %v2816_v7 = vld [vmem:[%s3708_s1 + $0x88] sm:$0xff]   ;;  %v2820_v11 = vld [vmem:[%s3708_s1 + $0x90] sm:$0xff]  }
   0x5   :  { %2547 = vmatpush3.bf16.msra.mxu1 %v2812_v3  ;;  %v2821_v12 = vld [vmem:[%s3708_s1 + $0x58] sm:$0xff]   ;;  %v2825_v16 = vld [vmem:[%s3708_s1 + $0x60] sm:$0xff]   ;;  %v2829_v20 = vld [vmem:[%s3708_s1 + $0x68] sm:$0xff]   ;;  %v3161_v41 = vsub.s32 %v426_v39, %v428_v32 }
   0x6   :  { %2548 = vmatprep.subr.bf16.mxu1 %v2815_v6  ;;  %v2822_v13 = vld [vmem:[%s3708_s1 + $0x18] sm:$0xff]   ;;  %v2826_v17 = vld [vmem:[%s3708_s1 + $0x20] sm:$0xff]   ;;  %v2830_v21 = vld [vmem:[%s3708_s1 + $0x28] sm:$0xff]  }
   0x7   :  { %2527 = vmatpush3.bf16.msra.mxu0 %v2814_v5  ;;  %v2823_v14 = vld [vmem:[%s3708_s1 + $0xd8] sm:$0xff]   ;;  %v2827_v18 = vld [vmem:[%s3708_s1 + $0xe0] sm:$0xff]   ;;  %v2831_v22 = vld [vmem:[%s3708_s1 + $0xe8] sm:$0xff]  }
   0x8   :  { %2528 = vmatprep.subr.bf16.mxu0 %v2817_v8  ;;  %v2824_v15 = vld [vmem:[%s3708_s1 + $0x98] sm:$0xff]   ;;  %v2828_v19 = vld [vmem:[%s3708_s1 + $0xa0] sm:$0xff]   ;;  %v2832_v23 = vld [vmem:[%s3708_s1 + $0xa8] sm:$0xff]  }
   0x9   :  { %2549 = vmatpush3.bf16.msra.mxu1 %v2816_v7  ;;  %v2833_v24 = vld [vmem:[%s3708_s1 + $0x70] sm:$0xff]   ;;  %v2837_v29 = vld [vmem:[%s3708_s1 + $0x78] sm:$0xff]   ;;  %v16_v33 = vld [vmem:[%s3707_s0] sm:$0xff] }
   0xa   :  { %2550 = vmatprep.subr.bf16.mxu1 %v2819_v10  ;;  %v2834_v25 = vld [vmem:[%s3708_s1 + $0x30] sm:$0xff]   ;;  %v2838_v30 = vld [vmem:[%s3708_s1 + $0x38] sm:$0xff]   ;;  %v2842_v37 = vld [vmem:[%s3708_s1 + $0x140] sm:$0xff]   ;;  %v423_v38 = vcombine.high %v16_v33, %v16_v33  ;;  %v430_v42 = vrot.slane %v16_v33, %v3161_v41 }
   0xb   :  { %2529 = vmatpush3.bf16.msra.mxu0 %v2818_v9  ;;  %v2835_v26 = vld [vmem:[%s3708_s1 + $0xf0] sm:$0xff]   ;;  %v2839_v31 = vld [vmem:[%s3708_s1 + $0xf8] sm:$0xff]   ;;  %v2844_v40 = vld [vmem:[%s3708_s1 + $0x1c0] sm:$0xff]  }
   0xc   :  { %2530 = vmatprep.subr.bf16.mxu0 %v2821_v12  ;;  %v2836_v28 = vld [vmem:[%s3708_s1 + $0xb0] sm:$0xff]   ;;  %v2841_v34 = vld [vmem:[%s3708_s1 + $0xb8] sm:$0xff]   ;;  %v3165_v43 = vrot.slane %v423_v38, %v3161_v41  ;;  %v438_v44 = vcombine.high %v430_v42, %v430_v42  ;;  %v446_v45 = vrot.slane %v430_v42, %v3161_v41  ;;  %v2843_v48 = vld [vmem:[%s3708_s1 + $0x100] sm:$0xff]  }
   0xd   :  { %2551 = vmatpush3.bf16.msra.mxu1 %v2820_v11  ;;  %v2846_v51 = vld [vmem:[%s3708_s1 + $0x148] sm:$0xff]   ;;  %v2845_v53 = vld [vmem:[%s3708_s1 + $0x180] sm:$0xff]   ;;  %v2850_v57 = vld [vmem:[%s3708_s1 + $0x150] sm:$0xff]  }
   0xe   :  { %2552 = vmatprep.subr.bf16.mxu1 %v2823_v14  ;;  %v439_v46 = vcombine.high %v3165_v43, %v3165_v43  ;;  %v460_v47 = vrot.slane %v438_v44, %v3161_v41  ;;  %v468_v50 = vcombine.high %v446_v45, %v446_v45  ;;  %v2848_v54 = vld [vmem:[%s3708_s1 + $0x1c8] sm:$0xff]   ;;  %v2852_v59 = vld [vmem:[%s3708_s1 + $0x1d0] sm:$0xff]   ;;  %v2854_v61 = vld [vmem:[%s3708_s1 + $0x158] sm:$0xff]  }
   0xf   :  { %2531 = vmatpush3.bf16.msra.mxu0 %v2822_v13  ;;  %v2847_v56 = vld [vmem:[%s3708_s1 + $0x108] sm:$0xff]   ;;  %v2851_v60 = vld [vmem:[%s3708_s1 + $0x110] sm:$0xff]   ;;  %v2856_v63 = vld [vmem:[%s3708_s1 + $0x1d8] sm:$0xff]  }
  0x10   :  { %2532 = vmatprep.subr.bf16.mxu0 %v2825_v16  ;;  %v467_v49 = vrot.slane %v439_v46, %v3161_v41  ;;  %1820 = vmatprep.mubr.bf16.mxu0 %v460_v47  ;;  %v470_v52 = vcombine.high %v460_v47, %v460_v47  ;;  %v2849_v58 = vld [vmem:[%s3708_s1 + $0x188] sm:$0xff]   ;;  %v2853_v62 = vld [vmem:[%s3708_s1 + $0x190] sm:$0xff]   ;;  %v2855_v0 = vld [vmem:[%s3708_s1 + $0x118] sm:$0xff]  }
  0x11   :  { %2553 = vmatpush3.bf16.msra.mxu1 %v2824_v15  ;;  %v2858_v1 = vld [vmem:[%s3708_s1 + $0x160] sm:$0xff]   ;;  %v2857_v2 = vld [vmem:[%s3708_s1 + $0x198] sm:$0xff]   ;;  %v2862_v5 = vld [vmem:[%s3708_s1 + $0x168] sm:$0xff]  }
  0x12   :  { %2554 = vmatprep.subr.bf16.mxu1 %v2827_v18  ;;  %v471_v55 = vcombine.high %v467_v49, %v467_v49  ;;  %1860 = vmatprep.mubr.bf16.mxu1 %v470_v52  ;;  %v2860_v3 = vld [vmem:[%s3708_s1 + $0x1e0] sm:$0xff]   ;;  %v2864_v7 = vld [vmem:[%s3708_s1 + $0x1e8] sm:$0xff]   ;;  %v2866_v9 = vld [vmem:[%s3708_s1 + $0x170] sm:$0xff]  }
  0x13   :  { %2533 = vmatpush3.bf16.msra.mxu0 %v2826_v17  ;;  %v2859_v4 = vld [vmem:[%s3708_s1 + $0x120] sm:$0xff]   ;;  %v2863_v8 = vld [vmem:[%s3708_s1 + $0x128] sm:$0xff]   ;;  %v2868_v11 = vld [vmem:[%s3708_s1 + $0x1f0] sm:$0xff]   ;;  %v453_v17 = vrot.slane %v3165_v43, %v3161_v41 }
  0x14   :  { %2534 = vmatprep.subr.bf16.mxu0 %v2829_v20  ;;  %v2861_v6 = vld [vmem:[%s3708_s1 + $0x1a0] sm:$0xff]   ;;  %v2865_v10 = vld [vmem:[%s3708_s1 + $0x1a8] sm:$0xff]   ;;  %v2867_v12 = vld [vmem:[%s3708_s1 + $0x130] sm:$0xff]  }
  0x15   :  { %2555 = vmatpush3.bf16.msra.mxu1 %v2828_v19  ;;  %v2870_v13 = vld [vmem:[%s3708_s1 + $0x178] sm:$0xff]   ;;  %v2869_v14 = vld [vmem:[%s3708_s1 + $0x1b0] sm:$0xff]   ;;  %v2874_v18 = vld [vmem:[%s3708_s1 + $0x240] sm:$0xff]  }
  0x16   :  { %2556 = vmatprep.subr.bf16.mxu1 %v2831_v22  ;;  %v2872_v15 = vld [vmem:[%s3708_s1 + $0x1f8] sm:$0xff]   ;;  %v2876_v20 = vld [vmem:[%s3708_s1 + $0x2c0] sm:$0xff]   ;;  %v469_v22 = vcombine.high %v453_v17, %v453_v17  ;;  %v2882_v27 = vld [vmem:[%s3708_s1 + $0x250] sm:$0xff]  }
  0x17   :  { %2535 = vmatpush3.bf16.msra.mxu0 %v2830_v21  ;;  %v2871_v16 = vld [vmem:[%s3708_s1 + $0x138] sm:$0xff]   ;;  %v2875_v21 = vld [vmem:[%s3708_s1 + $0x200] sm:$0xff]   ;;  %v2885_v32 = vld [vmem:[%s3708_s1 + $0x290] sm:$0xff]  }
  0x18   :  { %2536 = vmatprep.subr.bf16.mxu0 %v2833_v24  ;;  %v2873_v19 = vld [vmem:[%s3708_s1 + $0x1b8] sm:$0xff]   ;;  %v2877_v24 = vld [vmem:[%s3708_s1 + $0x280] sm:$0xff]   ;;  %v2894_v39 = vld [vmem:[%s3708_s1 + $0x268] sm:$0xff]  }
  0x19   :  { %2557 = vmatpush3.bf16.msra.mxu1 %v2832_v23  ;;  %v2878_v23 = vld [vmem:[%s3708_s1 + $0x248] sm:$0xff]   ;;  %v2888_v33 = vld [vmem:[%s3708_s1 + $0x2d8] sm:$0xff]   ;;  %v2890_v35 = vld [vmem:[%s3708_s1 + $0x260] sm:$0xff]  }
  0x1a   :  { %2558 = vmatprep.subr.bf16.mxu1 %v2835_v26  ;;  %v2879_v26 = vld [vmem:[%s3708_s1 + $0x208] sm:$0xff]   ;;  %v2889_v36 = vld [vmem:[%s3708_s1 + $0x298] sm:$0xff]   ;;  %v2891_v38 = vld [vmem:[%s3708_s1 + $0x220] sm:$0xff]  }
  0x1b   :  { %2537 = vmatpush3.bf16.msra.mxu0 %v2834_v25  ;;  %v2880_v25 = vld [vmem:[%s3708_s1 + $0x2c8] sm:$0xff]   ;;  %v2898_v44 = vld [vmem:[%s3708_s1 + $0x270] sm:$0xff]  }
  0x1c   :  { %2538 = vmatprep.subr.bf16.mxu0 %v2837_v29  ;;  %v2884_v29 = vld [vmem:[%s3708_s1 + $0x2d0] sm:$0xff]   ;;  %v2896_v42 = vld [vmem:[%s3708_s1 + $0x2e8] sm:$0xff]  }
  0x1d   :  { %2559 = vmatpush3.bf16.msra.mxu1 %v2836_v28  ;;  %v2881_v28 = vld [vmem:[%s3708_s1 + $0x288] sm:$0xff]  }
  0x1e   :  { %2560 = vmatprep.subr.bf16.mxu1 %v2839_v31  ;;  %v2886_v31 = vld [vmem:[%s3708_s1 + $0x258] sm:$0xff]   ;;  %v2895_v43 = vld [vmem:[%s3708_s1 + $0x228] sm:$0xff]  }
  0x1f   :  { %2539 = vmatpush3.bf16.msra.mxu0 %v2838_v30  ;;  %v2883_v30 = vld [vmem:[%s3708_s1 + $0x210] sm:$0xff]   ;;  %v2897_v46 = vld [vmem:[%s3708_s1 + $0x2a8] sm:$0xff]  }
  0x20   :  { %2568 = vmatprep.subr.bf16.mxu0 %v2842_v37  ;;  %v2892_v37 = vld [vmem:[%s3708_s1 + $0x2e0] sm:$0xff]  }
  0x21   :  { %2561 = vmatpush3.bf16.msra.mxu1 %v2841_v34  ;;  %v2887_v34 = vld [vmem:[%s3708_s1 + $0x218] sm:$0xff]  }
  0x22   :  { %2590 = vmatprep.subr.bf16.mxu1 %v2844_v40  ;;  %1821 = vmatmul.mubr.bf16.vlgmr.msra.gmra.mrb[0].mxu0 %v446_v45  ;;  %v2893_v40 = vld [vmem:[%s3708_s1 + $0x2a0] sm:$0xff]   ;;  %v17_v45 = vld [vmem:[%s3707_s0 + $0x8] sm:$0xff] }
  0x23   :  { %2569 = vmatpush3.bf16.msra.mxu0 %v2843_v48  ;;  %1900 = vmatprep.mubr.bf16.mxu0 %v467_v49  ;;  %v479_v47 = vrot.slane %v17_v45, %v3161_v41  ;;  %v472_v48 = vcombine.high %v17_v45, %v17_v45  ;;  %v2900_v49 = vld [vmem:[%s3708_s1 + $0x2f0] sm:$0xff]  }
  0x24   :  { %1861 = vmatmul.mubr.bf16.vlgmr.msra.gmra.mrb[0].mxu1 %v468_v50  ;;  %2570 = vmatprep.subr.bf16.mxu0 %v2846_v51  ;;  %v2899_v50 = vld [vmem:[%s3708_s1 + $0x230] sm:$0xff]  }
  0x25   :  { %2591 = vmatpush3.bf16.msra.mxu1 %v2845_v53  ;;  %1940 = vmatprep.mubr.bf16.mxu1 %v471_v55  ;;  %v487_v51 = vcombine.high %v479_v47, %v479_v47  ;;  %v3350_v52 = vrot.slane %v472_v48, %v3161_v41  ;;  %v2902_v53 = vld [vmem:[%s3708_s1 + $0x278] sm:$0xff]   ;;  %v2949_v45 = vld [vmem:[%s3708_s1 + $0x4d0] sm:$0xff]  }
  0x26   :  { %2592 = vmatprep.subr.bf16.mxu1 %v2848_v54  ;;  %v2901_v54 = vld [vmem:[%s3708_s1 + $0x2b0] sm:$0xff]  }
  0x27   :  { %2571 = vmatpush3.bf16.msra.mxu0 %v2847_v56  ;;  %v509_v55 = vrot.slane %v487_v51, %v3161_v41  ;;  %v488_v56 = vcombine.high %v3350_v52, %v3350_v52  ;;  %v2950_v48 = vld [vmem:[%s3708_s1 + $0x490] sm:$0xff]   ;;  %v2955_v51 = vld [vmem:[%s3708_s1 + $0x460] sm:$0xff]  }
  0x28   :  { %2572 = vmatprep.subr.bf16.mxu0 %v2850_v57  ;;  %v2904_v57 = vld [vmem:[%s3708_s1 + $0x2f8] sm:$0xff]  }
  0x29   :  { %2593 = vmatpush3.bf16.msra.mxu1 %v2849_v58  ;;  %v2903_v58 = vld [vmem:[%s3708_s1 + $0x238] sm:$0xff]  }
  0x2a   :  { %2594 = vmatprep.subr.bf16.mxu1 %v2852_v59  ;;  %v519_v59 = vcombine.high %v509_v55, %v509_v55 }
  0x2b   :  { %2573 = vmatpush3.bf16.msra.mxu0 %v2851_v60  ;;  %v495_v60 = vrot.slane %v479_v47, %v3161_v41  ;;  %v2951_v47 = vld [vmem:[%s3708_s1 + $0x458] sm:$0xff]  }
  0x2c   :  { %2574 = vmatprep.subr.bf16.mxu0 %v2854_v61  ;;  %v2906_v61 = vld [vmem:[%s3708_s1 + $0x340] sm:$0xff]  }
  0x2d   :  { %2595 = vmatpush3.bf16.msra.mxu1 %v2853_v62  ;;  %v2905_v62 = vld [vmem:[%s3708_s1 + $0x2b8] sm:$0xff]  }
  0x2e   :  { %2596 = vmatprep.subr.bf16.mxu1 %v2856_v63  ;;  %v516_v63 = vrot.slane %v488_v56, %v3161_v41  ;;  %v2958_v56 = vld [vmem:[%s3708_s1 + $0x4a0] sm:$0xff]  }
  0x2f   :  { %2575 = vmatpush3.bf16.msra.mxu0 %v2855_v0  ;;  %v2908_v0 = vld [vmem:[%s3708_s1 + $0x3c0] sm:$0xff]  }
  0x30   :  { %2576 = vmatprep.subr.bf16.mxu0 %v2858_v1  ;;  %v2907_v1 = vld [vmem:[%s3708_s1 + $0x300] sm:$0xff]  }
  0x31   :  { %2597 = vmatpush3.bf16.msra.mxu1 %v2857_v2  ;;  %v517_v2 = vcombine.high %v495_v60, %v495_v60 }
  0x32   :  { %2598 = vmatprep.subr.bf16.mxu1 %v2860_v3  ;;  %v2910_v3 = vld [vmem:[%s3708_s1 + $0x348] sm:$0xff]  }
  0x33   :  { %2577 = vmatpush3.bf16.msra.mxu0 %v2859_v4  ;;  %v2909_v4 = vld [vmem:[%s3708_s1 + $0x380] sm:$0xff]  }
  0x34   :  { %2578 = vmatprep.subr.bf16.mxu0 %v2862_v5  ;;  %v520_v5 = vcombine.high %v516_v63, %v516_v63 }
  0x35   :  { %2599 = vmatpush3.bf16.msra.mxu1 %v2861_v6  ;;  %v2912_v6 = vld [vmem:[%s3708_s1 + $0x3c8] sm:$0xff]  }
  0x36   :  { %2600 = vmatprep.subr.bf16.mxu1 %v2864_v7  ;;  %v2911_v7 = vld [vmem:[%s3708_s1 + $0x308] sm:$0xff]  }
  0x37   :  { %2579 = vmatpush3.bf16.msra.mxu0 %v2863_v8  ;;  %v2914_v8 = vld [vmem:[%s3708_s1 + $0x350] sm:$0xff]  }
  0x38   :  { %2580 = vmatprep.subr.bf16.mxu0 %v2866_v9  ;;  %v2913_v9 = vld [vmem:[%s3708_s1 + $0x388] sm:$0xff]  }
  0x39   :  { %2601 = vmatpush3.bf16.msra.mxu1 %v2865_v10  ;;  %v2916_v10 = vld [vmem:[%s3708_s1 + $0x3d0] sm:$0xff]  }
  0x3a   :  { %2602 = vmatprep.subr.bf16.mxu1 %v2868_v11  ;;  %v2915_v11 = vld [vmem:[%s3708_s1 + $0x310] sm:$0xff]  }
  0x3b   :  { %2581 = vmatpush3.bf16.msra.mxu0 %v2867_v12  ;;  %v2918_v12 = vld [vmem:[%s3708_s1 + $0x358] sm:$0xff]  }
  0x3c   :  { %2582 = vmatprep.subr.bf16.mxu0 %v2870_v13  ;;  %v2917_v13 = vld [vmem:[%s3708_s1 + $0x390] sm:$0xff]  }
  0x3d   :  { %2603 = vmatpush3.bf16.msra.mxu1 %v2869_v14  ;;  %v2920_v14 = vld [vmem:[%s3708_s1 + $0x3d8] sm:$0xff]  }
  0x3e   :  { %2604 = vmatprep.subr.bf16.mxu1 %v2872_v15  ;;  %v2919_v15 = vld [vmem:[%s3708_s1 + $0x318] sm:$0xff]  }
  0x3f   :  { %2583 = vmatpush3.bf16.msra.mxu0 %v2871_v16  ;;  %v2922_v16 = vld [vmem:[%s3708_s1 + $0x360] sm:$0xff]  }
  0x40   :  { %2612 = vmatprep.subr.bf16.mxu0 %v2874_v18  ;;  %v2924_v18 = vld [vmem:[%s3708_s1 + $0x3e0] sm:$0xff]  }
  0x41   :  { %2605 = vmatpush3.bf16.msra.mxu1 %v2873_v19  ;;  %v2923_v19 = vld [vmem:[%s3708_s1 + $0x320] sm:$0xff]  }
  0x42   :  { %1901 = vmatmul.mubr.bf16.vlgmr.msra.gmra.mrb[4].mxu0 %v453_v17  ;;  %2634 = vmatprep.subr.bf16.mxu1 %v2876_v20  ;;  %v2921_v17 = vld [vmem:[%s3708_s1 + $0x398] sm:$0xff]   ;;  %v2926_v20 = vld [vmem:[%s3708_s1 + $0x368] sm:$0xff]  }
  0x43   :  { %2613 = vmatpush3.bf16.msra.mxu0 %v2875_v21  ;;  %1980 = vmatprep.mubr.bf16.mxu0 %v509_v55  ;;  %v2925_v21 = vld [vmem:[%s3708_s1 + $0x3a0] sm:$0xff]   ;;  %v2959_v55 = vld [vmem:[%s3708_s1 + $0x468] sm:$0xff]  }
  0x44   :  { %1941 = vmatmul.mubr.bf16.vlgmr.msra.gmra.mrb[4].mxu1 %v469_v22  ;;  %2614 = vmatprep.subr.bf16.mxu0 %v2878_v23  ;;  %v2928_v22 = vld [vmem:[%s3708_s1 + $0x3e8] sm:$0xff]  }
  0x45   :  { %2635 = vmatpush3.bf16.msra.mxu1 %v2877_v24  ;;  %2020 = vmatprep.mubr.bf16.mxu1 %v519_v59  ;;  %v2927_v23 = vld [vmem:[%s3708_s1 + $0x328] sm:$0xff]   ;;  %v2930_v24 = vld [vmem:[%s3708_s1 + $0x370] sm:$0xff]  }
  0x46   :  { %2636 = vmatprep.subr.bf16.mxu1 %v2880_v25  ;;  %v2929_v25 = vld [vmem:[%s3708_s1 + $0x3a8] sm:$0xff]   ;;  %v2963_v59 = vld [vmem:[%s3708_s1 + $0x470] sm:$0xff]  }
  0x47   :  { %2615 = vmatpush3.bf16.msra.mxu0 %v2879_v26  ;;  %v2932_v26 = vld [vmem:[%s3708_s1 + $0x3f0] sm:$0xff]  }
  0x48   :  { %2616 = vmatprep.subr.bf16.mxu0 %v2882_v27  ;;  %v2931_v27 = vld [vmem:[%s3708_s1 + $0x330] sm:$0xff]  }
  0x49   :  { %2637 = vmatpush3.bf16.msra.mxu1 %v2881_v28  ;;  %v2934_v28 = vld [vmem:[%s3708_s1 + $0x378] sm:$0xff]  }
  0x4a   :  { %2638 = vmatprep.subr.bf16.mxu1 %v2884_v29  ;;  %v2933_v29 = vld [vmem:[%s3708_s1 + $0x3b0] sm:$0xff]  }
  0x4b   :  { %2617 = vmatpush3.bf16.msra.mxu0 %v2883_v30  ;;  %v2936_v30 = vld [vmem:[%s3708_s1 + $0x3f8] sm:$0xff]  }
  0x4c   :  { %2618 = vmatprep.subr.bf16.mxu0 %v2886_v31  ;;  %v2935_v31 = vld [vmem:[%s3708_s1 + $0x338] sm:$0xff]  }
  0x4d   :  { %2639 = vmatpush3.bf16.msra.mxu1 %v2885_v32  ;;  %v502_v32 = vrot.slane %v3350_v52, %v3161_v41  ;;  %v2954_v52 = vld [vmem:[%s3708_s1 + $0x498] sm:$0xff]  }
  0x4e   :  { %2640 = vmatprep.subr.bf16.mxu1 %v2888_v33  ;;  %v2939_v33 = vld [vmem:[%s3708_s1 + $0x440] sm:$0xff]  }
  0x4f   :  { %2619 = vmatpush3.bf16.msra.mxu0 %v2887_v34  ;;  %v2938_v34 = vld [vmem:[%s3708_s1 + $0x3b8] sm:$0xff]  }
  0x50   :  { %2620 = vmatprep.subr.bf16.mxu0 %v2890_v35  ;;  %v2941_v35 = vld [vmem:[%s3708_s1 + $0x4c0] sm:$0xff]  }
  0x51   :  { %2641 = vmatpush3.bf16.msra.mxu1 %v2889_v36  ;;  %v2940_v36 = vld [vmem:[%s3708_s1 + $0x400] sm:$0xff]  }
  0x52   :  { %2642 = vmatprep.subr.bf16.mxu1 %v2892_v37  ;;  %v518_v37 = vcombine.high %v502_v32, %v502_v32 }
  0x53   :  { %2621 = vmatpush3.bf16.msra.mxu0 %v2891_v38  ;;  %v2943_v38 = vld [vmem:[%s3708_s1 + $0x448] sm:$0xff]  }
  0x54   :  { %2622 = vmatprep.subr.bf16.mxu0 %v2894_v39  ;;  %v2942_v39 = vld [vmem:[%s3708_s1 + $0x480] sm:$0xff]  }
  0x55   :  { %2643 = vmatpush3.bf16.msra.mxu1 %v2893_v40  ;;  %v2945_v40 = vld [vmem:[%s3708_s1 + $0x4c8] sm:$0xff]  }
  0x56   :  { %2644 = vmatprep.subr.bf16.mxu1 %v2896_v42  ;;  %v2944_v42 = vld [vmem:[%s3708_s1 + $0x408] sm:$0xff]  }
  0x57   :  { %2623 = vmatpush3.bf16.msra.mxu0 %v2895_v43  ;;  %v2947_v43 = vld [vmem:[%s3708_s1 + $0x450] sm:$0xff]  }
  0x58   :  { %2624 = vmatprep.subr.bf16.mxu0 %v2898_v44  ;;  %v2946_v44 = vld [vmem:[%s3708_s1 + $0x488] sm:$0xff]  }
  0x59   :  { %2645 = vmatpush3.bf16.msra.mxu1 %v2897_v46  ;;  %v2948_v46 = vld [vmem:[%s3708_s1 + $0x410] sm:$0xff]  }
  0x5a   :  { %2646 = vmatprep.subr.bf16.mxu1 %v2900_v49  ;;  %v2953_v49 = vld [vmem:[%s3708_s1 + $0x4d8] sm:$0xff]  }
  0x5b   :  { %2625 = vmatpush3.bf16.msra.mxu0 %v2899_v50  ;;  %v2952_v50 = vld [vmem:[%s3708_s1 + $0x418] sm:$0xff]  }
  0x5c   :  { %2626 = vmatprep.subr.bf16.mxu0 %v2902_v53  ;;  %v2957_v53 = vld [vmem:[%s3708_s1 + $0x4e0] sm:$0xff]  }
  0x5d   :  { %2647 = vmatpush3.bf16.msra.mxu1 %v2901_v54  ;;  %v2956_v54 = vld [vmem:[%s3708_s1 + $0x420] sm:$0xff]  }
  0x5e   :  { %2648 = vmatprep.subr.bf16.mxu1 %v2904_v57  ;;  %v2961_v57 = vld [vmem:[%s3708_s1 + $0x4e8] sm:$0xff]  }
  0x5f   :  { %2627 = vmatpush3.bf16.msra.mxu0 %v2903_v58  ;;  %v2960_v58 = vld [vmem:[%s3708_s1 + $0x428] sm:$0xff]  }
  0x60   :  { %2656 = vmatprep.subr.bf16.mxu0 %v2906_v61  ;;  %v2962_v61 = vld [vmem:[%s3708_s1 + $0x4a8] sm:$0xff]  }
  0x61   :  { %2649 = vmatpush3.bf16.msra.mxu1 %v2905_v62 }
  0x62   :  { %1981 = vmatmul.mubr.bf16.vlgmr.msra.gmra.mrb[8].mxu0 %v495_v60  ;;  %2678 = vmatprep.subr.bf16.mxu1 %v2908_v0  ;;  %v18_v60 = vld [vmem:[%s3707_s0 + $0x10] sm:$0xff] }
  0x63   :  { %2657 = vmatpush3.bf16.msra.mxu0 %v2907_v1  ;;  %2060 = vmatprep.mubr.bf16.mxu0 %v516_v63  ;;  %v528_v62 = vrot.slane %v18_v60, %v3161_v41  ;;  %v521_v63 = vcombine.high %v18_v60, %v18_v60  ;;  %v2965_v0 = vld [vmem:[%s3708_s1 + $0x4f0] sm:$0xff]  }
  0x64   :  { %2021 = vmatmul.mubr.bf16.vlgmr.msra.gmra.mrb[8].mxu1 %v517_v2  ;;  %2658 = vmatprep.subr.bf16.mxu0 %v2910_v3  ;;  %v2964_v1 = vld [vmem:[%s3708_s1 + $0x430] sm:$0xff]  }
  0x65   :  { %2679 = vmatpush3.bf16.msra.mxu1 %v2909_v4  ;;  %2100 = vmatprep.mubr.bf16.mxu1 %v520_v5  ;;  %v536_v2 = vcombine.high %v528_v62, %v528_v62  ;;  %v3556_v3 = vrot.slane %v521_v63, %v3161_v41  ;;  %v2967_v4 = vld [vmem:[%s3708_s1 + $0x478] sm:$0xff]   ;;  %v2966_v5 = vld [vmem:[%s3708_s1 + $0x4b0] sm:$0xff]  }
  0x66   :  { %2680 = vmatprep.subr.bf16.mxu1 %v2912_v6 }
  0x67   :  { %2659 = vmatpush3.bf16.msra.mxu0 %v2911_v7  ;;  %v558_v6 = vrot.slane %v536_v2, %v3161_v41  ;;  %v537_v7 = vcombine.high %v3556_v3, %v3556_v3 }
  0x68   :  { %2660 = vmatprep.subr.bf16.mxu0 %v2914_v8  ;;  %v2969_v8 = vld [vmem:[%s3708_s1 + $0x4f8] sm:$0xff]  }
  0x69   :  { %2681 = vmatpush3.bf16.msra.mxu1 %v2913_v9  ;;  %v2968_v9 = vld [vmem:[%s3708_s1 + $0x438] sm:$0xff]  }
  0x6a   :  { %2682 = vmatprep.subr.bf16.mxu1 %v2916_v10  ;;  %v568_v10 = vcombine.high %v558_v6, %v558_v6 }
  0x6b   :  { %2661 = vmatpush3.bf16.msra.mxu0 %v2915_v11  ;;  %v544_v11 = vrot.slane %v528_v62, %v3161_v41 }
  0x6c   :  { %2662 = vmatprep.subr.bf16.mxu0 %v2918_v12  ;;  %v2971_v12 = vld [vmem:[%s3708_s1 + $0x540] sm:$0xff]  }
  0x6d   :  { %2683 = vmatpush3.bf16.msra.mxu1 %v2917_v13  ;;  %v2970_v13 = vld [vmem:[%s3708_s1 + $0x4b8] sm:$0xff]  }
  0x6e   :  { %2684 = vmatprep.subr.bf16.mxu1 %v2920_v14  ;;  %v565_v14 = vrot.slane %v537_v7, %v3161_v41 }
  0x6f   :  { %2663 = vmatpush3.bf16.msra.mxu0 %v2919_v15  ;;  %v2973_v15 = vld [vmem:[%s3708_s1 + $0x5c0] sm:$0xff]  }
  0x70   :  { %2664 = vmatprep.subr.bf16.mxu0 %v2922_v16  ;;  %v2972_v16 = vld [vmem:[%s3708_s1 + $0x500] sm:$0xff]  }
  0x71   :  { %2685 = vmatpush3.bf16.msra.mxu1 %v2921_v17  ;;  %v566_v17 = vcombine.high %v544_v11, %v544_v11 }
  0x72   :  { %2686 = vmatprep.subr.bf16.mxu1 %v2924_v18  ;;  %v2975_v18 = vld [vmem:[%s3708_s1 + $0x548] sm:$0xff]  }
  0x73   :  { %2665 = vmatpush3.bf16.msra.mxu0 %v2923_v19  ;;  %v2974_v19 = vld [vmem:[%s3708_s1 + $0x580] sm:$0xff]  }
  0x74   :  { %2666 = vmatprep.subr.bf16.mxu0 %v2926_v20  ;;  %v569_v20 = vcombine.high %v565_v14, %v565_v14 }
  0x75   :  { %2687 = vmatpush3.bf16.msra.mxu1 %v2925_v21  ;;  %v2977_v21 = vld [vmem:[%s3708_s1 + $0x5c8] sm:$0xff]  }
  0x76   :  { %2688 = vmatprep.subr.bf16.mxu1 %v2928_v22  ;;  %v2976_v22 = vld [vmem:[%s3708_s1 + $0x508] sm:$0xff]  }
  0x77   :  { %2667 = vmatpush3.bf16.msra.mxu0 %v2927_v23  ;;  %v2979_v23 = vld [vmem:[%s3708_s1 + $0x550] sm:$0xff]  }
  0x78   :  { %2668 = vmatprep.subr.bf16.mxu0 %v2930_v24  ;;  %v2978_v24 = vld [vmem:[%s3708_s1 + $0x588] sm:$0xff]  }
  0x79   :  { %2689 = vmatpush3.bf16.msra.mxu1 %v2929_v25  ;;  %v2981_v25 = vld [vmem:[%s3708_s1 + $0x5d0] sm:$0xff]  }
  0x7a   :  { %2690 = vmatprep.subr.bf16.mxu1 %v2932_v26  ;;  %v2980_v26 = vld [vmem:[%s3708_s1 + $0x510] sm:$0xff]  }
  0x7b   :  { %2669 = vmatpush3.bf16.msra.mxu0 %v2931_v27  ;;  %v2983_v27 = vld [vmem:[%s3708_s1 + $0x558] sm:$0xff]  }
  0x7c   :  { %2670 = vmatprep.subr.bf16.mxu0 %v2934_v28  ;;  %v2982_v28 = vld [vmem:[%s3708_s1 + $0x590] sm:$0xff]  }
  0x7d   :  { %2691 = vmatpush3.bf16.msra.mxu1 %v2933_v29  ;;  %v2985_v29 = vld [vmem:[%s3708_s1 + $0x5d8] sm:$0xff]  }
  0x7e   :  { %2692 = vmatprep.subr.bf16.mxu1 %v2936_v30  ;;  %v2984_v30 = vld [vmem:[%s3708_s1 + $0x518] sm:$0xff]  }
  0x7f   :  { %2671 = vmatpush3.bf16.msra.mxu0 %v2935_v31  ;;  %v2987_v31 = vld [vmem:[%s3708_s1 + $0x560] sm:$0xff]  }
  0x80   :  { %2700 = vmatprep.subr.bf16.mxu0 %v2939_v33  ;;  %v2989_v33 = vld [vmem:[%s3708_s1 + $0x5e0] sm:$0xff]  }
  0x81   :  { %2693 = vmatpush3.bf16.msra.mxu1 %v2938_v34  ;;  %v2988_v34 = vld [vmem:[%s3708_s1 + $0x520] sm:$0xff]  }
  0x82   :  { %2061 = vmatmul.mubr.bf16.vlgmr.msra.gmra.mrb[12].mxu0 %v502_v32  ;;  %2722 = vmatprep.subr.bf16.mxu1 %v2941_v35  ;;  %v2986_v32 = vld [vmem:[%s3708_s1 + $0x598] sm:$0xff]   ;;  %v2991_v35 = vld [vmem:[%s3708_s1 + $0x568] sm:$0xff]  }
  0x83   :  { %2701 = vmatpush3.bf16.msra.mxu0 %v2940_v36  ;;  %2140 = vmatprep.mubr.bf16.mxu0 %v558_v6  ;;  %v2990_v36 = vld [vmem:[%s3708_s1 + $0x5a0] sm:$0xff]  }
  0x84   :  { %2101 = vmatmul.mubr.bf16.vlgmr.msra.gmra.mrb[12].mxu1 %v518_v37  ;;  %2702 = vmatprep.subr.bf16.mxu0 %v2943_v38  ;;  %v2993_v37 = vld [vmem:[%s3708_s1 + $0x5e8] sm:$0xff]  }
  0x85   :  { %2723 = vmatpush3.bf16.msra.mxu1 %v2942_v39  ;;  %2180 = vmatprep.mubr.bf16.mxu1 %v568_v10  ;;  %v2992_v38 = vld [vmem:[%s3708_s1 + $0x528] sm:$0xff]   ;;  %v2995_v39 = vld [vmem:[%s3708_s1 + $0x570] sm:$0xff]  }
  0x86   :  { %2724 = vmatprep.subr.bf16.mxu1 %v2945_v40  ;;  %v2994_v40 = vld [vmem:[%s3708_s1 + $0x5a8] sm:$0xff]  }
  0x87   :  { %2703 = vmatpush3.bf16.msra.mxu0 %v2944_v42  ;;  %v2997_v42 = vld [vmem:[%s3708_s1 + $0x5f0] sm:$0xff]  }
  0x88   :  { %2704 = vmatprep.subr.bf16.mxu0 %v2947_v43  ;;  %v2996_v43 = vld [vmem:[%s3708_s1 + $0x530] sm:$0xff]  }
  0x89   :  { %2725 = vmatpush3.bf16.msra.mxu1 %v2946_v44  ;;  %v2999_v44 = vld [vmem:[%s3708_s1 + $0x578] sm:$0xff]  }
  0x8a   :  { %2726 = vmatprep.subr.bf16.mxu1 %v2949_v45  ;;  %v2998_v45 = vld [vmem:[%s3708_s1 + $0x5b0] sm:$0xff]  }
  0x8b   :  { %2705 = vmatpush3.bf16.msra.mxu0 %v2948_v46  ;;  %v3001_v46 = vld [vmem:[%s3708_s1 + $0x5f8] sm:$0xff]  }
  0x8c   :  { %2706 = vmatprep.subr.bf16.mxu0 %v2951_v47  ;;  %v3000_v47 = vld [vmem:[%s3708_s1 + $0x538] sm:$0xff]  }
  0x8d   :  { %2727 = vmatpush3.bf16.msra.mxu1 %v2950_v48 }
  0x8e   :  { %2728 = vmatprep.subr.bf16.mxu1 %v2953_v49 }
  0x8f   :  { %2707 = vmatpush3.bf16.msra.mxu0 %v2952_v50 }
  0x90   :  { %2708 = vmatprep.subr.bf16.mxu0 %v2955_v51 }
  0x91   :  { %2729 = vmatpush3.bf16.msra.mxu1 %v2954_v52 }
  0x92   :  { %2730 = vmatprep.subr.bf16.mxu1 %v2957_v53 }
  0x93   :  { %2709 = vmatpush3.bf16.msra.mxu0 %v2956_v54 }
  0x94   :  { %2710 = vmatprep.subr.bf16.mxu0 %v2959_v55 }
  0x95   :  { %2731 = vmatpush3.bf16.msra.mxu1 %v2958_v56 }
  0x96   :  { %2732 = vmatprep.subr.bf16.mxu1 %v2961_v57 }
  0x97   :  { %2711 = vmatpush3.bf16.msra.mxu0 %v2960_v58 }
  0x98   :  { %2712 = vmatprep.subr.bf16.mxu0 %v2963_v59 }
  0x99   :  { %2733 = vmatpush3.bf16.msra.mxu1 %v2962_v61 }
  0x9a   :  { %2734 = vmatprep.subr.bf16.mxu1 %v2965_v0 }
  0x9b   :  { %2713 = vmatpush3.bf16.msra.mxu0 %v2964_v1 }
  0x9c   :  { %2714 = vmatprep.subr.bf16.mxu0 %v2967_v4 }
  0x9d   :  { %2735 = vmatpush3.bf16.msra.mxu1 %v2966_v5 }
  0x9e   :  { %2736 = vmatprep.subr.bf16.mxu1 %v2969_v8 }
  0x9f   :  { %2715 = vmatpush3.bf16.msra.mxu0 %v2968_v9 }
  0xa0   :  { %2744 = vmatprep.subr.bf16.mxu0 %v2971_v12 }
  0xa1   :  { %2737 = vmatpush3.bf16.msra.mxu1 %v2970_v13 }
  0xa2   :  { %2141 = vmatmul.mubr.bf16.vlgmr.msra.gmra.mrb[16].mxu0 %v544_v11  ;;  %2766 = vmatprep.subr.bf16.mxu1 %v2973_v15 }
  0xa3   :  { %2745 = vmatpush3.bf16.msra.mxu0 %v2972_v16  ;;  %2220 = vmatprep.mubr.bf16.mxu0 %v565_v14 }
  0xa4   :  { %2181 = vmatmul.mubr.bf16.vlgmr.msra.gmra.mrb[16].mxu1 %v566_v17  ;;  %2746 = vmatprep.subr.bf16.mxu0 %v2975_v18 }
  0xa5   :  { %2767 = vmatpush3.bf16.msra.mxu1 %v2974_v19  ;;  %2260 = vmatprep.mubr.bf16.mxu1 %v569_v20 }
  0xa6   :  { %2768 = vmatprep.subr.bf16.mxu1 %v2977_v21 }
  0xa7   :  { %2747 = vmatpush3.bf16.msra.mxu0 %v2976_v22 }
  0xa8   :  { %2748 = vmatprep.subr.bf16.mxu0 %v2979_v23 }
  0xa9   :  { %2769 = vmatpush3.bf16.msra.mxu1 %v2978_v24 }
  0xaa   :  { %2770 = vmatprep.subr.bf16.mxu1 %v2981_v25 }
  0xab   :  { %2749 = vmatpush3.bf16.msra.mxu0 %v2980_v26 }
  0xac   :  { %2750 = vmatprep.subr.bf16.mxu0 %v2983_v27 }
  0xad   :  { %2771 = vmatpush3.bf16.msra.mxu1 %v2982_v28 }
  0xae   :  { %2772 = vmatprep.subr.bf16.mxu1 %v2985_v29 }
  0xaf   :  { %2751 = vmatpush3.bf16.msra.mxu0 %v2984_v30 }
  0xb0   :  { %2752 = vmatprep.subr.bf16.mxu0 %v2987_v31 }
  0xb1   :  { %2773 = vmatpush3.bf16.msra.mxu1 %v2986_v32 }
  0xb2   :  { %2774 = vmatprep.subr.bf16.mxu1 %v2989_v33 }
  0xb3   :  { %2753 = vmatpush3.bf16.msra.mxu0 %v2988_v34 }
  0xb4   :  { %2754 = vmatprep.subr.bf16.mxu0 %v2991_v35 }
  0xb5   :  { %2775 = vmatpush3.bf16.msra.mxu1 %v2990_v36 }
  0xb6   :  { %2776 = vmatprep.subr.bf16.mxu1 %v2993_v37 }
  0xb7   :  { %2755 = vmatpush3.bf16.msra.mxu0 %v2992_v38 }
  0xb8   :  { %2756 = vmatprep.subr.bf16.mxu0 %v2995_v39 }
  0xb9   :  { %2777 = vmatpush3.bf16.msra.mxu1 %v2994_v40 }
  0xba   :  { %2778 = vmatprep.subr.bf16.mxu1 %v2997_v42 }
  0xbb   :  { %2757 = vmatpush3.bf16.msra.mxu0 %v2996_v43 }
  0xbc   :  { %8 = vsyncpa [#allocation3], 0  ;;  %2758 = vmatprep.subr.bf16.mxu0 %v2999_v44  ;;  %v551_v48 = vrot.slane %v3556_v3, %v3161_v41  ;;  %v3003_v49 = vld [vmem:[%s3708_s1 + $0x5b8] sm:$0xff]   ;;  %v3004_v50 = vld [vmem:[%s3708_s1 + $0x600] sm:$0xff]   ;;  %v3033_v51 = vmov 0.0   ;;  %vm3034_vm0 = vmmov 0  }
  0xbd   :  { %2779 = vmatpush3.bf16.msra.mxu1 %v2998_v45  ;;  %v3005_v53 = vld [vmem:[%s3708_s1 + $0x608] sm:$0xff]   ;;  %v3006_v54 = vld [vmem:[%s3708_s1 + $0x610] sm:$0xff]   ;;  %v3007_v55 = vld [vmem:[%s3708_s1 + $0x618] sm:$0xff]   ;;  %vm1784_vm1 = vcmask 523264   ;;  %vm2309_vm2 = vcmask 74752  }
  0xbe   :  { %2780 = vmatprep.subr.bf16.mxu1 %v3001_v46  ;;  %v567_v52 = vcombine.high %v551_v48, %v551_v48  ;;  %v2326_v56 = vld.sshfl [vmem:[%s3707_s0 + $0x18] sm:$0x1 pattern:$0x75316420]  ;;  %v2325_v59 = vld [vmem:[%s3709_s2] ss:$0 sm:$0xff] }
  0xbf   :  { %2759 = vmatpush3.bf16.msra.mxu0 %v3000_v47  ;;  %v583_v57 = vrot.slane %v2326_v56, %v3161_v41  ;;  %s3035_s0 = smov [#allocation2]  }
  0xc0   :  { %2793 = vmatprep.subr.bf16.mxu0 %v3033_v51  ;;  %s2317_s1 = sshll.u32 %s3035_s0, 4  ;;  %s2318_s1 = int_to_ptr.vmem [resolvable:$true] %s2317_s1 }
  0xc1   :  { %2781 = vmatpush3.bf16.msra.mxu1 %v3003_v49  ;;  %s3008_s2 = scalar_lea.vmem %s2318_s1, 32  ;;  %p3013_p1 = scmp.lt.s32.totalorder %s2318_s1, %s2318_s1 }
  0xc2   :  { %2221 = vmatmul.mubr.bf16.vlgmr.msra.gmra.mrb[20].mxu0 %v551_v48  ;;  %p3009_p0 = scmp.ne.s32.totalorder %s2318_s1, %s3008_s2  ;;  %p3014_p2 = scmp.lt.s32.totalorder %s3008_s2, %s3008_s2 }
  0xc3   :  { %2794 = vmatpush3.bf16.msra.mxu0 %v3004_v50  ;;  %2801 = vmatprep.mubr.msk.bf16.mxu0 %vm3034_vm0, %v3033_v51 }
  0xc4   :  { %2261 = vmatmul.mubr.bf16.vlgmr.msra.gmra.mrb[20].mxu1 %v567_v52  ;;  %2795 = vmatprep.subr.bf16.mxu0 %v3033_v51  ;;  %p3015_p3 = por %p3014_p2, %p3013_p1 }
  0xc6   :  { %p3016_p4 = pnand %p3015_p3, %p3009_p0 }
  0xc7   :  { %2796 = vmatpush3.bf16.msra.mxu0 %v3005_v53 }
  0xc8   :  { %2797 = vmatprep.subr.bf16.mxu0 %v3033_v51 }
  0xcb   :  { %2798 = vmatpush3.bf16.msra.mxu0 %v3006_v54 }
  0xcc   :  { %2799 = vmatprep.subr.bf16.mxu0 %v3033_v51 }
  0xcf   :  { %2800 = vmatpush3.bf16.msra.mxu0 %v3007_v55 }
  0xd2   :  { %2802 = vmatmul.mubr.msk.bf16.vlgmr.msra.gmra.mrb[24].mxu0 %vm1784_vm1, %v583_v57 }
  0xf5   :  { %v2540_v58 = vpop.f32.mrb[0].mxu0 }
  0xf6   :  { %v2541_v60 = vpop.f32.mrb[1].mxu0 }
  0xf7   :  { %v2542_v61 = vadd.f32 %v2541_v60, %v2540_v58  ;;  %v2543_v62 = vpop.f32.mrb[2].mxu0  ;;  %v2562_v63 = vpop.f32.mrb[0].mxu1 }
  0xf8   :  { %v2544_v0 = vpop.f32.mrb[3].mxu0  ;;  %v2563_v1 = vpop.f32.mrb[1].mxu1 }
  0xf9   :  { %v1823_v2 = vadd.f32 %v2542_v61, %v2325_v59  ;;  %v2564_v3 = vadd.f32 %v2563_v1, %v2562_v63  ;;  %v2565_v4 = vpop.f32.mrb[2].mxu1 }
  0xfa   :  { %v2566_v5 = vpop.f32.mrb[3].mxu1 }
  0xfb   :  { %v1863_v6 = vadd.f32 %v2564_v3, %v1823_v2 }
 0x115   :  { %v2584_v41 = vpop.f32.mrb[4].mxu0 }
 0x116   :  { %v2585_v7 = vpop.f32.mrb[5].mxu0 }
 0x117   :  { %v2586_v8 = vadd.f32 %v2585_v7, %v2584_v41  ;;  %v2587_v9 = vpop.f32.mrb[6].mxu0  ;;  %v2606_v10 = vpop.f32.mrb[4].mxu1 }
 0x118   :  { %v2588_v11 = vpop.f32.mrb[7].mxu0  ;;  %v2607_v12 = vpop.f32.mrb[5].mxu1 }
 0x119   :  { %v1903_v13 = vadd.f32 %v2586_v8, %v1863_v6  ;;  %v2608_v14 = vadd.f32 %v2607_v12, %v2606_v10  ;;  %v2609_v15 = vpop.f32.mrb[6].mxu1 }
 0x11a   :  { %v2610_v16 = vpop.f32.mrb[7].mxu1 }
 0x11b   :  { %v1943_v17 = vadd.f32 %v2608_v14, %v1903_v13 }
 0x135   :  { %v2628_v18 = vpop.f32.mrb[8].mxu0 }
 0x136   :  { %v2629_v19 = vpop.f32.mrb[9].mxu0 }
 0x137   :  { %v2630_v20 = vadd.f32 %v2629_v19, %v2628_v18  ;;  %v2631_v21 = vpop.f32.mrb[10].mxu0  ;;  %v2650_v22 = vpop.f32.mrb[8].mxu1 }
 0x138   :  { %v2632_v23 = vpop.f32.mrb[11].mxu0  ;;  %v2651_v24 = vpop.f32.mrb[9].mxu1 }
 0x139   :  { %v1983_v25 = vadd.f32 %v2630_v20, %v1943_v17  ;;  %v2652_v26 = vadd.f32 %v2651_v24, %v2650_v22  ;;  %v2653_v27 = vpop.f32.mrb[10].mxu1 }
 0x13a   :  { %v2654_v28 = vpop.f32.mrb[11].mxu1 }
 0x13b   :  { %v2023_v29 = vadd.f32 %v2652_v26, %v1983_v25 }
 0x155   :  { %v2672_v30 = vpop.f32.mrb[12].mxu0 }
 0x156   :  { %v2673_v31 = vpop.f32.mrb[13].mxu0 }
 0x157   :  { %v2674_v32 = vadd.f32 %v2673_v31, %v2672_v30  ;;  %v2675_v33 = vpop.f32.mrb[14].mxu0  ;;  %v2694_v34 = vpop.f32.mrb[12].mxu1 }
 0x158   :  { %v2676_v35 = vpop.f32.mrb[15].mxu0  ;;  %v2695_v36 = vpop.f32.mrb[13].mxu1 }
 0x159   :  { %v2063_v37 = vadd.f32 %v2674_v32, %v2023_v29  ;;  %v2696_v38 = vadd.f32 %v2695_v36, %v2694_v34  ;;  %v2697_v39 = vpop.f32.mrb[14].mxu1 }
 0x15a   :  { %v2698_v40 = vpop.f32.mrb[15].mxu1 }
 0x15b   :  { %v2103_v42 = vadd.f32 %v2696_v38, %v2063_v37 }
 0x175   :  { %v2716_v43 = vpop.f32.mrb[16].mxu0 }
 0x176   :  { %v2717_v44 = vpop.f32.mrb[17].mxu0 }
 0x177   :  { %v2718_v45 = vadd.f32 %v2717_v44, %v2716_v43  ;;  %v2719_v46 = vpop.f32.mrb[18].mxu0  ;;  %v2738_v47 = vpop.f32.mrb[16].mxu1 }
 0x178   :  { %v2720_v48 = vpop.f32.mrb[19].mxu0  ;;  %v2739_v49 = vpop.f32.mrb[17].mxu1 }
 0x179   :  { %v2143_v50 = vadd.f32 %v2718_v45, %v2103_v42  ;;  %v2740_v51 = vadd.f32 %v2739_v49, %v2738_v47  ;;  %v2741_v52 = vpop.f32.mrb[18].mxu1 }
 0x17a   :  { %v2742_v53 = vpop.f32.mrb[19].mxu1 }
 0x17b   :  { %v2183_v54 = vadd.f32 %v2740_v51, %v2143_v50 }
 0x195   :  { %v2760_v55 = vpop.f32.mrb[20].mxu0 }
 0x196   :  { %v2761_v56 = vpop.f32.mrb[21].mxu0 }
 0x197   :  { %v2762_v57 = vadd.f32 %v2761_v56, %v2760_v55  ;;  %v2763_v58 = vpop.f32.mrb[22].mxu0  ;;  %v2782_v59 = vpop.f32.mrb[20].mxu1 }
 0x198   :  { %v2764_v60 = vpop.f32.mrb[23].mxu0  ;;  %v2783_v61 = vpop.f32.mrb[21].mxu1 }
 0x199   :  { %v2223_v62 = vadd.f32 %v2762_v57, %v2183_v54  ;;  %v2784_v63 = vadd.f32 %v2783_v61, %v2782_v59  ;;  %v2785_v0 = vpop.f32.mrb[22].mxu1 }
 0x19a   :  { %v2786_v1 = vpop.f32.mrb[23].mxu1 }
 0x19b   :  { %v2263_v2 = vadd.f32 %v2784_v63, %v2223_v62 }
 0x1a5   :  { %v2302_v3 = vpop.f32.mrb[24].mxu0 }
 0x1a6   :  { %v2303_v4 = vadd.f32 %v2302_v3, %v2263_v2  ;;  %v2803_v5 = vpop.f32.mrb[25].mxu0 }
 0x1a7   :  { %v2305_v6 = vpop.f32.mrb[26].mxu0 }
 0x1a8   :  { %v2308_v41 = vmax.f32 %v2303_v4, 0.0  ;;  %v2804_v7 = vpop.f32.mrb[27].mxu0 }
 0x1aa   :  { %2310 = vst.msk [vmem:[#allocation2] sm:$0x3] %vm2309_vm2, %v2308_v41 }
 0x1ab   :  { %3019 = shalt.err (!%p3016_p4)
}
 0x1ac   :  { %s3020_s11 = scalar_lea.hbm %s3710_s3, 32 }
 0x1ad   :  { %p3021_p5 = scmp.ne.s32.totalorder %s3710_s3, %s3020_s11  ;;  %p3024_p6 = scmp.lt.u32.totalorder %s3020_s11, %s3710_s3 }
 0x1af   :  { %p3026_p7 = pnand %p3024_p6, %p3021_p5 }
 0x1b1   :  { %3029 = shalt.err (!%p3026_p7)
}
 0x1b2   :  { %2320 = dma.vmem_to_hbm [thread:$0]  %s2318_s1, 32, %s3710_s3, [#allocation3]  }
 0x1b3   :  { %3030 = dma.done.wait [#allocation3], 32  }
 0x1b4   :  { %3031 = vsyncadd [#allocation3], 4294967264 }
 0x1b5   :  { %2324 = vsyncpa [#allocation3], 1 }

</bundles_post_ra>
